<compile_context>
chip_gen: v6e
topology: v6e:2x2x1
jax: 0.10.0
libtpu: 0.0.40
codegen_flags: <defaults>
</compile_context>

<pallas_src>
import functools
import math

import jax
import jax.numpy as jnp
import numpy as np
from jax.experimental import pallas as pl
from jax.experimental.pallas import tpu as pltpu

_LANE = 128
_EXP_ROW_TILE = 8        # input rows per expand-matmul tile (MXU M = tile * W)
_DW_ROW_TILE = 8         # output rows per depthwise accumulation tile
_TARGET_ROWS = 2048      # rows (H-tile * W) per project block; ~1024 on v7x


def _vmem_limit(bytes_needed):
    return int(min(110 * 1024 * 1024, max(32 * 1024 * 1024, bytes_needed)))


# ----------------------------------------------------------------------------
# Kernel 1: fused expand 1x1 + BN0 + swish + depthwise + BN1 + swish + SE pool
# ----------------------------------------------------------------------------
def _expand_dw_pool_kernel(*refs, k, stride, H, W, Ho, Wo, pad_top, pad_left,
                           Hp, Wp, do_expand):
    it = iter(refs)
    x_ref = next(it)
    if do_expand:
        we_ref, s0_ref, b0_ref = next(it), next(it), next(it)
    wd_ref, s1_ref, b1_ref = next(it), next(it), next(it)
    a_ref, pool_ref = next(it), next(it)
    yp_ref = next(it)                                   # (Hp, Wp, Ep) bf16

    Ep = wd_ref.shape[-1]
    Cp = x_ref.shape[-1]
    pad_bot = Hp - pad_top - H
    pad_right = Wp - pad_left - W

    # ---- halo rows: zero only the halo (full-width stores) ------------------
    if pad_top:
        yp_ref[0:pad_top, :, :] = jnp.zeros((pad_top, Wp, Ep), yp_ref.dtype)
    if pad_bot:
        yp_ref[pad_top + H:Hp, :, :] = jnp.zeros((pad_bot, Wp, Ep), yp_ref.dtype)

    # ---- expand 1x1 + BN0 + swish, per row-tile, written once into yp -------
    for r0 in range(0, H, _EXP_ROW_TILE):
        rt = min(_EXP_ROW_TILE, H - r0)
        xt = x_ref[0, r0:r0 + rt, :, :].reshape(rt * W, Cp)     # bf16
        if do_expand:
            y = jnp.dot(xt, we_ref[...], preferred_element_type=jnp.float32)
            y = y * s0_ref[...] + b0_ref[...]                   # folded BN0
            y = y * jax.nn.sigmoid(y)                           # swish
            y = y.astype(yp_ref.dtype)
        else:
            y = xt.astype(yp_ref.dtype)
        y = y.reshape(rt, W, Ep)
        if pad_left or pad_right:
            parts = []
            if pad_left:
                parts.append(jnp.zeros((rt, pad_left, Ep), yp_ref.dtype))
            parts.append(y)
            if pad_right:
                parts.append(jnp.zeros((rt, pad_right, Ep), yp_ref.dtype))
            y = jnp.concatenate(parts, axis=1)                  # (rt, Wp, Ep)
        yp_ref[pad_top + r0:pad_top + r0 + rt, :, :] = y        # full-width store

    # ---- depthwise kxk + BN1 + swish, row-tiled accumulation (f32) ----------
    wd = wd_ref[...]                                            # (k*k, Ep) f32
    s1 = s1_ref[0, :]
    b1 = b1_ref[0, :]
    psum = jnp.zeros((Ep,), jnp.float32)
    for r0 in range(0, Ho, _DW_ROW_TILE):
        tr = min(_DW_ROW_TILE, Ho - r0)
        h0 = r0 * stride
        acc = None
        for kh in range(k):                                     # static unroll
            for kw in range(k):
                if stride == 1:
                    tap = yp_ref[h0 + kh:h0 + kh + tr, kw:kw + Wo, :]
                else:
                    tap = yp_ref[pl.ds(h0 + kh, tr, stride=stride),
                                 pl.ds(kw, Wo, stride=stride), :]
                term = tap * wd[kh * k + kw, :]                 # bf16*f32 -> f32
                acc = term if acc is None else acc + term
        z = acc * s1 + b1                                       # folded BN1
        z = z * jax.nn.sigmoid(z)                               # swish
        a_ref[0, r0:r0 + tr, :, :] = z.astype(a_ref.dtype)
        psum = psum + jnp.sum(z, axis=(0, 1))
    pool_ref[...] = (psum * (1.0 / (Ho * Wo))).reshape(1, 1, Ep)


def _fused_expand_dw_call(x_bf16, we, s0, b0, wd, s1, b1, *, k, stride,
                          Ho, Wo, pad_top, pad_left, Hp, Wp, do_expand):
    N, H, W, Cp = x_bf16.shape
    Ep = wd.shape[1]
    kern = functools.partial(
        _expand_dw_pool_kernel, k=k, stride=stride, H=H, W=W, Ho=Ho, Wo=Wo,
        pad_top=pad_top, pad_left=pad_left, Hp=Hp, Wp=Wp, do_expand=do_expand)

    in_specs = [pl.BlockSpec((1, H, W, Cp), lambda b: (b, 0, 0, 0))]
    args = [x_bf16]
    blk_bytes = H * W * Cp * 2
    if do_expand:
        in_specs += [pl.BlockSpec((Cp, Ep), lambda b: (0, 0)),
                     pl.BlockSpec((1, Ep), lambda b: (0, 0)),
                     pl.BlockSpec((1, Ep), lambda b: (0, 0))]
        args += [we, s0, b0]
        blk_bytes += Cp * Ep * 2 + 2 * Ep * 4
    in_specs += [pl.BlockSpec((k * k, Ep), lambda b: (0, 0)),
                 pl.BlockSpec((1, Ep), lambda b: (0, 0)),
                 pl.BlockSpec((1, Ep), lambda b: (0, 0))]
    args += [wd, s1, b1]
    blk_bytes += (k * k + 2) * Ep * 4
    blk_bytes += Ho * Wo * Ep * 2 + Ep * 4                 # outputs
    scratch_bytes = Hp * Wp * Ep * 2
    vmem = _vmem_limit(2 * blk_bytes + scratch_bytes + (8 << 20))

    return pl.pallas_call(
        kern,
        out_shape=(jax.ShapeDtypeStruct((N, Ho, Wo, Ep), jnp.bfloat16),
                   jax.ShapeDtypeStruct((N, 1, Ep), jnp.float32)),
        grid=(N,),
        in_specs=in_specs,
        out_specs=(pl.BlockSpec((1, Ho, Wo, Ep), lambda b: (b, 0, 0, 0)),
                   pl.BlockSpec((1, 1, Ep), lambda b: (b, 0, 0))),
        scratch_shapes=[pltpu.VMEM((Hp, Wp, Ep), jnp.bfloat16)],
        compiler_params=pltpu.CompilerParams(
            dimension_semantics=("parallel",), vmem_limit_bytes=vmem),
    )(*args)


# ----------------------------------------------------------------------------
# Kernel 2: SE FCs (once per batch, t==0) + SE scale + project 1x1 + BN2 (+res)
# ----------------------------------------------------------------------------
def _project_kernel(*refs, has_se, has_res):
    it = iter(refs)
    a_ref = next(it)
    if has_se:
        pool_ref, wr_ref, br_ref, wse_ref, be_ref = (next(it), next(it),
                                                     next(it), next(it),
                                                     next(it))
    wp_ref, s2_ref, b2_ref = next(it), next(it), next(it)
    res_ref = next(it) if has_res else None
    o_ref = next(it)
    se_ref = next(it) if has_se else None

    if has_se:
        # Tiny SE FCs: compute once per batch element and keep the sigmoid
        # scale resident in VMEM scratch for all of its row tiles.
        @pl.when(pl.program_id(1) == 0)
        def _():
            m = pool_ref[0]                                    # (1, Ep) f32
            z = jnp.dot(m, wr_ref[...], preferred_element_type=jnp.float32)
            z = z + br_ref[...]
            z = z * jax.nn.sigmoid(z)                          # swish
            t = jnp.dot(z, wse_ref[...], preferred_element_type=jnp.float32)
            t = t + be_ref[...]
            se_ref[...] = jax.nn.sigmoid(t)

    a = a_ref[0]                                               # (TH, Wo, Ep) bf16
    if has_se:
        a = a * se_ref[...].astype(jnp.bfloat16)[0, :]         # bf16 SE prologue
    th, wo, ep = a.shape
    y = jnp.dot(a.reshape(th * wo, ep), wp_ref[...],
                preferred_element_type=jnp.float32)
    y = y * s2_ref[...] + b2_ref[...]                          # folded BN2
    y = y.reshape(th, wo, -1)
    if has_res:
        y = y + res_ref[0]                                     # f32 residual
    # TODO(synk): emit bf16 here if the consumer tolerates it (halves writeback).
    o_ref[0] = y.astype(o_ref.dtype)


def _largest_divisor_leq(n, cap):
    cap = max(1, min(n, cap))
    for d in range(cap, 0, -1):
        if n % d == 0:
            return d
    return 1


def _project_call(a, pool, se_w, wp, s2, b2, residual=None):
    N, Ho, Wo, Ep = a.shape
    Op = wp.shape[1]
    has_se = se_w is not None
    has_res = residual is not None
    # TODO(synk): pad Ho instead of divisor fallback if Ho is awkward/prime.
    TH = _largest_divisor_leq(Ho, max(1, _TARGET_ROWS // max(Wo, 1)))
    grid = (N, Ho // TH)

    in_specs = [pl.BlockSpec((1, TH, Wo, Ep), lambda b, t: (b, t, 0, 0))]
    args = [a]
    blk_bytes = TH * Wo * Ep * 2
    if has_se:
        wr, br, wse, be = se_w
        Sp = wr.shape[1]
        in_specs += [pl.BlockSpec((1, 1, Ep), lambda b, t: (b, 0, 0)),
                     pl.BlockSpec((Ep, Sp), lambda b, t: (0, 0)),
                     pl.BlockSpec((1, Sp), lambda b, t: (0, 0)),
                     pl.BlockSpec((Sp, Ep), lambda b, t: (0, 0)),
                     pl.BlockSpec((1, Ep), lambda b, t: (0, 0))]
        args += [pool, wr, br, wse, be]
        blk_bytes += (Ep + Sp + 2 * Ep * Sp + Ep + Sp) * 4
    in_specs += [pl.BlockSpec((Ep, Op), lambda b, t: (0, 0)),
                 pl.BlockSpec((1, Op), lambda b, t: (0, 0)),
                 pl.BlockSpec((1, Op), lambda b, t: (0, 0))]
    args += [wp, s2, b2]
    blk_bytes += Ep * Op * 2 + 2 * Op * 4
    if has_res:
        in_specs.append(pl.BlockSpec((1, TH, Wo, Op), lambda b, t: (b, t, 0, 0)))
        args.append(residual)
        blk_bytes += TH * Wo * Op * 4
    blk_bytes += TH * Wo * Op * 4                              # output block
    vmem = _vmem_limit(2 * blk_bytes + (8 << 20))

    scratch = [pltpu.VMEM((1, Ep), jnp.float32)] if has_se else []
    kern = functools.partial(_project_kernel, has_se=has_se, has_res=has_res)
    return pl.pallas_call(
        kern,
        out_shape=jax.ShapeDtypeStruct((N, Ho, Wo, Op), jnp.float32),
        grid=grid,
        in_specs=in_specs,
        out_specs=pl.BlockSpec((1, TH, Wo, Op), lambda b, t: (b, t, 0, 0)),
        scratch_shapes=scratch,
        compiler_params=pltpu.CompilerParams(
            dimension_semantics=("parallel", "arbitrary"),
            vmem_limit_bytes=vmem),
    )(*args)


# ----------------------------------------------------------------------------
# MBConvBlock forward (Pallas)
# ----------------------------------------------------------------------------
def _round_up(v, m):
    return ((v + m - 1) // m) * m


def _pad_axis(arr, axis, target):
    pad = [(0, 0)] * arr.ndim
    pad[axis] = (0, target - arr.shape[axis])
    return jnp.pad(arr, pad)


def mbconv_forward(x_nchw, p):
    """x_nchw: (N, Cin, H, W) float32. Returns (N, Cout, Ho, Wo) float32."""
    x = jnp.transpose(x_nchw, (0, 2, 3, 1))                    # NHWC f32
    N, H, W, Cin = x.shape
    stride = p["stride"]
    expand = p["expand_ratio"] != 1
    Cexp = p["w_expand"].shape[1] if expand else Cin
    Cout = p["w_project"].shape[1]
    k = p["w_dw"].shape[0]

    Cp = _round_up(Cin, _LANE)
    Ep = _round_up(Cexp, _LANE)
    Op = _round_up(Cout, _LANE)

    # ---- channel padding once; bf16 pre-cast of MXU operands (DMA savings) --
    xpad = _pad_axis(x, 3, Cp)                                 # f32 (residual)
    x_bf16 = xpad.astype(jnp.bfloat16)                         # kernel-1 input
    if expand:
        we = _pad_axis(_pad_axis(p["w_expand"], 0, Cp), 1, Ep).astype(jnp.bfloat16)
        s0 = _pad_axis(p["bn0_scale"], 1, Ep)
        b0 = _pad_axis(p["bn0_bias"], 1, Ep)
    else:
        we = s0 = b0 = None
    wd = _pad_axis(p["w_dw"].reshape(k * k, Cexp), 1, Ep)
    s1 = _pad_axis(p["bn1_scale"], 1, Ep)
    b1 = _pad_axis(p["bn1_bias"], 1, Ep)
    wp = _pad_axis(_pad_axis(p["w_project"], 0, Ep), 1, Op).astype(jnp.bfloat16)
    s2 = _pad_axis(p["bn2_scale"], 1, Op)
    b2 = _pad_axis(p["bn2_bias"], 1, Op)

    # ---- TF-style 'same' geometry -------------------------------------------
    Ho, Wo = math.ceil(H / stride), math.ceil(W / stride)
    pad_h = max((Ho - 1) * stride + k - H, 0)
    pad_w = max((Wo - 1) * stride + k - W, 0)
    pad_top, pad_left = pad_h // 2, pad_w // 2
    Hp, Wp = H + pad_h, W + pad_w

    # ---- kernel 1: fused expand + depthwise + SE pool ------------------------
    a, pool = _fused_expand_dw_call(
        x_bf16, we, s0, b0, wd, s1, b1, k=k, stride=stride, Ho=Ho, Wo=Wo,
        pad_top=pad_top, pad_left=pad_left, Hp=Hp, Wp=Wp, do_expand=expand)

    # ---- SE FC weights (consumed inside kernel 2) -----------------------------
    if p["has_se"]:
        Csq = p["w_se_red"].shape[1]
        Sp = _round_up(Csq, _LANE)
        wr = _pad_axis(_pad_axis(p["w_se_red"], 0, Ep), 1, Sp)
        br = _pad_axis(p["b_se_red"], 1, Sp)
        wse = _pad_axis(_pad_axis(p["w_se_exp"], 0, Sp), 1, Ep)
        be = _pad_axis(p["b_se_exp"], 1, Ep)
        se_w = (wr, br, wse, be)
    else:
        se_w = None

    # ---- kernel 2: SE + project + BN2 (+ residual) ----------------------------
    use_skip = p["id_skip"] and stride == 1 and Cin == Cout
    res = xpad if use_skip else None                 # Cp == Op when skipping
    # TODO(synk): drop_connect is identity at inference (training not supported).
    out = _project_call(a, pool, se_w, wp, s2, b2, residual=res)

    out = out[..., :Cout]
    return jnp.transpose(out, (0, 3, 1, 2))          # back to NCHW


# ----------------------------------------------------------------------------
# NumPy reference (exact math, float64) for a sanity check
# ----------------------------------------------------------------------------
def _sigmoid(v):
    return 1.0 / (1.0 + np.exp(-v))


def mbconv_reference(x_nchw, p):
    f = lambda a: np.asarray(a, np.float64)
    x = np.transpose(f(x_nchw), (0, 2, 3, 1))
    identity = x
    N, H, W, Cin = x.shape
    s = p["stride"]
    if p["expand_ratio"] != 1:
        y = x @ f(p["w_expand"])
        y = y * f(p["bn0_scale"]) + f(p["bn0_bias"])
        x = y * _sigmoid(y)
    k = p["w_dw"].shape[0]
    Ho, Wo = math.ceil(H / s), math.ceil(W / s)
    pad_h = max((Ho - 1) * s + k - H, 0)
    pad_w = max((Wo - 1) * s + k - W, 0)
    xp = np.pad(x, ((0, 0), (pad_h // 2, pad_h - pad_h // 2),
                    (pad_w // 2, pad_w - pad_w // 2), (0, 0)))
    C = x.shape[-1]
    acc = np.zeros((N, Ho, Wo, C))
    wd = f(p["w_dw"])
    for kh in range(k):
        for kw in range(k):
            acc += xp[:, kh:kh + (Ho - 1) * s + 1:s,
                      kw:kw + (Wo - 1) * s + 1:s, :] * wd[kh, kw, :]
    y = acc * f(p["bn1_scale"]) + f(p["bn1_bias"])
    x = y * _sigmoid(y)
    if p["has_se"]:
        m = x.mean(axis=(1, 2))
        z = m @ f(p["w_se_red"]) + f(p["b_se_red"])
        z = z * _sigmoid(z)
        sc = _sigmoid(z @ f(p["w_se_exp"]) + f(p["b_se_exp"]))
        x = x * sc[:, None, None, :]
    y = x @ f(p["w_project"])
    y = y * f(p["bn2_scale"]) + f(p["bn2_bias"])
    Cout = y.shape[-1]
    if p["id_skip"] and s == 1 and Cin == Cout:
        y = y + identity
    return np.transpose(y, (0, 3, 1, 2)).astype(np.float32)


# ----------------------------------------------------------------------------
# Deterministic parameter construction + run
# ----------------------------------------------------------------------------
def _fold_bn(key, c, eps):
    kg, kb, km, kv = jax.random.split(key, 4)
    gamma = 1.0 + 0.1 * jax.random.normal(kg, (c,), jnp.float32)
    beta = 0.1 * jax.random.normal(kb, (c,), jnp.float32)
    mean = 0.1 * jax.random.normal(km, (c,), jnp.float32)
    var = 0.5 + jax.random.uniform(kv, (c,), jnp.float32)
    scale = gamma / jnp.sqrt(var + eps)
    bias = beta - mean * scale
    return scale.reshape(1, c), bias.reshape(1, c)


def make_params(key, cin, cout, expand_ratio, kernel_size, stride, se_ratio,
                eps=1e-3):
    cexp = cin * expand_ratio
    csq = max(1, int(cin * se_ratio))
    ks = jax.random.split(key, 12)
    p = {
        "expand_ratio": expand_ratio,
        "stride": stride,
        "has_se": se_ratio is not None and 0 < se_ratio <= 1,
        "id_skip": True,
        "w_expand": 0.1 * jax.random.normal(ks[0], (cin, cexp), jnp.float32),
        "w_dw": 0.1 * jax.random.normal(ks[1], (kernel_size, kernel_size, cexp),
                                        jnp.float32),
        "w_se_red": 0.1 * jax.random.normal(ks[2], (cexp, csq), jnp.float32),
        "b_se_red": 0.1 * jax.random.normal(ks[3], (1, csq), jnp.float32),
        "w_se_exp": 0.1 * jax.random.normal(ks[4], (csq, cexp), jnp.float32),
        "b_se_exp": 0.1 * jax.random.normal(ks[5], (1, cexp), jnp.float32),
        "w_project": 0.1 * jax.random.normal(ks[6], (cexp, cout), jnp.float32),
    }
    p["bn0_scale"], p["bn0_bias"] = _fold_bn(ks[7], cexp, eps)
    p["bn1_scale"], p["bn1_bias"] = _fold_bn(ks[8], cexp, eps)
    p["bn2_scale"], p["bn2_bias"] = _fold_bn(ks[9], cout, eps)
    return p


if __name__ == "__main__":
    key = jax.random.PRNGKey(0)
    k_x, k_p = jax.random.split(key)

    # block_args: input_filters=8, output_filters=8, expand_ratio=6,
    #             kernel_size=3, strides=1, se_ratio=0.25, id_skip=True
    N, CIN, H, W = 2, 8, 16, 16
    params = make_params(k_p, cin=CIN, cout=8, expand_ratio=6,
                         kernel_size=3, stride=1, se_ratio=0.25)

    x = jax.random.normal(k_x, (N, CIN, H, W), jnp.float32)

    out = mbconv_forward(x, params)
    out = jax.block_until_ready(out)

    ref = mbconv_reference(np.asarray(x), params)
    assert out.shape == ref.shape, (out.shape, ref.shape)
    # Tolerance covers bf16 MXU operands / bf16 padded-activation scratch.
    np.testing.assert_allclose(np.asarray(out), ref, rtol=2e-2, atol=2e-2)

    print("KERNEL_OK")
</pallas_src>

<mosaic_0001>
module attributes {stable_mosaic.version = 11 : i64} {
  func.func @_expand_dw_pool_kernel(%arg0: i32, %arg1: memref<1x16x16x128xbf16, #tpu.memory_space<vmem>>, %arg2: memref<128x128xbf16, #tpu.memory_space<vmem>>, %arg3: memref<1x128xf32, #tpu.memory_space<vmem>>, %arg4: memref<1x128xf32, #tpu.memory_space<vmem>>, %arg5: memref<9x128xf32, #tpu.memory_space<vmem>>, %arg6: memref<1x128xf32, #tpu.memory_space<vmem>>, %arg7: memref<1x128xf32, #tpu.memory_space<vmem>>, %arg8: memref<1x16x16x128xbf16, #tpu.memory_space<vmem>>, %arg9: memref<1x1x128xf32, #tpu.memory_space<vmem>>, %arg10: memref<18x18x128xbf16, #tpu.memory_space<vmem>>) attributes {dimension_semantics = [#tpu.dimension_semantics<parallel>], iteration_bounds = array<i64: 2>, scalar_prefetch = 0 : i64, scratch_operands = 1 : i64, tpu.core_type = #tpu.core_type<tc>, window_params = [{transform_indices = @transform_0, window_bounds = array<i64: 1, 16, 16, 128>}, {pipeline_mode = #tpu.pipeline_mode<synchronous>, transform_indices = @transform_1, window_bounds = array<i64: 128, 128>}, {pipeline_mode = #tpu.pipeline_mode<synchronous>, transform_indices = @transform_2, window_bounds = array<i64: 1, 128>}, {pipeline_mode = #tpu.pipeline_mode<synchronous>, transform_indices = @transform_3, window_bounds = array<i64: 1, 128>}, {pipeline_mode = #tpu.pipeline_mode<synchronous>, transform_indices = @transform_4, window_bounds = array<i64: 9, 128>}, {pipeline_mode = #tpu.pipeline_mode<synchronous>, transform_indices = @transform_5, window_bounds = array<i64: 1, 128>}, {pipeline_mode = #tpu.pipeline_mode<synchronous>, transform_indices = @transform_6, window_bounds = array<i64: 1, 128>}, {transform_indices = @transform_7, window_bounds = array<i64: 1, 16, 16, 128>}, {transform_indices = @transform_8, window_bounds = array<i64: 1, 1, 128>}]} {
    %cst = arith.constant 0.000000e+00 : bf16
    %0 = vector.broadcast %cst : bf16 to vector<1x18x128xbf16>
    %c0 = arith.constant 0 : index
    %c0_0 = arith.constant 0 : index
    %c0_1 = arith.constant 0 : index
    %1 = vector.load %arg10[%c0, %c0_0, %c0_1] : memref<18x18x128xbf16, #tpu.memory_space<vmem>>, vector<1x18x128xbf16>
    tpu.vector_store %arg10[%c0, %c0_0, %c0_1], %0 {strides = array<i32>} : memref<18x18x128xbf16, #tpu.memory_space<vmem>>, vector<1x18x128xbf16>,
    %cst_2 = arith.constant 0.000000e+00 : bf16
    %2 = vector.broadcast %cst_2 : bf16 to vector<1x18x128xbf16>
    %c17 = arith.constant 17 : index
    %c0_3 = arith.constant 0 : index
    %c0_4 = arith.constant 0 : index
    %3 = vector.load %arg10[%c17, %c0_3, %c0_4] : memref<18x18x128xbf16, #tpu.memory_space<vmem>>, vector<1x18x128xbf16>
    tpu.vector_store %arg10[%c17, %c0_3, %c0_4], %2 {strides = array<i32>} : memref<18x18x128xbf16, #tpu.memory_space<vmem>>, vector<1x18x128xbf16>,
    %c0_5 = arith.constant 0 : index
    %c0_6 = arith.constant 0 : index
    %c0_7 = arith.constant 0 : index
    %c0_8 = arith.constant 0 : index
    %4 = vector.load %arg1[%c0_5, %c0_6, %c0_7, %c0_8] : memref<1x16x16x128xbf16, #tpu.memory_space<vmem>>, vector<1x8x16x128xbf16>
    %5 = vector.shape_cast %4 : vector<1x8x16x128xbf16> to vector<8x16x128xbf16>
    %6 = vector.shape_cast %5 : vector<8x16x128xbf16> to vector<128x128xbf16>
    %c0_9 = arith.constant 0 : index
    %c0_10 = arith.constant 0 : index
    %7 = vector.load %arg2[%c0_9, %c0_10] : memref<128x128xbf16, #tpu.memory_space<vmem>>, vector<128x128xbf16>
    %cst_11 = arith.constant dense<0.000000e+00> : vector<128x128xf32>
    %8 = tpu.matmul %6, %7, %cst_11 {dimension_numbers = #tpu.dot_dimension_numbers<[1], [0], [0], [1], [0, 0, 1, 1], [], []>} : vector<128x128xbf16>, vector<128x128xbf16>, vector<128x128xf32> -> vector<128x128xf32>
    %c0_12 = arith.constant 0 : index
    %c0_13 = arith.constant 0 : index
    %9 = vector.load %arg3[%c0_12, %c0_13] : memref<1x128xf32, #tpu.memory_space<vmem>>, vector<1x128xf32>
    %10 = vector.broadcast %9 : vector<1x128xf32> to vector<128x128xf32>
    %11 = arith.mulf %8, %10 : vector<128x128xf32>
    %c0_14 = arith.constant 0 : index
    %c0_15 = arith.constant 0 : index
    %12 = vector.load %arg4[%c0_14, %c0_15] : memref<1x128xf32, #tpu.memory_space<vmem>>, vector<1x128xf32>
    %13 = vector.broadcast %12 : vector<1x128xf32> to vector<128x128xf32>
    %14 = arith.addf %11, %13 : vector<128x128xf32>
    %15 = arith.negf %14 : vector<128x128xf32>
    %16 = math.exp %15 : vector<128x128xf32>
    %cst_16 = arith.constant 1.000000e+00 : f32
    %17 = vector.broadcast %cst_16 : f32 to vector<128x128xf32>
    %18 = arith.addf %17, %16 : vector<128x128xf32>
    %19 = arith.divf %17, %18 : vector<128x128xf32>
    %20 = arith.mulf %14, %19 : vector<128x128xf32>
    %21 = arith.truncf %20 : vector<128x128xf32> to vector<128x128xbf16>
    %22 = vector.shape_cast %21 : vector<128x128xbf16> to vector<8x16x128xbf16>
    %cst_17 = arith.constant 0.000000e+00 : bf16
    %23 = vector.broadcast %cst_17 : bf16 to vector<8x1x128xbf16>
    %cst_18 = arith.constant 0.000000e+00 : bf16
    %24 = vector.broadcast %cst_18 : bf16 to vector<8x1x128xbf16>
    %25 = tpu.concatenate %23, %22, %24 in 1 : vector<8x1x128xbf16>, vector<8x16x128xbf16>, vector<8x1x128xbf16> -> vector<8x18x128xbf16>
    %c1 = arith.constant 1 : index
    %c0_19 = arith.constant 0 : index
    %c0_20 = arith.constant 0 : index
    %26 = vector.load %arg10[%c1, %c0_19, %c0_20] : memref<18x18x128xbf16, #tpu.memory_space<vmem>>, vector<8x18x128xbf16>
    tpu.vector_store %arg10[%c1, %c0_19, %c0_20], %25 {strides = array<i32>} : memref<18x18x128xbf16, #tpu.memory_space<vmem>>, vector<8x18x128xbf16>,
    %c0_21 = arith.constant 0 : index
    %c8 = arith.constant 8 : index
    %c0_22 = arith.constant 0 : index
    %c0_23 = arith.constant 0 : index
    %27 = vector.load %arg1[%c0_21, %c8, %c0_22, %c0_23] : memref<1x16x16x128xbf16, #tpu.memory_space<vmem>>, vector<1x8x16x128xbf16>
    %28 = vector.shape_cast %27 : vector<1x8x16x128xbf16> to vector<8x16x128xbf16>
    %29 = vector.shape_cast %28 : vector<8x16x128xbf16> to vector<128x128xbf16>
    %c0_24 = arith.constant 0 : index
    %c0_25 = arith.constant 0 : index
    %30 = vector.load %arg2[%c0_24, %c0_25] : memref<128x128xbf16, #tpu.memory_space<vmem>>, vector<128x128xbf16>
    %cst_26 = arith.constant dense<0.000000e+00> : vector<128x128xf32>
    %31 = tpu.matmul %29, %30, %cst_26 {dimension_numbers = #tpu.dot_dimension_numbers<[1], [0], [0], [1], [0, 0, 1, 1], [], []>} : vector<128x128xbf16>, vector<128x128xbf16>, vector<128x128xf32> -> vector<128x128xf32>
    %c0_27 = arith.constant 0 : index
    %c0_28 = arith.constant 0 : index
    %32 = vector.load %arg3[%c0_27, %c0_28] : memref<1x128xf32, #tpu.memory_space<vmem>>, vector<1x128xf32>
    %33 = vector.broadcast %32 : vector<1x128xf32> to vector<128x128xf32>
    %34 = arith.mulf %31, %33 : vector<128x128xf32>
    %c0_29 = arith.constant 0 : index
    %c0_30 = arith.constant 0 : index
    %35 = vector.load %arg4[%c0_29, %c0_30] : memref<1x128xf32, #tpu.memory_space<vmem>>, vector<1x128xf32>
    %36 = vector.broadcast %35 : vector<1x128xf32> to vector<128x128xf32>
    %37 = arith.addf %34, %36 : vector<128x128xf32>
    %38 = arith.negf %37 : vector<128x128xf32>
    %39 = math.exp %38 : vector<128x128xf32>
    %cst_31 = arith.constant 1.000000e+00 : f32
    %40 = vector.broadcast %cst_31 : f32 to vector<128x128xf32>
    %41 = arith.addf %40, %39 : vector<128x128xf32>
    %42 = arith.divf %40, %41 : vector<128x128xf32>
    %43 = arith.mulf %37, %42 : vector<128x128xf32>
    %44 = arith.truncf %43 : vector<128x128xf32> to vector<128x128xbf16>
    %45 = vector.shape_cast %44 : vector<128x128xbf16> to vector<8x16x128xbf16>
    %cst_32 = arith.constant 0.000000e+00 : bf16
    %46 = vector.broadcast %cst_32 : bf16 to vector<8x1x128xbf16>
    %cst_33 = arith.constant 0.000000e+00 : bf16
    %47 = vector.broadcast %cst_33 : bf16 to vector<8x1x128xbf16>
    %48 = tpu.concatenate %46, %45, %47 in 1 : vector<8x1x128xbf16>, vector<8x16x128xbf16>, vector<8x1x128xbf16> -> vector<8x18x128xbf16>
    %c9 = arith.constant 9 : index
    %c0_34 = arith.constant 0 : index
    %c0_35 = arith.constant 0 : index
    %49 = vector.load %arg10[%c9, %c0_34, %c0_35] : memref<18x18x128xbf16, #tpu.memory_space<vmem>>, vector<8x18x128xbf16>
    tpu.vector_store %arg10[%c9, %c0_34, %c0_35], %48 {strides = array<i32>} : memref<18x18x128xbf16, #tpu.memory_space<vmem>>, vector<8x18x128xbf16>,
    %c0_36 = arith.constant 0 : index
    %c0_37 = arith.constant 0 : index
    %50 = vector.load %arg5[%c0_36, %c0_37] : memref<9x128xf32, #tpu.memory_space<vmem>>, vector<9x128xf32>
    %c0_38 = arith.constant 0 : index
    %c0_39 = arith.constant 0 : index
    %51 = vector.load %arg6[%c0_38, %c0_39] : memref<1x128xf32, #tpu.memory_space<vmem>>, vector<1x128xf32>
    %52 = vector.shape_cast %51 : vector<1x128xf32> to vector<128xf32>
    %c0_40 = arith.constant 0 : index
    %c0_41 = arith.constant 0 : index
    %53 = vector.load %arg7[%c0_40, %c0_41] : memref<1x128xf32, #tpu.memory_space<vmem>>, vector<1x128xf32>
    %54 = vector.shape_cast %53 : vector<1x128xf32> to vector<128xf32>
    %cst_42 = arith.constant 0.000000e+00 : f32
    %55 = vector.broadcast %cst_42 : f32 to vector<128xf32>
    %c0_43 = arith.constant 0 : index
    %c0_44 = arith.constant 0 : index
    %c0_45 = arith.constant 0 : index
    %56 = vector.load %arg10[%c0_43, %c0_44, %c0_45] : memref<18x18x128xbf16, #tpu.memory_space<vmem>>, vector<8x16x128xbf16>
    %57 = vector.extract_strided_slice %50 {offsets = [0, 0], sizes = [1, 128], strides = [1, 1]} : vector<9x128xf32> to vector<1x128xf32>
    %58 = vector.shape_cast %57 : vector<1x128xf32> to vector<128xf32>
    %59 = arith.extf %56 : vector<8x16x128xbf16> to vector<8x16x128xf32>
    %60 = vector.shape_cast %58 : vector<128xf32> to vector<1x1x128xf32>
    %61 = vector.broadcast %60 : vector<1x1x128xf32> to vector<8x16x128xf32>
    %62 = arith.mulf %59, %61 : vector<8x16x128xf32>
    %c0_46 = arith.constant 0 : index
    %c1_47 = arith.constant 1 : index
    %c0_48 = arith.constant 0 : index
    %63 = vector.load %arg10[%c0_46, %c1_47, %c0_48] : memref<18x18x128xbf16, #tpu.memory_space<vmem>>, vector<8x16x128xbf16>
    %64 = vector.extract_strided_slice %50 {offsets = [1, 0], sizes = [1, 128], strides = [1, 1]} : vector<9x128xf32> to vector<1x128xf32>
    %65 = vector.shape_cast %64 : vector<1x128xf32> to vector<128xf32>
    %66 = arith.extf %63 : vector<8x16x128xbf16> to vector<8x16x128xf32>
    %67 = vector.shape_cast %65 : vector<128xf32> to vector<1x1x128xf32>
    %68 = vector.broadcast %67 : vector<1x1x128xf32> to vector<8x16x128xf32>
    %69 = arith.mulf %66, %68 : vector<8x16x128xf32>
    %70 = arith.addf %62, %69 : vector<8x16x128xf32>
    %c0_49 = arith.constant 0 : index
    %c2 = arith.constant 2 : index
    %c0_50 = arith.constant 0 : index
    %71 = vector.load %arg10[%c0_49, %c2, %c0_50] : memref<18x18x128xbf16, #tpu.memory_space<vmem>>, vector<8x16x128xbf16>
    %72 = vector.extract_strided_slice %50 {offsets = [2, 0], sizes = [1, 128], strides = [1, 1]} : vector<9x128xf32> to vector<1x128xf32>
    %73 = vector.shape_cast %72 : vector<1x128xf32> to vector<128xf32>
    %74 = arith.extf %71 : vector<8x16x128xbf16> to vector<8x16x128xf32>
    %75 = vector.shape_cast %73 : vector<128xf32> to vector<1x1x128xf32>
    %76 = vector.broadcast %75 : vector<1x1x128xf32> to vector<8x16x128xf32>
    %77 = arith.mulf %74, %76 : vector<8x16x128xf32>
    %78 = arith.addf %70, %77 : vector<8x16x128xf32>
    %c1_51 = arith.constant 1 : index
    %c0_52 = arith.constant 0 : index
    %c0_53 = arith.constant 0 : index
    %79 = vector.load %arg10[%c1_51, %c0_52, %c0_53] : memref<18x18x128xbf16, #tpu.memory_space<vmem>>, vector<8x16x128xbf16>
    %80 = vector.extract_strided_slice %50 {offsets = [3, 0], sizes = [1, 128], strides = [1, 1]} : vector<9x128xf32> to vector<1x128xf32>
    %81 = vector.shape_cast %80 : vector<1x128xf32> to vector<128xf32>
    %82 = arith.extf %79 : vector<8x16x128xbf16> to vector<8x16x128xf32>
    %83 = vector.shape_cast %81 : vector<128xf32> to vector<1x1x128xf32>
    %84 = vector.broadcast %83 : vector<1x1x128xf32> to vector<8x16x128xf32>
    %85 = arith.mulf %82, %84 : vector<8x16x128xf32>
    %86 = arith.addf %78, %85 : vector<8x16x128xf32>
    %c1_54 = arith.constant 1 : index
    %c1_55 = arith.constant 1 : index
    %c0_56 = arith.constant 0 : index
    %87 = vector.load %arg10[%c1_54, %c1_55, %c0_56] : memref<18x18x128xbf16, #tpu.memory_space<vmem>>, vector<8x16x128xbf16>
    %88 = vector.extract_strided_slice %50 {offsets = [4, 0], sizes = [1, 128], strides = [1, 1]} : vector<9x128xf32> to vector<1x128xf32>
    %89 = vector.shape_cast %88 : vector<1x128xf32> to vector<128xf32>
    %90 = arith.extf %87 : vector<8x16x128xbf16> to vector<8x16x128xf32>
    %91 = vector.shape_cast %89 : vector<128xf32> to vector<1x1x128xf32>
    %92 = vector.broadcast %91 : vector<1x1x128xf32> to vector<8x16x128xf32>
    %93 = arith.mulf %90, %92 : vector<8x16x128xf32>
    %94 = arith.addf %86, %93 : vector<8x16x128xf32>
    %c1_57 = arith.constant 1 : index
    %c2_58 = arith.constant 2 : index
    %c0_59 = arith.constant 0 : index
    %95 = vector.load %arg10[%c1_57, %c2_58, %c0_59] : memref<18x18x128xbf16, #tpu.memory_space<vmem>>, vector<8x16x128xbf16>
    %96 = vector.extract_strided_slice %50 {offsets = [5, 0], sizes = [1, 128], strides = [1, 1]} : vector<9x128xf32> to vector<1x128xf32>
    %97 = vector.shape_cast %96 : vector<1x128xf32> to vector<128xf32>
    %98 = arith.extf %95 : vector<8x16x128xbf16> to vector<8x16x128xf32>
    %99 = vector.shape_cast %97 : vector<128xf32> to vector<1x1x128xf32>
    %100 = vector.broadcast %99 : vector<1x1x128xf32> to vector<8x16x128xf32>
    %101 = arith.mulf %98, %100 : vector<8x16x128xf32>
    %102 = arith.addf %94, %101 : vector<8x16x128xf32>
    %c2_60 = arith.constant 2 : index
    %c0_61 = arith.constant 0 : index
    %c0_62 = arith.constant 0 : index
    %103 = vector.load %arg10[%c2_60, %c0_61, %c0_62] : memref<18x18x128xbf16, #tpu.memory_space<vmem>>, vector<8x16x128xbf16>
    %104 = vector.extract_strided_slice %50 {offsets = [6, 0], sizes = [1, 128], strides = [1, 1]} : vector<9x128xf32> to vector<1x128xf32>
    %105 = vector.shape_cast %104 : vector<1x128xf32> to vector<128xf32>
    %106 = arith.extf %103 : vector<8x16x128xbf16> to vector<8x16x128xf32>
    %107 = vector.shape_cast %105 : vector<128xf32> to vector<1x1x128xf32>
    %108 = vector.broadcast %107 : vector<1x1x128xf32> to vector<8x16x128xf32>
    %109 = arith.mulf %106, %108 : vector<8x16x128xf32>
    %110 = arith.addf %102, %109 : vector<8x16x128xf32>
    %c2_63 = arith.constant 2 : index
    %c1_64 = arith.constant 1 : index
    %c0_65 = arith.constant 0 : index
    %111 = vector.load %arg10[%c2_63, %c1_64, %c0_65] : memref<18x18x128xbf16, #tpu.memory_space<vmem>>, vector<8x16x128xbf16>
    %112 = vector.extract_strided_slice %50 {offsets = [7, 0], sizes = [1, 128], strides = [1, 1]} : vector<9x128xf32> to vector<1x128xf32>
    %113 = vector.shape_cast %112 : vector<1x128xf32> to vector<128xf32>
    %114 = arith.extf %111 : vector<8x16x128xbf16> to vector<8x16x128xf32>
    %115 = vector.shape_cast %113 : vector<128xf32> to vector<1x1x128xf32>
    %116 = vector.broadcast %115 : vector<1x1x128xf32> to vector<8x16x128xf32>
    %117 = arith.mulf %114, %116 : vector<8x16x128xf32>
    %118 = arith.addf %110, %117 : vector<8x16x128xf32>
    %c2_66 = arith.constant 2 : index
    %c2_67 = arith.constant 2 : index
    %c0_68 = arith.constant 0 : index
    %119 = vector.load %arg10[%c2_66, %c2_67, %c0_68] : memref<18x18x128xbf16, #tpu.memory_space<vmem>>, vector<8x16x128xbf16>
    %120 = vector.extract_strided_slice %50 {offsets = [8, 0], sizes = [1, 128], strides = [1, 1]} : vector<9x128xf32> to vector<1x128xf32>
    %121 = vector.shape_cast %120 : vector<1x128xf32> to vector<128xf32>
    %122 = arith.extf %119 : vector<8x16x128xbf16> to vector<8x16x128xf32>
    %123 = vector.shape_cast %121 : vector<128xf32> to vector<1x1x128xf32>
    %124 = vector.broadcast %123 : vector<1x1x128xf32> to vector<8x16x128xf32>
    %125 = arith.mulf %122, %124 : vector<8x16x128xf32>
    %126 = arith.addf %118, %125 : vector<8x16x128xf32>
    %127 = vector.shape_cast %52 : vector<128xf32> to vector<1x1x128xf32>
    %128 = vector.broadcast %127 : vector<1x1x128xf32> to vector<8x16x128xf32>
    %129 = arith.mulf %126, %128 : vector<8x16x128xf32>
    %130 = vector.shape_cast %54 : vector<128xf32> to vector<1x1x128xf32>
    %131 = vector.broadcast %130 : vector<1x1x128xf32> to vector<8x16x128xf32>
    %132 = arith.addf %129, %131 : vector<8x16x128xf32>
    %133 = arith.negf %132 : vector<8x16x128xf32>
    %134 = math.exp %133 : vector<8x16x128xf32>
    %cst_69 = arith.constant 1.000000e+00 : f32
    %135 = vector.broadcast %cst_69 : f32 to vector<8x16x128xf32>
    %136 = arith.addf %135, %134 : vector<8x16x128xf32>
    %137 = arith.divf %135, %136 : vector<8x16x128xf32>
    %138 = arith.mulf %132, %137 : vector<8x16x128xf32>
    %139 = arith.truncf %138 : vector<8x16x128xf32> to vector<8x16x128xbf16>
    %c0_70 = arith.constant 0 : index
    %c0_71 = arith.constant 0 : index
    %c0_72 = arith.constant 0 : index
    %c0_73 = arith.constant 0 : index
    %140 = vector.load %arg8[%c0_70, %c0_71, %c0_72, %c0_73] : memref<1x16x16x128xbf16, #tpu.memory_space<vmem>>, vector<1x8x16x128xbf16>
    %141 = vector.shape_cast %140 : vector<1x8x16x128xbf16> to vector<8x16x128xbf16>
    %142 = vector.shape_cast %139 : vector<8x16x128xbf16> to vector<1x8x16x128xbf16>
    tpu.vector_store %arg8[%c0_70, %c0_71, %c0_72, %c0_73], %142 {strides = array<i32>} : memref<1x16x16x128xbf16, #tpu.memory_space<vmem>>, vector<1x8x16x128xbf16>,
    %cst_74 = arith.constant dense<0.000000e+00> : vector<128xf32>
    %143 = vector.multi_reduction <add>, %138, %cst_74 [0, 1] : vector<8x16x128xf32> to vector<128xf32>
    %144 = arith.addf %55, %143 : vector<128xf32>
    %c8_75 = arith.constant 8 : index
    %c0_76 = arith.constant 0 : index
    %c0_77 = arith.constant 0 : index
    %145 = vector.load %arg10[%c8_75, %c0_76, %c0_77] : memref<18x18x128xbf16, #tpu.memory_space<vmem>>, vector<8x16x128xbf16>
    %146 = vector.extract_strided_slice %50 {offsets = [0, 0], sizes = [1, 128], strides = [1, 1]} : vector<9x128xf32> to vector<1x128xf32>
    %147 = vector.shape_cast %146 : vector<1x128xf32> to vector<128xf32>
    %148 = arith.extf %145 : vector<8x16x128xbf16> to vector<8x16x128xf32>
    %149 = vector.shape_cast %147 : vector<128xf32> to vector<1x1x128xf32>
    %150 = vector.broadcast %149 : vector<1x1x128xf32> to vector<8x16x128xf32>
    %151 = arith.mulf %148, %150 : vector<8x16x128xf32>
    %c8_78 = arith.constant 8 : index
    %c1_79 = arith.constant 1 : index
    %c0_80 = arith.constant 0 : index
    %152 = vector.load %arg10[%c8_78, %c1_79, %c0_80] : memref<18x18x128xbf16, #tpu.memory_space<vmem>>, vector<8x16x128xbf16>
    %153 = vector.extract_strided_slice %50 {offsets = [1, 0], sizes = [1, 128], strides = [1, 1]} : vector<9x128xf32> to vector<1x128xf32>
    %154 = vector.shape_cast %153 : vector<1x128xf32> to vector<128xf32>
    %155 = arith.extf %152 : vector<8x16x128xbf16> to vector<8x16x128xf32>
    %156 = vector.shape_cast %154 : vector<128xf32> to vector<1x1x128xf32>
    %157 = vector.broadcast %156 : vector<1x1x128xf32> to vector<8x16x128xf32>
    %158 = arith.mulf %155, %157 : vector<8x16x128xf32>
    %159 = arith.addf %151, %158 : vector<8x16x128xf32>
    %c8_81 = arith.constant 8 : index
    %c2_82 = arith.constant 2 : index
    %c0_83 = arith.constant 0 : index
    %160 = vector.load %arg10[%c8_81, %c2_82, %c0_83] : memref<18x18x128xbf16, #tpu.memory_space<vmem>>, vector<8x16x128xbf16>
    %161 = vector.extract_strided_slice %50 {offsets = [2, 0], sizes = [1, 128], strides = [1, 1]} : vector<9x128xf32> to vector<1x128xf32>
    %162 = vector.shape_cast %161 : vector<1x128xf32> to vector<128xf32>
    %163 = arith.extf %160 : vector<8x16x128xbf16> to vector<8x16x128xf32>
    %164 = vector.shape_cast %162 : vector<128xf32> to vector<1x1x128xf32>
    %165 = vector.broadcast %164 : vector<1x1x128xf32> to vector<8x16x128xf32>
    %166 = arith.mulf %163, %165 : vector<8x16x128xf32>
    %167 = arith.addf %159, %166 : vector<8x16x128xf32>
    %c9_84 = arith.constant 9 : index
    %c0_85 = arith.constant 0 : index
    %c0_86 = arith.constant 0 : index
    %168 = vector.load %arg10[%c9_84, %c0_85, %c0_86] : memref<18x18x128xbf16, #tpu.memory_space<vmem>>, vector<8x16x128xbf16>
    %169 = vector.extract_strided_slice %50 {offsets = [3, 0], sizes = [1, 128], strides = [1, 1]} : vector<9x128xf32> to vector<1x128xf32>
    %170 = vector.shape_cast %169 : vector<1x128xf32> to vector<128xf32>
    %171 = arith.extf %168 : vector<8x16x128xbf16> to vector<8x16x128xf32>
    %172 = vector.shape_cast %170 : vector<128xf32> to vector<1x1x128xf32>
    %173 = vector.broadcast %172 : vector<1x1x128xf32> to vector<8x16x128xf32>
    %174 = arith.mulf %171, %173 : vector<8x16x128xf32>
    %175 = arith.addf %167, %174 : vector<8x16x128xf32>
    %c9_87 = arith.constant 9 : index
    %c1_88 = arith.constant 1 : index
    %c0_89 = arith.constant 0 : index
    %176 = vector.load %arg10[%c9_87, %c1_88, %c0_89] : memref<18x18x128xbf16, #tpu.memory_space<vmem>>, vector<8x16x128xbf16>
    %177 = vector.extract_strided_slice %50 {offsets = [4, 0], sizes = [1, 128], strides = [1, 1]} : vector<9x128xf32> to vector<1x128xf32>
    %178 = vector.shape_cast %177 : vector<1x128xf32> to vector<128xf32>
    %179 = arith.extf %176 : vector<8x16x128xbf16> to vector<8x16x128xf32>
    %180 = vector.shape_cast %178 : vector<128xf32> to vector<1x1x128xf32>
    %181 = vector.broadcast %180 : vector<1x1x128xf32> to vector<8x16x128xf32>
    %182 = arith.mulf %179, %181 : vector<8x16x128xf32>
    %183 = arith.addf %175, %182 : vector<8x16x128xf32>
    %c9_90 = arith.constant 9 : index
    %c2_91 = arith.constant 2 : index
    %c0_92 = arith.constant 0 : index
    %184 = vector.load %arg10[%c9_90, %c2_91, %c0_92] : memref<18x18x128xbf16, #tpu.memory_space<vmem>>, vector<8x16x128xbf16>
    %185 = vector.extract_strided_slice %50 {offsets = [5, 0], sizes = [1, 128], strides = [1, 1]} : vector<9x128xf32> to vector<1x128xf32>
    %186 = vector.shape_cast %185 : vector<1x128xf32> to vector<128xf32>
    %187 = arith.extf %184 : vector<8x16x128xbf16> to vector<8x16x128xf32>
    %188 = vector.shape_cast %186 : vector<128xf32> to vector<1x1x128xf32>
    %189 = vector.broadcast %188 : vector<1x1x128xf32> to vector<8x16x128xf32>
    %190 = arith.mulf %187, %189 : vector<8x16x128xf32>
    %191 = arith.addf %183, %190 : vector<8x16x128xf32>
    %c10 = arith.constant 10 : index
    %c0_93 = arith.constant 0 : index
    %c0_94 = arith.constant 0 : index
    %192 = vector.load %arg10[%c10, %c0_93, %c0_94] : memref<18x18x128xbf16, #tpu.memory_space<vmem>>, vector<8x16x128xbf16>
    %193 = vector.extract_strided_slice %50 {offsets = [6, 0], sizes = [1, 128], strides = [1, 1]} : vector<9x128xf32> to vector<1x128xf32>
    %194 = vector.shape_cast %193 : vector<1x128xf32> to vector<128xf32>
    %195 = arith.extf %192 : vector<8x16x128xbf16> to vector<8x16x128xf32>
    %196 = vector.shape_cast %194 : vector<128xf32> to vector<1x1x128xf32>
    %197 = vector.broadcast %196 : vector<1x1x128xf32> to vector<8x16x128xf32>
    %198 = arith.mulf %195, %197 : vector<8x16x128xf32>
    %199 = arith.addf %191, %198 : vector<8x16x128xf32>
    %c10_95 = arith.constant 10 : index
    %c1_96 = arith.constant 1 : index
    %c0_97 = arith.constant 0 : index
    %200 = vector.load %arg10[%c10_95, %c1_96, %c0_97] : memref<18x18x128xbf16, #tpu.memory_space<vmem>>, vector<8x16x128xbf16>
    %201 = vector.extract_strided_slice %50 {offsets = [7, 0], sizes = [1, 128], strides = [1, 1]} : vector<9x128xf32> to vector<1x128xf32>
    %202 = vector.shape_cast %201 : vector<1x128xf32> to vector<128xf32>
    %203 = arith.extf %200 : vector<8x16x128xbf16> to vector<8x16x128xf32>
    %204 = vector.shape_cast %202 : vector<128xf32> to vector<1x1x128xf32>
    %205 = vector.broadcast %204 : vector<1x1x128xf32> to vector<8x16x128xf32>
    %206 = arith.mulf %203, %205 : vector<8x16x128xf32>
    %207 = arith.addf %199, %206 : vector<8x16x128xf32>
    %c10_98 = arith.constant 10 : index
    %c2_99 = arith.constant 2 : index
    %c0_100 = arith.constant 0 : index
    %208 = vector.load %arg10[%c10_98, %c2_99, %c0_100] : memref<18x18x128xbf16, #tpu.memory_space<vmem>>, vector<8x16x128xbf16>
    %209 = vector.extract_strided_slice %50 {offsets = [8, 0], sizes = [1, 128], strides = [1, 1]} : vector<9x128xf32> to vector<1x128xf32>
    %210 = vector.shape_cast %209 : vector<1x128xf32> to vector<128xf32>
    %211 = arith.extf %208 : vector<8x16x128xbf16> to vector<8x16x128xf32>
    %212 = vector.shape_cast %210 : vector<128xf32> to vector<1x1x128xf32>
    %213 = vector.broadcast %212 : vector<1x1x128xf32> to vector<8x16x128xf32>
    %214 = arith.mulf %211, %213 : vector<8x16x128xf32>
    %215 = arith.addf %207, %214 : vector<8x16x128xf32>
    %216 = vector.shape_cast %52 : vector<128xf32> to vector<1x1x128xf32>
    %217 = vector.broadcast %216 : vector<1x1x128xf32> to vector<8x16x128xf32>
    %218 = arith.mulf %215, %217 : vector<8x16x128xf32>
    %219 = vector.shape_cast %54 : vector<128xf32> to vector<1x1x128xf32>
    %220 = vector.broadcast %219 : vector<1x1x128xf32> to vector<8x16x128xf32>
    %221 = arith.addf %218, %220 : vector<8x16x128xf32>
    %222 = arith.negf %221 : vector<8x16x128xf32>
    %223 = math.exp %222 : vector<8x16x128xf32>
    %cst_101 = arith.constant 1.000000e+00 : f32
    %224 = vector.broadcast %cst_101 : f32 to vector<8x16x128xf32>
    %225 = arith.addf %224, %223 : vector<8x16x128xf32>
    %226 = arith.divf %224, %225 : vector<8x16x128xf32>
    %227 = arith.mulf %221, %226 : vector<8x16x128xf32>
    %228 = arith.truncf %227 : vector<8x16x128xf32> to vector<8x16x128xbf16>
    %c0_102 = arith.constant 0 : index
    %c8_103 = arith.constant 8 : index
    %c0_104 = arith.constant 0 : index
    %c0_105 = arith.constant 0 : index
    %229 = vector.load %arg8[%c0_102, %c8_103, %c0_104, %c0_105] : memref<1x16x16x128xbf16, #tpu.memory_space<vmem>>, vector<1x8x16x128xbf16>
    %230 = vector.shape_cast %229 : vector<1x8x16x128xbf16> to vector<8x16x128xbf16>
    %231 = vector.shape_cast %228 : vector<8x16x128xbf16> to vector<1x8x16x128xbf16>
    tpu.vector_store %arg8[%c0_102, %c8_103, %c0_104, %c0_105], %231 {strides = array<i32>} : memref<1x16x16x128xbf16, #tpu.memory_space<vmem>>, vector<1x8x16x128xbf16>,
    %cst_106 = arith.constant dense<0.000000e+00> : vector<128xf32>
    %232 = vector.multi_reduction <add>, %227, %cst_106 [0, 1] : vector<8x16x128xf32> to vector<128xf32>
    %233 = arith.addf %144, %232 : vector<128xf32>
    %cst_107 = arith.constant 3.906250e-03 : f32
    %234 = vector.broadcast %cst_107 : f32 to vector<128xf32>
    %235 = arith.mulf %233, %234 : vector<128xf32>
    %236 = vector.shape_cast %235 : vector<128xf32> to vector<1x1x128xf32>
    %c0_108 = arith.constant 0 : index
    %c0_109 = arith.constant 0 : index
    %c0_110 = arith.constant 0 : index
    %237 = vector.load %arg9[%c0_108, %c0_109, %c0_110] : memref<1x1x128xf32, #tpu.memory_space<vmem>>, vector<1x1x128xf32>
    tpu.vector_store %arg9[%c0_108, %c0_109, %c0_110], %236 {strides = array<i32>} : memref<1x1x128xf32, #tpu.memory_space<vmem>>, vector<1x1x128xf32>,
    return
  }
  func.func @transform_0(%arg0: i32) -> (i32, i32, i32, i32) {
    %c0_i32 = arith.constant 0 : i32
    %c0_i32_0 = arith.constant 0 : i32
    %c0_i32_1 = arith.constant 0 : i32
    %c0_i32_2 = arith.constant 0 : i32
    return %arg0, %c0_i32, %c0_i32_0, %c0_i32_1 : i32, i32, i32, i32
  }
  func.func @transform_1(%arg0: i32) -> (i32, i32) {
    %c0_i32 = arith.constant 0 : i32
    %c0_i32_0 = arith.constant 0 : i32
    %c0_i32_1 = arith.constant 0 : i32
    return %c0_i32, %c0_i32_0 : i32, i32
  }
  func.func @transform_2(%arg0: i32) -> (i32, i32) {
    %c0_i32 = arith.constant 0 : i32
    %c0_i32_0 = arith.constant 0 : i32
    %c0_i32_1 = arith.constant 0 : i32
    return %c0_i32, %c0_i32_0 : i32, i32
  }
  func.func @transform_3(%arg0: i32) -> (i32, i32) {
    %c0_i32 = arith.constant 0 : i32
    %c0_i32_0 = arith.constant 0 : i32
    %c0_i32_1 = arith.constant 0 : i32
    return %c0_i32, %c0_i32_0 : i32, i32
  }
  func.func @transform_4(%arg0: i32) -> (i32, i32) {
    %c0_i32 = arith.constant 0 : i32
    %c0_i32_0 = arith.constant 0 : i32
    %c0_i32_1 = arith.constant 0 : i32
    return %c0_i32, %c0_i32_0 : i32, i32
  }
  func.func @transform_5(%arg0: i32) -> (i32, i32) {
    %c0_i32 = arith.constant 0 : i32
    %c0_i32_0 = arith.constant 0 : i32
    %c0_i32_1 = arith.constant 0 : i32
    return %c0_i32, %c0_i32_0 : i32, i32
  }
  func.func @transform_6(%arg0: i32) -> (i32, i32) {
    %c0_i32 = arith.constant 0 : i32
    %c0_i32_0 = arith.constant 0 : i32
    %c0_i32_1 = arith.constant 0 : i32
    return %c0_i32, %c0_i32_0 : i32, i32
  }
  func.func @transform_7(%arg0: i32) -> (i32, i32, i32, i32) {
    %c0_i32 = arith.constant 0 : i32
    %c0_i32_0 = arith.constant 0 : i32
    %c0_i32_1 = arith.constant 0 : i32
    %c0_i32_2 = arith.constant 0 : i32
    return %arg0, %c0_i32, %c0_i32_0, %c0_i32_1 : i32, i32, i32, i32
  }
  func.func @transform_8(%arg0: i32) -> (i32, i32, i32) {
    %c0_i32 = arith.constant 0 : i32
    %c0_i32_0 = arith.constant 0 : i32
    %c0_i32_1 = arith.constant 0 : i32
    return %arg0, %c0_i32, %c0_i32_0 : i32, i32, i32
  }
}

</mosaic_0001>

<bundles_post_ra>
// kernel: tpu_custom_call.1
= control target key start
LH: loop header
LB: loop body
LE: loop exit
PB: predicated region body
PF: predicated region fallthrough
CT: control target
= control target key end

     0   :  { %s8194_s0 = inlined_call_operand.hbm [shape: bf16[2,16,16,128], index: 0, kind: input, shape index: {}]   ;;  %s8195_s1 = inlined_call_operand.hbm [shape: bf16[128,128], index: 1, kind: input, shape index: {}]   ;;  %s8196_s2 = inlined_call_operand.vmem [shape: f32[1,128], index: 2, kind: input, shape index: {}]   ;;  %s8197_s3 = inlined_call_operand.vmem [shape: f32[1,128], index: 3, kind: input, shape index: {}]   ;;  %s8198_s4 = inlined_call_operand.hbm [shape: f32[9,128], index: 4, kind: input, shape index: {}]   ;;  %s8199_s5 = inlined_call_operand.vmem [shape: f32[1,128], index: 5, kind: input, shape index: {}]   ;;  %s8200_s6 = inlined_call_operand.vmem [shape: f32[1,128], index: 6, kind: input, shape index: {}]   ;;  %s8201_s7 = inlined_call_operand.hbm [shape: bf16[2,16,16,128], index: 7, kind: output, shape index: {0}]   ;;  %s8202_s8 = inlined_call_operand.hbm [shape: f32[2,1,128], index: 8, kind: output, shape index: {1}]  }
   0x1   :  { %8313 = sst [smem:[#allocation82_spill]] %s8195_s1 }
   0x2   :  { %8314 = sst [smem:[#allocation83_spill]] %s8198_s4 }
   0x3   :  { %14 = vsyncpa [#allocation4], 0 }
   0x4   :  { %16 = vsyncpa [#allocation4 + $0x1], 0 }
   0x5   :  { %17 = vsyncpa [#allocation7], 0 }
   0x6   :  { %18 = vsyncpa [#allocation5], 0 }
   0x7   :  { %20 = vsyncpa [#allocation5 + $0x1], 0 }
   0x8   :  { %21 = vsyncpa [#allocation11], 0 }
   0x9   :  { %23 = vsyncpa [#allocation11 + $0x1], 0  ;;  %s5436_s27 = smov 0   ;;  %s5438_s28 = smov 0  }
   0xa   :  { %s5440_s29 = smov 0   ;;  %s5442_s30 = smov 0  }
   0xb LB: > { %s5457_s9 = sadd.s32 4294967295, %s5377_s30   ;;  %s4246_s10 = sadd.s32 4294967294, %s5377_s30   ;;  %s5377_s30 = sphi %s5442_s30, %s8700_s30   ;;  %s5373_s29 = sphi %s5440_s29, %s8699_s29   ;;  %s5369_s28 = sphi %s5438_s28, %s8698_s28   ;;  %s5365_s27 = sphi %s5436_s27, %s8697_s27  }
   0xc   : > { %p49_p0 = scmp.ne.s32.totalorder %s5369_s28, %s5365_s27  ;;  %p8205_p1 = scmp.eq.s32.totalorder %s5457_s9, 0 }
   0xd   : > { %p199_p2 = scmp.eq.s32.totalorder %s5457_s9, 1  ;;  %p205_p3 = scmp.eq.s32.totalorder %s4246_s10, 1 }
   0xe   : > { %p5466_p4 = por %p8205_p1, %p49_p0  ;;  %p4247_p5 = scmp.ge.s32.totalorder %s5377_s30, 1 }
   0xf   : > { %p5471_p6 = por %p205_p3, %p49_p0  ;;  %p238_p7 = scmp.lt.s32.totalorder %s5377_s30, 3 }
  0x10   : > { %s8315_s11 = scalar_select %p5466_p4, 1, 0 }
  0x11   : > { %s8316_s12 = scalar_select %p5471_p6, 1, 0 }
  0x12   : > { %p5476_p8 = pnand %p4247_p5, %p238_p7  ;;  %s5379_s14 = smov [#allocation6]  }
  0x13   : > { %s250_s15 = sshll.u32 %s5379_s14, 4  ;;  %s5380_s17 = smov [#allocation8]   ;;  %s251_s15 = int_to_ptr.vmem [resolvable:$true] %s250_s15 }
  0x14   : > { %s8317_s13 = scalar_select %p5476_p8, 1, 0 }
  0x15   : > { %p4835_p9 = pneg %p5476_p8  ;;  %s269_s18 = sshll.u32 %s5380_s17, 4  ;;  %s270_s18 = int_to_ptr.vmem [resolvable:$true] %s269_s18 }
  0x16   : > { %s5210_s19 = scalar_lea.vmem %s251_s15, 1024  ;;  %p5218_p5 = scmp.lt.s32.totalorder %s251_s15, %s251_s15 }
  0x17   : > { %p5485_p11 = pnand %p4835_p9, %p8205_p1  ;;  %p5211_p13 = scmp.ne.s32.totalorder %s251_s15, %s5210_s19 }
  0x18   : > { %p5219_p7 = scmp.lt.s32.totalorder %s5210_s19, %s5210_s19 }
  0x19   : > { %p5201_p12 = pneg %p5485_p11 }
  0x1a   : > { %p5220_p10 = por %p5219_p7, %p5218_p5 }
  0x1b   : > { %p5213_p0 = pnand %p5211_p13, %p5201_p12 }
  0x1d   : > { %p5214_p3 = pneg %p5213_p0 }
  0x1f   : > { %p5221_p9 = pnand %p5220_p10, %p5214_p3 }
  0x21   : > { %5224 = shalt.err (!%p5221_p9)
}
  0x22   : > { %s8203_s20 = smov 64   ;;  %s8204_s21 = smov 4  }
  0x23   : > { %s8319_s1 = sld [smem:[#allocation82_spill]]  ;;  %s5236_s24 = scalar_lea.vmem %s270_s18, 256 }
  0x24   : > { %p5237_p13 = scmp.ne.s32.totalorder %s270_s18, %s5236_s24  ;;  %p5244_p10 = scmp.lt.s32.totalorder %s270_s18, %s270_s18 }
  0x25   : > { %p5245_p3 = scmp.lt.s32.totalorder %s5236_s24, %s5236_s24 }
  0x26   : > { %p5239_p0 = pnand %p5237_p13, %p5201_p12 }
  0x27   : > { %p5246_p7 = por %p5245_p3, %p5244_p10 }
  0x28   : > { %p5240_p5 = pneg %p5239_p0 }
  0x29   : > { %4838 = dma.hbm_to_vmem [thread:$0]  (!%p5485_p11), %s8319_s1, 1024, %s251_s15, [#allocation7], %s8203_s20, %s8203_s20, %s8204_s21  }
  0x2a   : > { %p5247_p9 = pnand %p5246_p7, %p5240_p5 }
  0x2c   : > { %5250 = shalt.err (!%p5247_p9)
}
  0x2d   : > { %s5383_s25 = smov 128   ;;  %s5384_s26 = smov 8  }
  0x2e   : > { %s8320_s4 = sld [smem:[#allocation83_spill]]  ;;  %s5511_s15 = sadd.s32 1, %s5377_s30  }
  0x2f   : > { %s33_s17 = ssub.s32 %s5377_s30, %s5511_s15  ;;  %s36_s19 = sadd.s32 1, %s5373_s29 }
  0x30   : > { %p34_p12 = scmp.eq.s32.totalorder %s33_s17, 0  ;;  %p43_p13 = scmp.ne.s32.totalorder %s5373_s29, %s5369_s28 }
  0x31   : > { %p44_p0 = scmp.eq.s32.totalorder %s5377_s30, 0  ;;  %p4855_p3 = scmp.lt.s32.totalorder %s5377_s30, 2 }
  0x32   : > { %s5520_s22 = scalar_select %p34_p12, %s5373_s29, %s36_s19  }
  0x33   : > { %p45_p5 = por %p44_p0, %p43_p13  ;;  %p5524_p10 = por %p199_p2, %p43_p13 }
  0x34   : > { %4841 = dma.hbm_to_vmem [thread:$0]  (!%p5485_p11), %s8320_s4, 256, %s270_s18, [#allocation7], %s5383_s25, %s5383_s25, %s5384_s26  }
  0x35   : > { %s8321_s23 = scalar_select %p5524_p10, 1, 0 }
  0x36   : > { %s289_s16 = sand.u32 1, %s5373_s29   ;;  %s4480_s18 = sshll.u32 %s5377_s30, 11 }
  0x37   : > { %s4251_s24 = sshll.u32 %s289_s16, 7  ;;  %s5534_s10 = scalar_lea.hbm %s8194_s0, %s4480_s18 }
  0x38   : > { %s293_s14 = scalar_lea.vmem [#allocation3], %s4251_s24  ;;  %p5538_p2 = pnand %p4855_p3, %p45_p5 }
  0x39   : > { %s300_s17 = sshll.u32 %s293_s14, 4  ;;  %s5542_s20 = scalar_lea.sflag [#allocation4], %s289_s16  ;;  %s5536_s17 = int_to_ptr.vmem [resolvable:$true] %s300_s17 }
  0x3a   : > { %s5251_s21 = scalar_lea.hbm %s5534_s10, 2048  ;;  %p5253_p7 = pneg %p5538_p2 }
  0x3b   : > { %p5252_p11 = scmp.ne.s32.totalorder %s5534_s10, %s5251_s21  ;;  %s5256_s24 = scalar_lea.hbm %s8194_s0, 4096 }
  0x3c   : > { %p5257_p13 = scmp.lt.s32.totalorder %s5534_s10, %s8194_s0  ;;  %p5258_p0 = scmp.lt.s32.totalorder %s5256_s24, %s5251_s21 }
  0x3d   : > { %p5254_p9 = pnand %p5253_p7, %p5252_p11 }
  0x3e   : > { %p5259_p5 = por %p5258_p0, %p5257_p13 }
  0x3f   : > { %p5255_p12 = pneg %p5254_p9 }
  0x41   : > { %p5260_p3 = pnand %p5259_p5, %p5255_p12 }
  0x43   : > { %5263 = shalt.err (!%p5260_p3)
}
  0x44   : > { %s5264_s16 = scalar_lea.vmem %s5536_s17, 2048  ;;  %s5385_s1 = smov [#allocation3]  }
  0x45   : > { %p5265_p1 = scmp.ne.s32.totalorder %s5536_s17, %s5264_s16  ;;  %s5269_s4 = sshll.u32 %s5385_s1, 4  ;;  %s5270_s4 = int_to_ptr.vmem [resolvable:$false] %s5269_s4 }
  0x46   : > { %s5271_s18 = scalar_lea.vmem %s5270_s4, 4096  ;;  %p5272_p9 = scmp.lt.s32.totalorder %s5536_s17, %s5270_s4 }
  0x47   : > { %p5267_p6 = pnand %p5265_p1, %p5253_p7  ;;  %p5273_p10 = scmp.lt.s32.totalorder %s5271_s18, %s5264_s16 }
  0x49   : > { %p5268_p11 = pneg %p5267_p6  ;;  %p5274_p4 = por %p5273_p10, %p5272_p9 }
  0x4b   : > { %p5275_p8 = pnand %p5274_p4, %p5268_p11 }
  0x4d   : > { %5278 = shalt.err (!%p5275_p8)
}
  0x4e   : > { %s8323_s21 = smov 4   ;;  %s8324_s25 = smov 64  }
  0x4f   : > { %4845 = dma.hbm_to_vmem [thread:$0]  (!%p5538_p2), %s5534_s10, 2048, %s5536_s17, %s5542_s20, %s8324_s25, %s8324_s25, %s8323_s21  }
  0x50   : > { %p8325_p1 = scmp.ne.s32.totalorder %s8317_s13, 0 }
  0x52   : > { %312 = sbr.rel (%p8325_p1) target bundleno = 917 (0x395), region = 48 }
  0x57   : > { %s5569_s1 = sand.u32 1, %s5369_s28   ;;  %p8326_p4 = scmp.ne.s32.totalorder %s8315_s11, 0 }
  0x58   : > { %s4255_s4 = sshll.u32 %s5569_s1, 7  ;;  %s315_s24 = scalar_lea.sflag [#allocation4], %s5569_s1 }
  0x59   : > { %s5575_s19 = scalar_lea.vmem [#allocation3], %s4255_s4 }
  0x5a   : > { %5348 = dma.done.wait (%p8326_p4), %s315_s24, 2048  }
  0x5b   : > { %5350 = vsyncadd (%p8326_p4), %s315_s24, 4294965248  ;;  %p8327_p6 = scmp.eq.s32.totalorder %s5457_s9, 0 }
  0x5d   : > { %5352 = dma.done.wait (%p8327_p6), [#allocation7], 1280   ;;  %p8328_p8 = pmov %p8327_p6 }
  0x5e   : > { %v4900_v0 = vld [vmem:[#allocation6 + $0x38] sm:$0xff]   ;;  %v4902_v2 = vld [vmem:[#allocation6 + $0x30] sm:$0xff]   ;;  %v4904_v4 = vld [vmem:[#allocation6 + $0x28] sm:$0xff]   ;;  %v5386_v32 = vmov 0   ;;  %vm834_vm0 = vcmask 1040384   ;;  %vm1683_vm3 = vcmask 1046528  }
  0x5f   : > { %5354 = vsyncadd (%p8328_p8), [#allocation7], 4294966016  ;;  %v4901_v1 = vld [vmem:[#allocation6 + $0x38] sm:$0xff]   ;;  %4757 = vmatprep.subr.bf16.mxu0 %v4900_v0  ;;  %v4903_v3 = vld [vmem:[#allocation6 + $0x30] sm:$0xff]   ;;  %364 = vst [vmem:[#allocation2] sm:$0xf] %v5386_v32 }
  0x60   : > { %4789 = vmatprep.subr.bf16.mxu1 %v4901_v1  ;;  %4758 = vmatpush3.bf16.msra.mxu0 %v4900_v0  ;;  %v4905_v5 = vld [vmem:[#allocation6 + $0x28] sm:$0xff]   ;;  %v4906_v6 = vld [vmem:[#allocation6 + $0x20] sm:$0xff]   ;;  %v4908_v8 = vld [vmem:[#allocation6 + $0x18] sm:$0xff]   ;;  %365 = vst [vmem:[#allocation2 + $0x4] sm:$0xf] %v5386_v32  ;;  %vm1824_vm4 = vcmask 1045504  }
  0x61   : > { %4790 = vmatpush3.bf16.msra.mxu1 %v4901_v1  ;;  %4759 = vmatprep.subr.bf16.mxu0 %v4902_v2  ;;  %v4907_v7 = vld [vmem:[#allocation6 + $0x20] sm:$0xff]   ;;  %v4909_v9 = vld [vmem:[#allocation6 + $0x18] sm:$0xff]   ;;  %v4910_v10 = vld [vmem:[#allocation6 + $0x10] sm:$0xff]   ;;  %366 = vst [vmem:[#allocation2 + $0x8] sm:$0x1] %v5386_v32  ;;  %s6306_s18 = scalar_lea.vmem [#allocation9], %s4255_s4 }
  0x62   : > { %4791 = vmatprep.subr.bf16.mxu1 %v4903_v3  ;;  %v4911_v11 = vld [vmem:[#allocation6 + $0x10] sm:$0xff]   ;;  %v4916_v12 = vld [vmem:[%s5575_s19] sm:$0xff]   ;;  %v4912_v14 = vld [vmem:[#allocation6 + $0x8] sm:$0xff]   ;;  %368 = vst [vmem:[#allocation2 + $0xcc] sm:$0xf] %v5386_v32  ;;  %s4513_s24 = sshll.u32 %s5457_s9, 11 }
  0x63   : > { %v4917_v13 = vld [vmem:[%s5575_s19 + $0x40] sm:$0xff]   ;;  %4773 = vmatprep.mubr.bf16.mxu0 %v4916_v12  ;;  %v4913_v15 = vld [vmem:[#allocation6 + $0x8] sm:$0xff]   ;;  %v4920_v20 = vld [vmem:[%s5575_s19 + $0x10] sm:$0xff]   ;;  %369 = vst [vmem:[#allocation2 + $0xd0] sm:$0xf] %v5386_v32  ;;  %s8129_s20 = scalar_lea.hbm %s8201_s7, %s4513_s24  ;;  %s4096_s10 = scalar_lea.sflag [#allocation5], %s5569_s1 }
  0x64   : > { %4760 = vmatpush3.bf16.msra.mxu0 %v4902_v2  ;;  %4805 = vmatprep.mubr.bf16.mxu1 %v4917_v13  ;;  %v4914_v16 = vld [vmem:[#allocation6] sm:$0xff]   ;;  %v4918_v18 = vld [vmem:[%s5575_s19 + $0x8] sm:$0xff]   ;;  %v4921_v21 = vld [vmem:[%s5575_s19 + $0x50] sm:$0xff]   ;;  %370 = vst [vmem:[#allocation2 + $0xd4] sm:$0x1] %v5386_v32  ;;  %p8694_p2 = scmp.ne.s32.totalorder %s8321_s23, 0 }
  0x65   : > { %4792 = vmatpush3.bf16.msra.mxu1 %v4903_v3  ;;  %4761 = vmatprep.subr.bf16.mxu0 %v4904_v4  ;;  %v4915_v17 = vld [vmem:[#allocation6] sm:$0xff]   ;;  %v4919_v19 = vld [vmem:[%s5575_s19 + $0x48] sm:$0xff]   ;;  %v4922_v22 = vld [vmem:[%s5575_s19 + $0x18] sm:$0xff]   ;;  %vm835_vm1 = vsmask.f32 256  ;;  %s5387_s26 = smov [#allocation9]  }
  0x66   : > { %4793 = vmatprep.subr.bf16.mxu1 %v4905_v5  ;;  %v4923_v23 = vld [vmem:[%s5575_s19 + $0x58] sm:$0xff]   ;;  %v4924_v24 = vld [vmem:[%s5575_s19 + $0x20] sm:$0xff]   ;;  %v4926_v26 = vld [vmem:[%s5575_s19 + $0x28] sm:$0xff]   ;;  %s5283_s14 = sshll.u32 %s5387_s26, 4  ;;  %s5284_s14 = int_to_ptr.vmem [resolvable:$false] %s5283_s14 }
  0x67   : > { %v4925_v25 = vld [vmem:[%s5575_s19 + $0x60] sm:$0xff]   ;;  %v4927_v27 = vld [vmem:[%s5575_s19 + $0x68] sm:$0xff]   ;;  %v4928_v28 = vld [vmem:[%s5575_s19 + $0x30] sm:$0xff]   ;;  %s5285_s16 = scalar_lea.vmem %s5284_s14, 4096 }
  0x68   : > { %4762 = vmatpush3.bf16.msra.mxu0 %v4904_v4  ;;  %v4929_v29 = vld [vmem:[%s5575_s19 + $0x70] sm:$0xff]   ;;  %v4930_v30 = vld [vmem:[%s5575_s19 + $0x38] sm:$0xff]   ;;  %v5604_v33 = vld [vmem:[%s8196_s2] ss:$0 sm:$0xff] }
  0x69   : > { %4794 = vmatpush3.bf16.msra.mxu1 %v4905_v5  ;;  %4763 = vmatprep.subr.bf16.mxu0 %v4906_v6  ;;  %v4931_v31 = vld [vmem:[%s5575_s19 + $0x78] sm:$0xff]   ;;  %v5609_v35 = vld [vmem:[%s8197_s3] ss:$0 sm:$0xff]  ;;  %vm5706_vm2 = vmand %vm834_vm0, %vm835_vm1  ;;  %s4113_s19 = sshll.u32 %s6306_s18, 4  ;;  %s8131_s19 = int_to_ptr.vmem [resolvable:$true] %s4113_s19 }
  0x6a   : > { %4795 = vmatprep.subr.bf16.mxu1 %v4907_v7  ;;  %s5279_s17 = scalar_lea.vmem %s8131_s19, 2048  ;;  %p5286_p13 = scmp.lt.s32.totalorder %s8131_s19, %s5284_s14 }
  0x6b   : > { %p5280_p10 = scmp.ne.s32.totalorder %s8131_s19, %s5279_s17  ;;  %p5287_p0 = scmp.lt.s32.totalorder %s5285_s16, %s5279_s17 }
  0x6c   : > { %4764 = vmatpush3.bf16.msra.mxu0 %v4906_v6 }
  0x6d   : > { %4796 = vmatpush3.bf16.msra.mxu1 %v4907_v7  ;;  %4765 = vmatprep.subr.bf16.mxu0 %v4908_v8  ;;  %p5281_p7 = pnand %p5280_p10, %p8694_p2  ;;  %p5288_p5 = por %p5287_p0, %p5286_p13 }
  0x6e   : > { %4797 = vmatprep.subr.bf16.mxu1 %v4909_v9 }
  0x6f   : > { %p5282_p12 = pneg %p5281_p7 }
  0x70   : > { %4766 = vmatpush3.bf16.msra.mxu0 %v4908_v8 }
  0x71   : > { %4798 = vmatpush3.bf16.msra.mxu1 %v4909_v9  ;;  %4767 = vmatprep.subr.bf16.mxu0 %v4910_v10  ;;  %p5289_p3 = pnand %p5288_p5, %p5282_p12 }
  0x72   : > { %4799 = vmatprep.subr.bf16.mxu1 %v4911_v11 }
  0x74   : > { %4768 = vmatpush3.bf16.msra.mxu0 %v4910_v10 }
  0x75   : > { %4800 = vmatpush3.bf16.msra.mxu1 %v4911_v11  ;;  %4769 = vmatprep.subr.bf16.mxu0 %v4912_v14 }
  0x76   : > { %4801 = vmatprep.subr.bf16.mxu1 %v4913_v15 }
  0x78   : > { %4770 = vmatpush3.bf16.msra.mxu0 %v4912_v14 }
  0x79   : > { %4802 = vmatpush3.bf16.msra.mxu1 %v4913_v15  ;;  %4771 = vmatprep.subr.bf16.mxu0 %v4914_v16 }
  0x7a   : > { %4803 = vmatprep.subr.bf16.mxu1 %v4915_v17 }
  0x7c   : > { %4772 = vmatpush3.bf16.msra.mxu0 %v4914_v16 }
  0x7d   : > { %4804 = vmatpush3.bf16.msra.mxu1 %v4915_v17 }
  0x7f   : > { %4774 = vmatmul.mubr.bf16.vlgmr.msra.gmra.mxu0 %v4918_v18 }
  0x80   : > { %4806 = vmatmul.mubr.bf16.vlgmr.msra.gmra.mxu1 %v4919_v19  ;;  %4777 = vmatprep.mubr.bf16.mxu0 %v4920_v20 }
  0x81   : > { %4809 = vmatprep.mubr.bf16.mxu1 %v4921_v21 }
  0x87   : > { %4778 = vmatmul.mubr.bf16.gmra.mxu0 %v4922_v22 }
  0x88   : > { %4810 = vmatmul.mubr.bf16.gmra.mxu1 %v4923_v23  ;;  %4781 = vmatprep.mubr.bf16.mxu0 %v4924_v24 }
  0x89   : > { %4813 = vmatprep.mubr.bf16.mxu1 %v4925_v25 }
  0x8f   : > { %4782 = vmatmul.mubr.bf16.gmra.mxu0 %v4926_v26 }
  0x90   : > { %4814 = vmatmul.mubr.bf16.gmra.mxu1 %v4927_v27  ;;  %4785 = vmatprep.mubr.bf16.mxu0 %v4928_v28 }
  0x91   : > { %4817 = vmatprep.mubr.bf16.mxu1 %v4929_v29 }
  0x97   : > { %4786 = vmatmul.mubr.bf16.gmra.mxu0 %v4930_v30 }
  0x98   : > { %4818 = vmatmul.mubr.bf16.gmra.mxu1 %v4931_v31 }
 0x13f   : > { %v4775_v34 = vpop.f32.mrf.mxu0 }
 0x140   : > { %v605_v36 = vmul.f32 %v4775_v34, %v5604_v33  ;;  %v4807_v37 = vpop.f32.mrf.mxu1 }
 0x141   : > { %v1201_v38 = vmul.f32 %v4807_v37, %v5604_v33  ;;  %v533_v39 = vpop.f32.mrf.mxu0 }
 0x142   : > { %v5614_v40 = vadd.f32 %v5609_v35, %v605_v36  ;;  %v603_v41 = vmul.f32 %v5604_v33, %v533_v39  ;;  %v1129_v42 = vpop.f32.mrf.mxu1 }
 0x143   : > { %v5618_v43 = vadd.f32 %v5609_v35, %v1201_v38  ;;  %v1199_v44 = vmul.f32 %v5604_v33, %v1129_v42  ;;  %v4776_v45 = vpop.f32.mrf.mxu0 }
 0x144   : > { %v4279_v46 = vmul.f32 -1.442695, %v5614_v40  ;;  %v5623_v47 = vadd.f32 %v5609_v35, %v603_v41  ;;  %v606_v48 = vmul.f32 %v4776_v45, %v5604_v33  ;;  %v4808_v49 = vpop.f32.mrf.mxu1 }
 0x145   : > { %v4353_v50 = vmul.f32 -1.442695, %v5618_v43  ;;  %v5628_v51 = vadd.f32 %v5609_v35, %v1199_v44  ;;  %v1202_v52 = vmul.f32 %v4808_v49, %v5604_v33  ;;  %v536_v53 = vpop.f32.mrf.mxu0 }
 0x146   : > { %4932 = vpow2.f32 %v4279_v46  ;;  %v4277_v54 = vmul.f32 -1.442695, %v5623_v47  ;;  %v5633_v55 = vadd.f32 %v5609_v35, %v606_v48  ;;  %v604_v56 = vmul.f32 %v5604_v33, %v536_v53  ;;  %v1132_v57 = vpop.f32.mrf.mxu1 }
 0x147   : > { %4934 = vpow2.f32 %v4353_v50  ;;  %v4351_v58 = vmul.f32 -1.442695, %v5628_v51  ;;  %v5638_v59 = vadd.f32 %v5609_v35, %v1202_v52  ;;  %v1200_v60 = vmul.f32 %v5604_v33, %v1132_v57  ;;  %v4779_v61 = vpop.f32.mrf.mxu0 }
 0x148   : > { %4936 = vpow2.f32 %v4277_v54  ;;  %v4280_v62 = vmul.f32 -1.442695, %v5633_v55  ;;  %v5643_v63 = vadd.f32 %v5609_v35, %v604_v56  ;;  %v609_v0 = vmul.f32 %v4779_v61, %v5604_v33  ;;  %v4811_v9 = vpop.f32.mrf.mxu1 }
 0x149   : > { %4938 = vpow2.f32 %v4351_v58  ;;  %v4354_v1 = vmul.f32 -1.442695, %v5638_v59  ;;  %v5648_v2 = vadd.f32 %v5609_v35, %v1200_v60  ;;  %v549_v3 = vpop.f32.mrf.mxu0  ;;  %v1205_v26 = vmul.f32 %v4811_v9, %v5604_v33 }
 0x14a   : > { %4940 = vpow2.f32 %v4280_v62  ;;  %v4278_v4 = vmul.f32 -1.442695, %v5643_v63  ;;  %v5653_v7 = vadd.f32 %v5609_v35, %v609_v0  ;;  %v1145_v12 = vpop.f32.mrf.mxu1  ;;  %v607_v30 = vmul.f32 %v5604_v33, %v549_v3 }
 0x14b   : > { %4942 = vpow2.f32 %v4354_v1  ;;  %v4352_v5 = vmul.f32 -1.442695, %v5648_v2  ;;  %v4780_v6 = vpop.f32.mrf.mxu0  ;;  %v5666_v39 = vadd.f32 %v5609_v35, %v1205_v26  ;;  %v1203_v44 = vmul.f32 %v5604_v33, %v1145_v12 }
 0x14c   : > { %4944 = vpow2.f32 %v4278_v4  ;;  %v610_v8 = vmul.f32 %v4780_v6, %v5604_v33  ;;  %v4283_v11 = vmul.f32 -1.442695, %v5653_v7  ;;  %v4812_v19 = vpop.f32.mrf.mxu1  ;;  %v5670_v42 = vadd.f32 %v5609_v35, %v607_v30 }
 0x14d   : > { %4946 = vpow2.f32 %v4352_v5  ;;  %v552_v27 = vpop.f32.mrf.mxu0  ;;  %v1206_v36 = vmul.f32 %v4812_v19, %v5604_v33  ;;  %v1595_v48 = vlaneseq  ;;  %v4357_v49 = vmul.f32 -1.442695, %v5666_v39  ;;  %v5699_v19 = vld [vmem:[#allocation8] sm:$0xff] }
 0x14e   : > { %v5657_v10 = vadd.f32 %v5609_v35, %v610_v8  ;;  %4948 = vpow2.f32 %v4283_v11  ;;  %v1148_v31 = vpop.f32.mrf.mxu1  ;;  %v608_v38 = vmul.f32 %v5604_v33, %v552_v27  ;;  %v4281_v53 = vmul.f32 -1.442695, %v5670_v42 }
 0x14f   : > { %v1204_v41 = vmul.f32 %v5604_v33, %v1148_v31  ;;  %v5674_v45 = vadd.f32 %v5609_v35, %v1206_v36  ;;  %v5685_v54 = vadd.f32 %v5609_v35, %v1203_v44  ;;  %v5689_v62 = vshrl.u32 %v1595_v48, 7 }
 0x150   : > { %v4284_v13 = vmul.f32 -1.442695, %v5657_v10  ;;  %v5677_v46 = vadd.f32 %v5609_v35, %v608_v38 }
 0x151   : > { %v5681_v50 = vadd.f32 %v5609_v35, %v1204_v41  ;;  %v4358_v57 = vmul.f32 -1.442695, %v5674_v45  ;;  %v4355_v3 = vmul.f32 -1.442695, %v5685_v54  ;;  %v1633_v11 = vsub.s32 1, %v5689_v62 }
 0x152   : > { %4950 = vpow2.f32 %v4284_v13  ;;  %v4282_v60 = vmul.f32 -1.442695, %v5677_v46 }
 0x153   : > { %v4933_v14 = vpop.eup %4932  ;;  %v4356_v0 = vmul.f32 -1.442695, %v5681_v50 }
 0x154   : > { %v4935_v15 = vpop.eup %4934  ;;  %v692_v16 = vadd.f32 1.0, %v4933_v14 }
 0x155   : > { %v4937_v17 = vpop.eup %4936  ;;  %v1288_v18 = vadd.f32 1.0, %v4935_v15 }
 0x156   : > { %v4939_v20 = vpop.eup %4938  ;;  %4952 = vrcp.f32 %v692_v16  ;;  %v690_v21 = vadd.f32 1.0, %v4937_v17 }
 0x157   : > { %v4941_v22 = vpop.eup %4940  ;;  %4954 = vrcp.f32 %v1288_v18  ;;  %v1286_v23 = vadd.f32 1.0, %v4939_v20 }
 0x158   : > { %v4943_v24 = vpop.eup %4942  ;;  %4956 = vrcp.f32 %v690_v21  ;;  %v693_v25 = vadd.f32 1.0, %v4941_v22 }
 0x159   : > { %v4945_v28 = vpop.eup %4944  ;;  %4958 = vrcp.f32 %v1286_v23  ;;  %v1289_v29 = vadd.f32 1.0, %v4943_v24 }
 0x15a   : > { %v4947_v32 = vpop.eup %4946  ;;  %4960 = vrcp.f32 %v693_v25  ;;  %v691_v34 = vadd.f32 1.0, %v4945_v28 }
 0x15b   : > { %4962 = vrcp.f32 %v1289_v29  ;;  %v1287_v37 = vadd.f32 1.0, %v4947_v32  ;;  %v4949_v52 = vpop.eup %4948 }
 0x15c   : > { %4964 = vrcp.f32 %v691_v34  ;;  %v696_v15 = vadd.f32 1.0, %v4949_v52 }
 0x15d   : > { %4966 = vrcp.f32 %v1287_v37 }
 0x15e   : > { %4968 = vpow2.f32 %v4357_v49 }
 0x15f   : > { %v4951_v56 = vpop.eup %4950  ;;  %4970 = vpow2.f32 %v4281_v53 }
 0x160   : > { %4972 = vpow2.f32 %v4358_v57  ;;  %v697_v20 = vadd.f32 1.0, %v4951_v56 }
 0x161   : > { %4974 = vpow2.f32 %v4282_v60 }
 0x162   : > { %4976 = vpow2.f32 %v4356_v0 }
 0x163   : > { %v4953_v58 = vpop.eup %4952  ;;  %4978 = vpow2.f32 %v4355_v3 }
 0x164   : > { %v4955_v61 = vpop.eup %4954  ;;  %v740_v8 = vmul.f32 %v4953_v58, %v5614_v40  ;;  %4980 = vrcp.f32 %v696_v15 }
 0x165   : > { %v4957_v1 = vpop.eup %4956  ;;  %v1336_v13 = vmul.f32 %v4955_v61, %v5618_v43  ;;  %4982 = vrcp.f32 %v697_v20 }
 0x166   : > { %v4959_v4 = vpop.eup %4958  ;;  %v738_v17 = vmul.f32 %v4957_v1, %v5623_v47  ;;  %v5711_v47 = vrot.slane %v5699_v19, %v1633_v11 }
 0x167   : > { %v4961_v5 = vpop.eup %4960 }
 0x168   : > { %v4963_v6 = vpop.eup %4962  ;;  %v741_v9 = vmul.f32 %v4961_v5, %v5633_v55  ;;  %v1334_v55 = vmul.f32 %v4959_v4, %v5628_v51  ;;  %8332 = vst [vmem:[#allocation17_spill] sm:$0xff] %v5711_v47 }
 0x169   : > { %v4965_v12 = vpop.eup %4964  ;;  %v1337_v14 = vmul.f32 %v4963_v6, %v5638_v59  ;;  %v8329_v59 = vmov 0  ;;  %v5725_v6 = vld [vmem:[#allocation2] sm:$0xff]  }
 0x16a   : > { %v4967_v16 = vpop.eup %4966  ;;  %v755_v18 = vpack.c.bf16 %v741_v9, %v740_v8  ;;  %v739_v40 = vmul.f32 %v4965_v12, %v5643_v63  ;;  %v8330_v59 = vsel %vm5706_vm2, 4294967295, %v8329_v59 }
 0x16b   : > { %v1351_v21 = vpack.c.bf16 %v1337_v14, %v1336_v13  ;;  %v1335_v22 = vmul.f32 %v4967_v16, %v5648_v2  ;;  %8331 = vst [vmem:[#allocation16_spill] sm:$0xff] %v8330_v59  ;;  %v4969_v36 = vpop.eup %4968  ;;  %v1615_v13 = vld [vmem:[#allocation2 + $0x8] sm:$0x1] }
 0x16c   : > { %v770_v23 = vshrl.u32 %v755_v18, 16  ;;  %v754_v43 = vpack.c.bf16 %v739_v40, %v738_v17  ;;  %v773_v26 = vshll.u32 %v755_v18, 16  ;;  %v4971_v48 = vpop.eup %4970  ;;  %v1292_v15 = vadd.f32 1.0, %v4969_v36 }
 0x16d   : > { %v1366_v24 = vshrl.u32 %v1351_v21, 16  ;;  %v1350_v25 = vpack.c.bf16 %v1335_v22, %v1334_v55  ;;  %v1369_v2 = vshll.u32 %v1351_v21, 16  ;;  %v4973_v57 = vpop.eup %4972  ;;  %v1774_v17 = vsub.s32 2, %v5689_v62 }
 0x16e   : > { %v772_v63 = vrot.slane %v770_v23, 7  ;;  %v763_v51 = vshrl.u32 %v754_v43, 16  ;;  %v766_v28 = vshll.u32 %v754_v43, 16  ;;  %v4975_v1 = vpop.eup %4974  ;;  %v1293_v20 = vadd.f32 1.0, %v4973_v57 }
 0x16f   : > { %v1368_v27 = vrot.slane %v1366_v24, 7  ;;  %v1359_v29 = vshrl.u32 %v1350_v25, 16  ;;  %v1362_v34 = vshll.u32 %v1350_v25, 16  ;;  %v4977_v9 = vpop.eup %4976  ;;  %v4516_v55 = vunpack.c.l.bf16 %v5725_v6 }
 0x170   : > { %v775_v30 = vor.u32 %v773_v26, %v772_v63  ;;  %v846_v31 = vsel %vm5706_vm2, %v772_v63, 0  ;;  %v765_v32 = vrot.slane %v763_v51, 7  ;;  %v4979_v16 = vpop.eup %4978  ;;  %v695_v23 = vadd.f32 1.0, %v4975_v1  ;;  %v1756_v63 = vld [vmem:[#allocation2] sm:$0xe] }
 0x171   : > { %v4298_v37 = vcombine.low %v846_v31, %v846_v31  ;;  %v1371_v38 = vor.u32 %v1369_v2, %v1368_v27  ;;  %v1439_v41 = vsel %vm5706_vm2, %v1368_v27, 0  ;;  %v1361_v44 = vrot.slane %v1359_v29, 7  ;;  %v4981_v51 = vpop.eup %4980 }
 0x172   : > { %v838_v49 = vsel %vm5706_vm2, 0, %v775_v30  ;;  %v4372_v52 = vcombine.low %v1439_v41, %v1439_v41  ;;  %v768_v53 = vor.u32 %v766_v28, %v765_v32  ;;  %v845_v56 = vsel %vm5706_vm2, %v765_v32, 0  ;;  %v4983_v28 = vpop.eup %4982 }
 0x173   : > { %v4296_v58 = vcombine.low %v838_v49, %v838_v49  ;;  %v4297_v60 = vcombine.high %v838_v49, %v838_v49  ;;  %947 = vst [vmem:[#allocation2 + $0x20] sm:$0x1] %v4298_v37  ;;  %v1431_v61 = vsel %vm5706_vm2, 0, %v1371_v38  ;;  %v4295_v0 = vcombine.low %v845_v56, %v845_v56 }
 0x174   : > { %v4370_v3 = vcombine.low %v1431_v61, %v1431_v61  ;;  %v4371_v4 = vcombine.high %v1431_v61, %v1431_v61  ;;  %1540 = vst [vmem:[#allocation2 + $0x80] sm:$0x1] %v4372_v52  ;;  %v837_v5 = vsel %vm5706_vm2, 0, %v768_v53  ;;  %v1364_v8 = vor.u32 %v1362_v34, %v1361_v44 }
 0x175   : > { %945 = vst [vmem:[#allocation2 + $0x18] sm:$0xf] %v4296_v58  ;;  %946 = vst [vmem:[#allocation2 + $0x1c] sm:$0xf] %v4297_v60  ;;  %v4293_v11 = vcombine.low %v837_v5, %v837_v5  ;;  %v4294_v12 = vcombine.high %v837_v5, %v837_v5  ;;  %v1438_v14 = vsel %vm5706_vm2, %v1361_v44, 0  ;;  %v4517_v43 = vunpack.c.h.bf16 %v5725_v6  ;;  %v4783_v60 = vpop.f32.mrf.mxu0 }
 0x176   : > { %944 = vst [vmem:[#allocation2 + $0x14] sm:$0x1] %v4295_v0  ;;  %1538 = vst [vmem:[#allocation2 + $0x78] sm:$0xf] %v4370_v3  ;;  %v1430_v18 = vsel %vm5706_vm2, 0, %v1364_v8  ;;  %v4369_v40 = vcombine.low %v1438_v14, %v1438_v14  ;;  %v1623_v24 = vunpack.c.l.bf16 %v1615_v13  ;;  %v1291_v25 = vadd.f32 1.0, %v4977_v9 }
 0x177   : > { %1539 = vst [vmem:[#allocation2 + $0x7c] sm:$0xf] %v4371_v4  ;;  %942 = vst [vmem:[#allocation2 + $0xc] sm:$0xf] %v4293_v11  ;;  %v4367_v21 = vcombine.low %v1430_v18, %v1430_v18  ;;  %v4368_v22 = vcombine.high %v1430_v18, %v1430_v18  ;;  %4984 = vrcp.f32 %v1292_v15  ;;  %v694_v26 = vadd.f32 1.0, %v4971_v48 }
 0x178   : > { %943 = vst [vmem:[#allocation2 + $0x10] sm:$0xf] %v4294_v12  ;;  %1537 = vst [vmem:[#allocation2 + $0x74] sm:$0x1] %v4369_v40  ;;  %v1597_v27 = vsub.s32 0, %v5689_v62  ;;  %v1290_v2 = vadd.f32 1.0, %v4979_v16  ;;  %4986 = vrcp.f32 %v1293_v20  ;;  %v5736_v29 = vrot.slane %v5699_v19, %v1774_v17 }
 0x179   : > { %1535 = vst [vmem:[#allocation2 + $0x6c] sm:$0xf] %v4367_v21  ;;  %1536 = vst [vmem:[#allocation2 + $0x70] sm:$0xf] %v4368_v22  ;;  %v1983_v30 = vsub.s32 4, %v5689_v62  ;;  %v1635_v31 = vmul.f32 %v4516_v55, %v5711_v47  ;;  %4988 = vrcp.f32 %v695_v23  ;;  %v1636_v34 = vmul.f32 %v4517_v43, %v5711_v47 }
 0x17a   : > { %8333 = vst [vmem:[#allocation18_spill] sm:$0xff] %v5736_v29  ;;  %v1637_v36 = vmul.f32 %v5711_v47, %v1623_v24  ;;  %v1764_v37 = vunpack.c.l.bf16 %v1756_v63  ;;  %4990 = vrcp.f32 %v1291_v25  ;;  %v5747_v44 = vrot.slane %v5699_v19, %v1597_v27  ;;  %v1617_v25 = vld [vmem:[#allocation2 + $0x20] sm:$0x1] }
 0x17b   : > { %4992 = vrcp.f32 %v694_v26  ;;  %v5756_v52 = vrot.slane %v5699_v19, %v1983_v30  ;;  %v1684_v53 = vrot.slane %v1635_v31, 1  ;;  %v1685_v56 = vrot.slane %v1636_v34, 1 }
 0x17c   : > { %v4690_v32 = vld [vmem:[#allocation2 + $0x18] sm:$0xff]   ;;  %8334 = vst [vmem:[#allocation19_spill] sm:$0xff] %v5747_v44  ;;  %4994 = vrcp.f32 %v1290_v2  ;;  %v1687_v57 = vrot.slane %v1637_v36, 1  ;;  %v1776_v58 = vmul.f32 %v5736_v29, %v1764_v37  ;;  %v1777_v1 = vmul.f32 %v4517_v43, %v5736_v29 }
 0x17d   : > { %v5742_v38 = vunpack.c.l.bf16 %v4690_v32  ;;  %v5744_v41 = vunpack.c.h.bf16 %v4690_v32  ;;  %8335 = vst [vmem:[#allocation20_spill] sm:$0xff] %v5756_v52  ;;  %v745_v3 = vmul.f32 %v4983_v28, %v5657_v10  ;;  %v1778_v8 = vmul.f32 %v5736_v29, %v1623_v24 }
 0x17e   : > { %v744_v11 = vmul.f32 %v4981_v51, %v5653_v7  ;;  %v613_v10 = vmul.f32 %v4783_v60, %v5604_v33  ;;  %v1931_v13 = vsub.s32 3, %v5689_v62  ;;  %v1599_v15 = vmul.f32 %v4516_v55, %v5747_v44  ;;  %v1966_v60 = vld [vmem:[#allocation2 + $0x20] sm:$0x1] }
 0x17f   : > { %v1641_v48 = vmul.f32 %v5742_v38, %v5711_v47  ;;  %v5753_v49 = vmul.f32 %v5744_v41, %v5711_v47  ;;  %v1603_v4 = vmul.f32 %v5742_v38, %v5747_v44  ;;  %v1988_v5 = vmul.f32 %v5742_v38, %v5756_v52 }
 0x180   : > { %v5768_v6 = vmul.f32 %v5744_v41, %v5756_v52  ;;  %v1600_v17 = vmul.f32 %v4517_v43, %v5747_v44  ;;  %v1686_v18 = vsel %vm1683_vm3, %v1684_v53, %v1685_v56  ;;  %v757_v40 = vpack.c.bf16 %v745_v3, %v744_v11  ;;  %v4815_v11 = vpop.f32.mrf.mxu1 }
 0x181   : > { %v1694_v61 = vrot.slane %v1641_v48, 1  ;;  %v1695_v0 = vrot.slane %v5753_v49, 1  ;;  %v2038_v14 = vrot.slane %v1988_v5, 1  ;;  %v1688_v21 = vsel %vm1683_vm3, %v1685_v56, %v1687_v57 }
 0x182   : > { %v2039_v16 = vrot.slane %v5768_v6, 1  ;;  %v1825_v7 = vrot.slane %v1776_v58, 2  ;;  %v1826_v22 = vrot.slane %v1777_v1, 2  ;;  %v1828_v23 = vrot.slane %v1778_v8, 2  ;;  %v1758_v58 = vld [vmem:[#allocation2 + $0x18] sm:$0xe] }
 0x183   : > { %v1696_v9 = vsel %vm1683_vm3, %v1694_v61, %v1695_v0  ;;  %v2123_v63 = vsub.s32 5, %v5689_v62  ;;  %v5791_v43 = vadd.f32 %v5609_v35, %v613_v10  ;;  %v2280_v51 = vsub.s32 6, %v5689_v62 }
 0x184   : > { %v5776_v12 = vadd.f32 %v1696_v9, %v1603_v4  ;;  %v4985_v20 = vpop.eup %4984  ;;  %v5787_v55 = vsel %vm1683_vm3, %v2038_v14, %v2039_v16  ;;  %v2332_v27 = vsub.s32 7, %v5689_v62  ;;  %v1740_v28 = vadd.f32 %v1686_v18, %v1599_v15  ;;  %v5814_v4 = vld [vmem:[#allocation2 + $0x20] sm:$0x1]  ;;  %v4707_v18 = vld [vmem:[#allocation2 + $0x78] sm:$0xff]  }
 0x185   : > { %v4987_v24 = vpop.eup %4986  ;;  %8336 = vst [vmem:[#allocation21_spill] sm:$0xff] %v5791_v43  ;;  %v1741_v30 = vadd.f32 %v1688_v21, %v1600_v17  ;;  %v784_v31 = vshrl.u32 %v757_v40, 16  ;;  %v1625_v34 = vunpack.c.l.bf16 %v1617_v25  ;;  %v1827_v36 = vsel %vm1824_vm4, %v1825_v7, %v1826_v22  ;;  %v2106_v7 = vld [vmem:[#allocation2 + $0x18] sm:$0xe] }
 0x186   : > { %v4989_v26 = vpop.eup %4988  ;;  %v1829_v37 = vsel %vm1824_vm4, %v1826_v22, %v1828_v23  ;;  %v1341_v48 = vmul.f32 %v4987_v24, %v5674_v45  ;;  %v5799_v35 = vrot.slane %v5699_v19, %v1931_v13  ;;  %v5802_v56 = vrot.slane %v5699_v19, %v2123_v63  ;;  %v5822_v13 = vld [vmem:[#allocation2 + $0x80] sm:$0x1] }
 0x187   : > { %v4991_v2 = vpop.eup %4990  ;;  %v743_v62 = vmul.f32 %v4989_v26, %v5677_v46  ;;  %v4287_v57 = vmul.f32 -1.442695, %v5791_v43  ;;  %v5807_v61 = vrot.slane %v5699_v19, %v2280_v51  ;;  %v5810_v1 = vrot.slane %v5699_v19, %v2332_v27  ;;  %v5824_v19 = vld [vmem:[#allocation2 + $0x80] sm:$0x1]  ;;  %v2454_v51 = vld [vmem:[#allocation2 + $0x18] sm:$0xe] }
 0x188   : > { %v4993_v32 = vpop.eup %4992  ;;  %8337 = vst [vmem:[#allocation22_spill] sm:$0xff] %v5799_v35  ;;  %8338 = vst [vmem:[#allocation23_spill] sm:$0xff] %v5802_v56  ;;  %v1340_v45 = vmul.f32 %v4985_v20, %v5666_v39  ;;  %v1339_v3 = vmul.f32 %v4991_v2, %v5681_v50  ;;  %v5816_v5 = vadd.f32 %v1827_v36, %v1740_v28  ;;  %v786_v9 = vrot.slane %v784_v31, 7  ;;  %v5829_v20 = vld [vmem:[#allocation2 + $0x80] sm:$0x1] }
 0x189   : > { %v4995_v53 = vpop.eup %4994  ;;  %v5818_v8 = vadd.f32 %v1829_v37, %v1741_v30  ;;  %v742_v46 = vmul.f32 %v4993_v32, %v5670_v42  ;;  %v1643_v10 = vmul.f32 %v5711_v47, %v1625_v34  ;;  %v787_v14 = vshll.u32 %v757_v40, 16 }
 0x18a   : > { %v1338_v39 = vmul.f32 %v4995_v53, %v5685_v54  ;;  %v5827_v50 = vpack.c.bf16 %v1341_v48, %v1340_v45  ;;  %v1766_v15 = vunpack.c.l.bf16 %v1758_v58  ;;  %v1974_v17 = vunpack.c.l.bf16 %v1966_v60 }
 0x18b   : > { %v5831_v21 = vpack.c.bf16 %v743_v62, %v742_v46  ;;  %4996 = vpow2.f32 %v4287_v57  ;;  %v1784_v42 = vmul.f32 %v5736_v29, %v1625_v34  ;;  %v2322_v22 = vunpack.c.l.bf16 %v5814_v4  ;;  %v1897_v46 = vld [vmem:[#allocation2 + $0xc] sm:$0xff]  }
 0x18c   : > { %v5835_v23 = vpack.c.bf16 %v1339_v3, %v1338_v39  ;;  %v5838_v54 = vmul.f32 %v4815_v11, %v5604_v33  ;;  %v5842_v40 = vmul.f32 %v5744_v41, %v5736_v29  ;;  %v2911_v24 = vunpack.c.l.bf16 %v5822_v13  ;;  %v5886_v3 = vld [vmem:[#allocation8 + $0x8] ss:$0 sm:$0xff] }
 0x18d   : > { %v5846_v63 = vor.u32 %v787_v14, %v786_v9  ;;  %v1697_v26 = vrot.slane %v1643_v10, 1  ;;  %v5848_v27 = vunpack.c.l.bf16 %v4707_v18  ;;  %v5850_v2 = vunpack.c.h.bf16 %v4707_v18 }
 0x18e   : > { %8339 = vst [vmem:[#allocation24_spill] sm:$0xff] %v5835_v23  ;;  %8340 = vst [vmem:[#allocation25_spill] sm:$0xff] %v5838_v54  ;;  %v5854_v33 = vmul.f32 %v5736_v29, %v1766_v15  ;;  %v1990_v30 = vmul.f32 %v5756_v52, %v1974_v17  ;;  %v2114_v31 = vunpack.c.l.bf16 %v2106_v7  ;;  %v5859_v32 = vsel %vm5706_vm2, %v786_v9, 0 }
 0x18f   : > { %v1604_v34 = vmul.f32 %v5744_v41, %v5747_v44  ;;  %v1698_v36 = vsel %vm1683_vm3, %v1695_v0, %v1697_v26  ;;  %v1838_v37 = vrot.slane %v1784_v42, 2  ;;  %v2130_v48 = vmul.f32 %v5802_v56, %v1974_v17 }
 0x190   : > { %v8209_v53 = vrot.slane %v5842_v40, 2  ;;  %v5870_v62 = vmul.f32 %v5742_v38, %v5799_v35  ;;  %v5874_v57 = vmul.f32 %v5744_v41, %v5802_v56  ;;  %v2462_v58 = vunpack.c.l.bf16 %v2454_v51 }
 0x191   : > { %v2334_v60 = vmul.f32 %v5742_v38, %v5810_v1  ;;  %v2335_v49 = vmul.f32 %v5744_v41, %v5810_v1  ;;  %v3590_v0 = vmul.f32 %v5848_v27, %v5810_v1  ;;  %v5884_v45 = vmul.f32 %v5850_v2, %v5810_v1 }
 0x192   : > { %v1745_v4 = vadd.f32 %v1698_v36, %v1604_v34  ;;  %v5891_v9 = vmul.f32 %v5744_v41, %v5799_v35  ;;  %v5894_v11 = vmul.f32 %v5802_v56, %v2114_v31  ;;  %v2041_v10 = vrot.slane %v1990_v30, 1 }
 0x193   : > { %v2475_v39 = vmul.f32 %v5744_v41, %v5886_v3  ;;  %v3638_v14 = vrot.slane %v3590_v0, 1  ;;  %v8211_v15 = vrot.slane %v5884_v45, 1  ;;  %v1839_v17 = vsel %vm1824_vm4, %v8209_v53, %v1838_v37 }
 0x194   : > { %v8210_v18 = vrot.slane %v5874_v57, 2  ;;  %v2336_v42 = vmul.f32 %v5810_v1, %v2322_v22  ;;  %v2474_v7 = vmul.f32 %v5886_v3, %v2462_v58  ;;  %v2382_v26 = vrot.slane %v2334_v60, 1 }
 0x195   : > { %v2383_v51 = vrot.slane %v2335_v49, 1  ;;  %v2476_v30 = vmul.f32 %v5886_v3, %v2322_v22  ;;  %v5909_v31 = vsel %vm1683_vm3, %v3638_v14, %v8211_v15  ;;  %v5911_v34 = vadd.f32 %v1839_v17, %v1745_v4  ;;  %v1965_v4 = vld [vmem:[#allocation2 + $0x14] sm:$0x1] }
 0x196   : > { %8341 = vst [vmem:[#allocation26_spill] sm:$0xff] %v5909_v31  ;;  %v2181_v37 = vrot.slane %v2130_v48, 2  ;;  %v5916_v0 = vmul.f32 %v5742_v38, %v5807_v61  ;;  %v5923_v22 = vsel %vm1683_vm3, %v2039_v16, %v2041_v10  ;;  %v5927_v60 = vmul.f32 %v5744_v41, %v5807_v61  ;;  %v2105_v31 = vld [vmem:[#allocation2 + $0xc] sm:$0xe] }
 0x197   : > { %8342 = vst [vmem:[#allocation27_spill] sm:$0xff] %v5911_v34  ;;  %8344 = vst [vmem:[#allocation29_spill] sm:$0xff] %v5923_v22  ;;  %v2523_v49 = vrot.slane %v2475_v39, 2  ;;  %v2923_v48 = vmul.f32 %v5848_v27, %v5711_v47  ;;  %v2385_v14 = vrot.slane %v2336_v42, 1  ;;  %v2522_v17 = vrot.slane %v2474_v7, 2 }
 0x198   : > { %v5918_v58 = vpop.eup %4996  ;;  %v5934_v38 = vsel %vm1824_vm4, %v8210_v18, %v2181_v37  ;;  %v2924_v6 = vmul.f32 %v5850_v2, %v5711_v47  ;;  %v5939_v16 = vsel %vm1683_vm3, %v2382_v26, %v2383_v51  ;;  %v2525_v41 = vrot.slane %v2476_v30, 2  ;;  %v3039_v39 = vld [vmem:[#allocation2 + $0x78] sm:$0xe]  ;;  %v1757_v22 = vld [vmem:[#allocation2 + $0xc] sm:$0xe] }
 0x199   : > { %8343 = vst [vmem:[#allocation28_spill] sm:$0xff] %v5918_v58  ;;  %8345 = vst [vmem:[#allocation30_spill] sm:$0xff] %v5934_v38  ;;  %v2889_v10 = vmul.f32 %v5848_v27, %v5747_v44  ;;  %v1913_v36 = vunpack.c.l.bf16 %v1897_v46  ;;  %v5944_v53 = vsel %vm1683_vm3, %v2383_v51, %v2385_v14  ;;  %v2925_v42 = vmul.f32 %v2911_v24, %v5711_v47 }
 0x19a   : > { %v1914_v7 = vunpack.c.h.bf16 %v1897_v46  ;;  %v1973_v37 = vunpack.c.l.bf16 %v1965_v4  ;;  %v5950_v18 = vsel %vm1824_vm4, %v2523_v49, %v2525_v41  ;;  %v2890_v26 = vmul.f32 %v5850_v2, %v5747_v44  ;;  %v5966_v41 = vld [vmem:[#allocation2 + $0xc] sm:$0xff]  }
 0x19b   : > { %v2975_v30 = vrot.slane %v2923_v48, 1  ;;  %v1933_v15 = vmul.f32 %v5799_v35, %v1913_v36  ;;  %v5956_v28 = vsel %vm1824_vm4, %v2522_v17, %v2523_v49  ;;  %v2976_v51 = vrot.slane %v2924_v6, 1 }
 0x19c   : > { %v3047_v14 = vunpack.c.l.bf16 %v3039_v39  ;;  %v1934_v25 = vmul.f32 %v5799_v35, %v1914_v7  ;;  %v5961_v46 = vmul.f32 %v5850_v2, %v5736_v29  ;;  %v3061_v4 = vmul.f32 %v2911_v24, %v5736_v29 }
 0x19d   : > { %v1985_v48 = vmul.f32 %v5756_v52, %v1913_v36  ;;  %v1986_v49 = vmul.f32 %v5756_v52, %v1914_v7  ;;  %v2978_v17 = vrot.slane %v2925_v42, 1  ;;  %v1949_v6 = vadd.f32 %v1933_v15, %v5816_v5  ;;  %v1616_v36 = vld [vmem:[#allocation2 + $0x14] sm:$0x1] }
 0x19e   : > { %v1950_v39 = vadd.f32 %v1934_v25, %v5818_v8  ;;  %v1987_v43 = vmul.f32 %v5756_v52, %v1973_v37  ;;  %v2113_v34 = vunpack.c.l.bf16 %v2105_v31  ;;  %v2126_v38 = vmul.f32 %v5802_v56, %v1914_v7 }
 0x19f   : > { %v2033_v58 = vrot.slane %v1985_v48, 1  ;;  %v2034_v54 = vrot.slane %v1986_v49, 1  ;;  %v5975_v13 = vmul.f32 %v3047_v14, %v5736_v29  ;;  %v1581_v24 = vunpack.c.l.bf16 %v5966_v41 }
 0x1a0   : > { %v2036_v23 = vrot.slane %v1987_v43, 1  ;;  %v2127_v42 = vmul.f32 %v5802_v56, %v1973_v37  ;;  %v1582_v5 = vunpack.c.h.bf16 %v5966_v41  ;;  %v2125_v25 = vmul.f32 %v5802_v56, %v2113_v34 }
 0x1a1   : > { %v2035_v8 = vsel %vm1683_vm3, %v2033_v58, %v2034_v54  ;;  %v2174_v15 = vrot.slane %v2126_v38, 2  ;;  %v5984_v31 = vmul.f32 %v5848_v27, %v5799_v35  ;;  %v5989_v43 = vmul.f32 %v5850_v2, %v5799_v35 }
 0x1a2   : > { %v2037_v7 = vsel %vm1683_vm3, %v2034_v54, %v2036_v23  ;;  %v2089_v14 = vadd.f32 %v2035_v8, %v1949_v6  ;;  %v2176_v48 = vrot.slane %v2127_v42, 2  ;;  %v1624_v37 = vunpack.c.l.bf16 %v1616_v36  ;;  %v3374_v36 = vld [vmem:[#allocation2 + $0x78] sm:$0xe] }
 0x1a3   : > { %8346 = vst [vmem:[#allocation31_spill] sm:$0xff] %v5984_v31  ;;  %v2090_v49 = vadd.f32 %v2037_v7, %v1950_v39  ;;  %v2173_v41 = vrot.slane %v2125_v25, 2  ;;  %v2977_v58 = vsel %vm1683_vm3, %v2975_v30, %v2976_v51  ;;  %v2979_v34 = vsel %vm1683_vm3, %v2976_v51, %v2978_v17 }
 0x1a4   : > { %v8214_v38 = vrot.slane %v5961_v46, 2  ;;  %v2177_v31 = vsel %vm1824_vm4, %v2174_v15, %v2176_v48  ;;  %v1638_v23 = vmul.f32 %v5711_v47, %v1581_v24  ;;  %v1639_v54 = vmul.f32 %v5711_v47, %v1582_v5 }
 0x1a5   : > { %v2175_v6 = vsel %vm1824_vm4, %v2173_v41, %v2174_v15  ;;  %v2230_v42 = vadd.f32 %v2177_v31, %v2090_v49  ;;  %v3114_v8 = vrot.slane %v3061_v4, 2  ;;  %v6000_v39 = vmul.f32 %v5848_v27, %v5756_v52  ;;  %v3710_v41 = vld [vmem:[#allocation2 + $0x78] sm:$0xe] }
 0x1a6   : > { %v6004_v30 = vmul.f32 %v5850_v2, %v5756_v52  ;;  %v2229_v51 = vadd.f32 %v2175_v6, %v2089_v14  ;;  %v6006_v17 = vadd.f32 %v2977_v58, %v2889_v10  ;;  %v1640_v25 = vmul.f32 %v5711_v47, %v1624_v37 }
 0x1a7   : > { %v1765_v7 = vunpack.c.l.bf16 %v1757_v22  ;;  %v2299_v48 = vadd.f32 %v5927_v60, %v2230_v42  ;;  %v3026_v15 = vadd.f32 %v2979_v34, %v2890_v26  ;;  %v3115_v31 = vsel %vm1824_vm4, %v8214_v38, %v3114_v8  ;;  %v6024_v42 = vld [vmem:[%s8199_s5] ss:$0 sm:$0xff] }
 0x1a8   : > { %v2298_v49 = vadd.f32 %v5916_v0, %v2229_v51  ;;  %v8347_v14 = vunpack.c.l.bf16 %v5824_v19  ;;  %v1689_v58 = vrot.slane %v1638_v23, 1  ;;  %v1690_v6 = vrot.slane %v1639_v54, 1 }
 0x1a9   : > { %v2439_v22 = vadd.f32 %v5944_v53, %v2299_v48  ;;  %v3306_v60 = vrot.slane %v6000_v39, 1  ;;  %v3307_v26 = vrot.slane %v6004_v30, 1  ;;  %v3382_v34 = vunpack.c.l.bf16 %v3374_v36 }
 0x1aa   : > { %v3258_v10 = vmul.f32 %v8347_v14, %v5756_v52  ;;  %v2438_v0 = vadd.f32 %v5939_v16, %v2298_v49  ;;  %v1692_v8 = vrot.slane %v1640_v25, 1  ;;  %v1779_v51 = vmul.f32 %v5736_v29, %v1765_v7  ;;  %v6040_v16 = vld [vmem:[%s8200_s6] ss:$0 sm:$0xff] }
 0x1ab   : > { %v1780_v23 = vmul.f32 %v5736_v29, %v1582_v5  ;;  %v2579_v54 = vadd.f32 %v5950_v18, %v2439_v22  ;;  %v6032_v53 = vmul.f32 %v5850_v2, %v5802_v56  ;;  %v8348_v39 = vmov %v8347_v14 }
 0x1ac   : > { %v3394_v30 = vmul.f32 %v8348_v39, %v5802_v56  ;;  %v3718_v36 = vunpack.c.l.bf16 %v3710_v41  ;;  %v2578_v25 = vadd.f32 %v5956_v28, %v2438_v0  ;;  %v1691_v7 = vsel %vm1683_vm3, %v1689_v58, %v1690_v6 }
 0x1ad   : > { %v1693_v18 = vsel %vm1683_vm3, %v1690_v6, %v1692_v8  ;;  %v1781_v48 = vmul.f32 %v5736_v29, %v1624_v37  ;;  %v2601_v49 = vmul.f32 %v6024_v42, %v2579_v54  ;;  %v6047_v14 = vadd.f32 %v3115_v31, %v3026_v15 }
 0x1ae   : > { %v1601_v19 = vmul.f32 %v5747_v44, %v1581_v24  ;;  %v1602_v41 = vmul.f32 %v5747_v44, %v1582_v5  ;;  %v2600_v22 = vmul.f32 %v6024_v42, %v2578_v25  ;;  %v3727_v39 = vmul.f32 %v5850_v2, %v5886_v3 }
 0x1af   : > { %8349 = vst [vmem:[#allocation32_spill] sm:$0xff] %v6047_v14  ;;  %v1830_v28 = vrot.slane %v1779_v51, 2  ;;  %v1831_v0 = vrot.slane %v1780_v23, 2  ;;  %v6055_v58 = vadd.f32 %v6040_v16, %v2601_v49  ;;  %v3726_v37 = vmul.f32 %v5886_v3, %v3718_v36 }
 0x1b0   : > { %v1742_v6 = vadd.f32 %v1691_v7, %v1601_v19  ;;  %v1743_v8 = vadd.f32 %v1693_v18, %v1602_v41  ;;  %v6059_v15 = vadd.f32 %v6040_v16, %v2600_v22  ;;  %v8350_v24 = vunpack.c.l.bf16 %v5829_v20  ;;  %v6073_v18 = vld [vmem:[#allocation2 + $0x6c] sm:$0xff]  }
 0x1b1   : > { %v1833_v51 = vrot.slane %v1781_v48, 2  ;;  %v4395_v23 = vmul.f32 -1.442695, %v6055_v58  ;;  %v3309_v25 = vrot.slane %v3258_v10, 1  ;;  %v6069_v49 = vmul.f32 %v3382_v34, %v5802_v56 }
 0x1b2   : > { %v3592_v5 = vmul.f32 %v8350_v24, %v5810_v1  ;;  %v8351_v31 = vmov %v8350_v24  ;;  %v4394_v7 = vmul.f32 -1.442695, %v6059_v15  ;;  %v3775_v19 = vrot.slane %v3727_v39, 2 }
 0x1b3   : > { %v3728_v54 = vmul.f32 %v5886_v3, %v8351_v31  ;;  %v1832_v41 = vsel %vm1824_vm4, %v1830_v28, %v1831_v0  ;;  %v1834_v20 = vsel %vm1824_vm4, %v1831_v0, %v1833_v51  ;;  %4998 = vpow2.f32 %v4395_v23  ;;  %v6092_v0 = vld [vmem:[#allocation2 + $0x74] sm:$0x1]  ;;  %v6115_v51 = vld [vmem:[#allocation2 + $0x6c] sm:$0xff]  }
 0x1b4   : > { %v3774_v22 = vrot.slane %v3726_v37, 2  ;;  %v1883_v48 = vadd.f32 %v1832_v41, %v1742_v6  ;;  %v1884_v24 = vadd.f32 %v1834_v20, %v1743_v8  ;;  %5000 = vpow2.f32 %v4394_v7  ;;  %v6108_v8 = vld [vmem:[#allocation2 + $0x6c] sm:$0xe]  ;;  %v6117_v23 = vld [vmem:[#allocation2 + $0x74] sm:$0x1] }
 0x1b5   : > { %v3445_v10 = vrot.slane %v3394_v30, 2  ;;  %v3641_v31 = vrot.slane %v3592_v5, 1  ;;  %v3777_v34 = vrot.slane %v3728_v54, 2  ;;  %v8215_v4 = vunpack.c.l.bf16 %v6073_v18 }
 0x1b6   : > { %v6079_v38 = vsel %vm1683_vm3, %v3306_v60, %v3307_v26  ;;  %v6082_v36 = vsel %vm1683_vm3, %v3307_v26, %v3309_v25  ;;  %v6086_v39 = vmul.f32 %v5848_v27, %v5807_v61  ;;  %v6090_v28 = vmul.f32 %v5850_v2, %v5807_v61 }
 0x1b7   : > { %v8354_v37 = vrot.slane %v6032_v53, 2  ;;  %v8355_v26 = vrot.slane %v5884_v45, 1  ;;  %v6106_v27 = vsel %vm1824_vm4, %v3775_v19, %v3777_v34  ;;  %v6111_v2 = vsel %vm1824_vm4, %v3774_v22, %v3775_v19 }
 0x1b8   : > { %8352 = vst [vmem:[#allocation33_spill] sm:$0xff] %v6086_v39  ;;  %8353 = vst [vmem:[#allocation34_spill] sm:$0xff] %v6090_v28  ;;  %v1951_v5 = vadd.f32 %v5870_v62, %v1883_v48  ;;  %v1952_v54 = vadd.f32 %v5891_v9, %v1884_v24  ;;  %v840_v45 = vsel %vm5706_vm2, 0, %v5846_v63  ;;  %v6123_v25 = vunpack.c.h.bf16 %v6073_v18 }
 0x1b9   : > { %v6098_v60 = vsel %vm1824_vm4, %v8354_v37, %v3445_v10  ;;  %v6103_v6 = vsel %vm1683_vm3, %v8355_v26, %v3641_v31  ;;  %8357 = vst [vmem:[#allocation36_spill] sm:$0xff] %v6106_v27  ;;  %8358 = vst [vmem:[#allocation37_spill] sm:$0xff] %v6111_v2  ;;  %v6129_v19 = vmul.f32 %v5810_v1, %v8215_v4  ;;  %v2469_v9 = vunpack.c.l.bf16 %v6108_v8 }
 0x1ba   : > { %8356 = vst [vmem:[#allocation35_spill] sm:$0xff] %v6103_v6  ;;  %v4302_v62 = vcombine.low %v840_v45, %v840_v45  ;;  %v4303_v41 = vcombine.high %v840_v45, %v840_v45  ;;  %v4304_v20 = vcombine.low %v5859_v32, %v5859_v32  ;;  %v1380_v22 = vshrl.u32 %v5827_v50, 16 }
 0x1bb   : > { %v8216_v63 = vunpack.c.l.bf16 %v6115_v51  ;;  %v6137_v48 = vunpack.c.h.bf16 %v6115_v51  ;;  %v8217_v24 = vunpack.c.l.bf16 %v6117_v23  ;;  %v777_v10 = vshrl.u32 %v5831_v21, 16 }
 0x1bc   : > { %951 = vst [vmem:[#allocation2 + $0x30] sm:$0xf] %v4302_v62  ;;  %952 = vst [vmem:[#allocation2 + $0x34] sm:$0xf] %v4303_v41  ;;  %v1382_v31 = vrot.slane %v1380_v22, 7  ;;  %v1383_v34 = vshll.u32 %v5827_v50, 16  ;;  %v2091_v8 = vadd.f32 %v5787_v55, %v1951_v5 }
 0x1bd   : > { %953 = vst [vmem:[#allocation2 + $0x38] sm:$0x1] %v4304_v20  ;;  %v8359_v37 = vrot.slane %v5842_v40, 2  ;;  %v8360_v32 = vrot.slane %v5854_v33, 2  ;;  %v779_v45 = vrot.slane %v777_v10, 7  ;;  %v780_v30 = vshll.u32 %v5831_v21, 16 }
 0x1be   : > { %v8361_v41 = vrot.slane %v5874_v57, 2  ;;  %v8362_v20 = vrot.slane %v5894_v11, 2  ;;  %v6159_v40 = vmul.f32 %v5810_v1, %v6123_v25  ;;  %v1385_v33 = vor.u32 %v1383_v34, %v1382_v31  ;;  %v3038_v21 = vld [vmem:[#allocation2 + $0x6c] sm:$0xe] }
 0x1bf   : > { %v1837_v26 = vsel %vm1824_vm4, %v8360_v32, %v8359_v37  ;;  %v1441_v55 = vsel %vm5706_vm2, %v1382_v31, 0  ;;  %v782_v57 = vor.u32 %v780_v30, %v779_v45  ;;  %v847_v11 = vsel %vm5706_vm2, %v779_v45, 0 }
 0x1c0   : > { %v6150_v62 = vadd.f32 %v1837_v26, %v5776_v12  ;;  %v2180_v50 = vsel %vm1824_vm4, %v8362_v20, %v8361_v41  ;;  %v2921_v12 = vmul.f32 %v6137_v48, %v5711_v47  ;;  %v4378_v22 = vcombine.low %v1441_v55, %v1441_v55  ;;  %v4999_v10 = vpop.eup %4998 }
 0x1c1   : > { %v6163_v5 = vadd.f32 %v2180_v50, %v2091_v8  ;;  %v2920_v37 = vmul.f32 %v8216_v63, %v5711_v47  ;;  %v2922_v31 = vmul.f32 %v8217_v24, %v5711_v47  ;;  %v1433_v34 = vsel %vm5706_vm2, 0, %v1385_v33  ;;  %v5001_v26 = vpop.eup %5000  ;;  %v8363_v63 = vld [vmem:[#allocation29_spill] sm:$0xff] }
 0x1c2   : > { %v4301_v32 = vcombine.low %v847_v11, %v847_v11  ;;  %v2687_v8 = vadd.f32 1.0, %v4999_v10  ;;  %v4376_v41 = vcombine.low %v1433_v34, %v1433_v34  ;;  %v4377_v30 = vcombine.high %v1433_v34, %v1433_v34  ;;  %1546 = vst [vmem:[#allocation2 + $0x98] sm:$0x1] %v4378_v22 }
 0x1c3   : > { %v839_v45 = vsel %vm5706_vm2, 0, %v782_v57  ;;  %v2686_v20 = vadd.f32 1.0, %v5001_v26  ;;  %v3046_v50 = vunpack.c.l.bf16 %v3038_v21  ;;  %v6180_v7 = vadd.f32 %v8363_v63, %v1952_v54  ;;  %v4691_v24 = vld [vmem:[#allocation2 + $0x30] sm:$0xff]  }
 0x1c4   : > { %v4299_v55 = vcombine.low %v839_v45, %v839_v45  ;;  %v4300_v4 = vcombine.high %v839_v45, %v839_v45  ;;  %950 = vst [vmem:[#allocation2 + $0x2c] sm:$0x1] %v4301_v32  ;;  %5002 = vrcp.f32 %v2687_v8  ;;  %v8364_v33 = vunpack.c.l.bf16 %v6092_v0  ;;  %1544 = vst [vmem:[#allocation2 + $0x90] sm:$0xf] %v4376_v41 }
 0x1c5   : > { %v2971_v10 = vrot.slane %v2921_v12, 1  ;;  %1545 = vst [vmem:[#allocation2 + $0x94] sm:$0xf] %v4377_v30  ;;  %5004 = vrcp.f32 %v2686_v20  ;;  %v2970_v22 = vrot.slane %v2920_v37, 1  ;;  %v6185_v57 = vunpack.c.l.bf16 %v4691_v24 }
 0x1c6   : > { %v2357_v11 = vmul.f32 %v5810_v1, %v8364_v33  ;;  %v6187_v21 = vunpack.c.h.bf16 %v4691_v24  ;;  %948 = vst [vmem:[#allocation2 + $0x24] sm:$0xf] %v4299_v55  ;;  %949 = vst [vmem:[#allocation2 + $0x28] sm:$0xf] %v4300_v4  ;;  %v2417_v54 = vrot.slane %v6129_v19, 1  ;;  %v2495_v63 = vmul.f32 %v5886_v3, %v2469_v9 }
 0x1c7   : > { %v2973_v34 = vrot.slane %v2922_v31, 1  ;;  %v3057_v32 = vmul.f32 %v6137_v48, %v5736_v29  ;;  %v2418_v12 = vrot.slane %v6159_v40, 1  ;;  %v3056_v26 = vmul.f32 %v3046_v50, %v5736_v29 }
 0x1c8   : > { %8365 = vst [vmem:[#allocation29_spill] sm:$0xff] %v6187_v21  ;;  %v1647_v37 = vmul.f32 %v6185_v57, %v5711_v47  ;;  %v6199_v24 = vmul.f32 %v6187_v21, %v5711_v47  ;;  %v2496_v4 = vmul.f32 %v5886_v3, %v6123_v25  ;;  %v8367_v19 = vmov %v8364_v33  ;;  %v3173_v33 = vld [vmem:[#allocation2 + $0x6c] sm:$0xff]  }
 0x1c9   : > { %v2497_v9 = vmul.f32 %v5886_v3, %v8367_v19  ;;  %v2974_v31 = vsel %vm1683_vm3, %v2971_v10, %v2973_v34  ;;  %v8368_v40 = vunpack.c.l.bf16 %v6117_v23  ;;  %v2888_v41 = vmul.f32 %v6137_v48, %v5747_v44  ;;  %v3237_v48 = vld [vmem:[#allocation2 + $0x74] sm:$0x1] }
 0x1ca   : > { %8366 = vst [vmem:[#allocation38_spill] sm:$0xff] %v6199_v24  ;;  %v2972_v30 = vsel %vm1683_vm3, %v2970_v22, %v2971_v10  ;;  %v1704_v45 = vrot.slane %v1647_v37, 1  ;;  %v8218_v20 = vrot.slane %v6199_v24, 1  ;;  %v8369_v50 = vunpack.c.l.bf16 %v6115_v51 }
 0x1cb   : > { %v3058_v8 = vmul.f32 %v8368_v40, %v5736_v29  ;;  %v3107_v55 = vrot.slane %v3057_v32, 2  ;;  %v1607_v34 = vmul.f32 %v6185_v57, %v5747_v44  ;;  %v1994_v23 = vmul.f32 %v6185_v57, %v5756_v52 }
 0x1cc   : > { %v2887_v0 = vmul.f32 %v8369_v50, %v5747_v44  ;;  %v3024_v19 = vadd.f32 %v2974_v31, %v2888_v41  ;;  %v3106_v40 = vrot.slane %v3056_v26, 2  ;;  %v1706_v10 = vsel %vm1683_vm3, %v1704_v45, %v8218_v20 }
 0x1cd   : > { %v6226_v22 = vmul.f32 %v6187_v21, %v5756_v52  ;;  %v3109_v32 = vrot.slane %v3058_v8, 2  ;;  %v6228_v37 = vadd.f32 %v1706_v10, %v1607_v34  ;;  %v2048_v50 = vrot.slane %v1994_v23, 1 }
 0x1ce   : > { %v3023_v51 = vadd.f32 %v2972_v30, %v2887_v0  ;;  %v2557_v27 = vrot.slane %v2495_v63, 2  ;;  %v2558_v2 = vrot.slane %v2496_v4, 2  ;;  %v3189_v6 = vunpack.c.l.bf16 %v3173_v33  ;;  %v4708_v30 = vld [vmem:[#allocation2 + $0x90] sm:$0xff]  }
 0x1cf   : > { %8370 = vst [vmem:[#allocation39_spill] sm:$0xff] %v6226_v22  ;;  %8371 = vst [vmem:[#allocation40_spill] sm:$0xff] %v6228_v37  ;;  %v8220_v31 = vrot.slane %v6226_v22, 1  ;;  %v2420_v26 = vrot.slane %v2357_v11, 1  ;;  %v3110_v41 = vsel %vm1824_vm4, %v3107_v55, %v3109_v32  ;;  %v3190_v28 = vunpack.c.h.bf16 %v3173_v33  ;;  %v8388_v32 = vld [vmem:[#allocation31_spill] sm:$0xff] }
 0x1d0   : > { %v3245_v39 = vunpack.c.l.bf16 %v3237_v48  ;;  %v2560_v45 = vrot.slane %v2497_v9, 2  ;;  %v3108_v20 = vsel %vm1824_vm4, %v3106_v40, %v3107_v55  ;;  %v3160_v24 = vadd.f32 %v3110_v41, %v3024_v19  ;;  %v3373_v55 = vld [vmem:[#allocation2 + $0x6c] sm:$0xe]  ;;  %v1760_v41 = vld [vmem:[#allocation2 + $0x30] sm:$0xe] }
 0x1d1   : > { %v6236_v8 = vsel %vm1683_vm3, %v2048_v50, %v8220_v31  ;;  %v8373_v63 = vunpack.c.l.bf16 %v6073_v18  ;;  %v6245_v11 = vmul.f32 %v5807_v61, %v6123_v25  ;;  %v6248_v9 = vsel %vm1683_vm3, %v2417_v54, %v2418_v12  ;;  %v5003_v33 = vpop.eup %5002  ;;  %v2456_v31 = vld [vmem:[#allocation2 + $0x30] sm:$0xe] }
 0x1d2   : > { %8372 = vst [vmem:[#allocation41_spill] sm:$0xff] %v6236_v8  ;;  %8376 = vst [vmem:[#allocation44_spill] sm:$0xff] %v6248_v9  ;;  %v3159_v0 = vadd.f32 %v3108_v20, %v3023_v51  ;;  %v6251_v34 = vsel %vm1683_vm3, %v2418_v12, %v2420_v26  ;;  %v6254_v23 = vsel %vm1824_vm4, %v2557_v27, %v2558_v2  ;;  %v5005_v25 = vpop.eup %5004  ;;  %v6271_v12 = vunpack.c.l.bf16 %v4708_v30 }
 0x1d3   : > { %v6241_v4 = vmul.f32 %v5807_v61, %v8373_v63  ;;  %8375 = vst [vmem:[#allocation43_spill] sm:$0xff] %v6245_v11  ;;  %8377 = vst [vmem:[#allocation45_spill] sm:$0xff] %v6251_v34  ;;  %v6257_v18 = vsel %vm1824_vm4, %v2558_v2, %v2560_v45  ;;  %v6260_v19 = vmul.f32 %v3189_v6, %v5756_v52  ;;  %v3381_v48 = vunpack.c.l.bf16 %v3373_v55  ;;  %v2108_v45 = vld [vmem:[#allocation2 + $0x30] sm:$0xe]  ;;  %v6320_v55 = vld [vmem:[#allocation2 + $0x38] sm:$0x1] }
 0x1d4   : > { %8378 = vst [vmem:[#allocation46_spill] sm:$0xff] %v6254_v23  ;;  %8379 = vst [vmem:[#allocation47_spill] sm:$0xff] %v6257_v18  ;;  %v6263_v40 = vmul.f32 %v5003_v33, %v6055_v58  ;;  %v6266_v54 = vmul.f32 %v3190_v28, %v5756_v52  ;;  %v6269_v20 = vmul.f32 %v3245_v39, %v5756_v52  ;;  %v6287_v26 = vunpack.c.h.bf16 %v4708_v30  ;;  %v8391_v63 = vld [vmem:[#allocation24_spill] sm:$0xff] }
 0x1d5   : > { %8374 = vst [vmem:[#allocation42_spill] sm:$0xff] %v6241_v4  ;;  %8380 = vst [vmem:[#allocation48_spill] sm:$0xff] %v6260_v19  ;;  %v6274_v27 = vmul.f32 %v5005_v25, %v6059_v15  ;;  %v3224_v2 = vadd.f32 %v5989_v43, %v3160_v24  ;;  %v6278_v10 = vmul.f32 %v3190_v28, %v5802_v56  ;;  %v8396_v25 = vrot.slane %v5961_v46, 2 }
 0x1d6   : > { %8381 = vst [vmem:[#allocation49_spill] sm:$0xff] %v6263_v40  ;;  %8382 = vst [vmem:[#allocation50_spill] sm:$0xff] %v6266_v54  ;;  %v6281_v58 = vmul.f32 %v3189_v6, %v5799_v35  ;;  %v6284_v51 = vmul.f32 %v3190_v28, %v5799_v35  ;;  %v3223_v50 = vadd.f32 %v8388_v32, %v3159_v0  ;;  %v1373_v6 = vshrl.u32 %v8391_v63, 16  ;;  %v2316_v32 = vld [vmem:[#allocation2 + $0x38] sm:$0x1]  ;;  %v8394_v28 = vld [vmem:[#allocation30_spill] sm:$0xff] }
 0x1d7   : > { %8383 = vst [vmem:[#allocation51_spill] sm:$0xff] %v6269_v20  ;;  %8384 = vst [vmem:[#allocation52_spill] sm:$0xff] %v6274_v27  ;;  %v4565_v15 = vpack.c.bf16 %v6263_v40, %v6274_v27  ;;  %v6293_v24 = vmul.f32 %v3245_v39, %v5802_v56  ;;  %v2929_v30 = vmul.f32 %v6271_v12, %v5711_v47  ;;  %v1768_v40 = vunpack.c.l.bf16 %v1760_v41 }
 0x1d8   : > { %8385 = vst [vmem:[#allocation53_spill] sm:$0xff] %v6278_v10  ;;  %8386 = vst [vmem:[#allocation54_spill] sm:$0xff] %v6281_v58  ;;  %v6302_v0 = vmul.f32 %v6287_v26, %v5711_v47  ;;  %v6310_v39 = vadd.f32 %v6082_v36, %v3224_v2  ;;  %v6313_v33 = vmul.f32 %v3381_v48, %v5802_v56  ;;  %v2116_v27 = vunpack.c.l.bf16 %v2108_v45 }
 0x1d9   : > { %8387 = vst [vmem:[#allocation55_spill] sm:$0xff] %v6284_v51  ;;  %8389 = vst [vmem:[#allocation31_spill] sm:$0xff] %v6287_v26  ;;  %v6318_v43 = vadd.f32 %v8394_v28, %v6180_v7  ;;  %v2985_v18 = vrot.slane %v2929_v30, 1  ;;  %v2893_v36 = vmul.f32 %v6271_v12, %v5747_v44  ;;  %v1375_v2 = vrot.slane %v1373_v6, 7 }
 0x1da   : > { %8390 = vst [vmem:[#allocation56_spill] sm:$0xff] %v6293_v24  ;;  %8392 = vst [vmem:[#allocation24_spill] sm:$0xff] %v6302_v0  ;;  %v1376_v48 = vshll.u32 %v8391_v63, 16  ;;  %v8397_v23 = vrot.slane %v5975_v13, 2  ;;  %v2324_v28 = vunpack.c.l.bf16 %v2316_v32  ;;  %v2464_v34 = vunpack.c.l.bf16 %v2456_v31  ;;  %v3041_v63 = vld [vmem:[#allocation2 + $0x90] sm:$0xe] }
 0x1db   : > { %4566 = vst [vmem:[%s6306_s18] sm:$0xff] %v4565_v15   ;;  %8393 = vst [vmem:[#allocation57_spill] sm:$0xff] %v6313_v33  ;;  %v8223_v15 = vrot.slane %v6302_v0, 1  ;;  %v3262_v45 = vmul.f32 %v6271_v12, %v5756_v52  ;;  %v8224_v6 = vunpack.c.l.bf16 %v6320_v55  ;;  %v6343_v46 = vmul.f32 %v6287_v26, %v5756_v52 }
 0x1dc   : > { %8395 = vst [vmem:[#allocation30_spill] sm:$0xff] %v6320_v55  ;;  %v6331_v7 = vsel %vm1824_vm4, %v8397_v23, %v8396_v25  ;;  %v6346_v13 = vadd.f32 %v6079_v38, %v3223_v50  ;;  %v6349_v31 = vmul.f32 %v5736_v29, %v1768_v40  ;;  %v6353_v23 = vmul.f32 %v6187_v21, %v5736_v29 }
 0x1dd   : > { %v2987_v41 = vsel %vm1683_vm3, %v2985_v18, %v8223_v15  ;;  %8399 = vst [vmem:[#allocation59_spill] sm:$0xff] %v6343_v46  ;;  %v6356_v18 = vmul.f32 %v5802_v56, %v2116_v27  ;;  %v3316_v25 = vrot.slane %v3262_v45, 1  ;;  %v2340_v32 = vmul.f32 %v6185_v57, %v5810_v1 }
 0x1de   : > { %v6339_v30 = vadd.f32 %v2987_v41, %v2893_v36  ;;  %8400 = vst [vmem:[#allocation60_spill] sm:$0xff] %v6349_v31  ;;  %8401 = vst [vmem:[#allocation61_spill] sm:$0xff] %v6353_v23  ;;  %v2341_v36 = vmul.f32 %v6187_v21, %v5810_v1  ;;  %v2481_v38 = vmul.f32 %v6187_v21, %v5886_v3  ;;  %v8226_v40 = vrot.slane %v6343_v46, 1 }
 0x1df   : > { %8402 = vst [vmem:[#allocation62_spill] sm:$0xff] %v6356_v18  ;;  %v2342_v50 = vmul.f32 %v5810_v1, %v2324_v28  ;;  %v2480_v41 = vmul.f32 %v5886_v3, %v2464_v34  ;;  %v6367_v15 = vor.u32 %v1376_v48, %v1375_v2  ;;  %v6371_v27 = vsel %vm5706_vm2, %v1375_v2, 0  ;;  %v1569_v34 = vld [vmem:[#allocation2 + $0x24] sm:$0xff]  }
 0x1e0   : > { %8398 = vst [vmem:[#allocation58_spill] sm:$0xff] %v6339_v30  ;;  %v6376_v45 = vmul.f32 %v5711_v47, %v8224_v6  ;;  %v2482_v9 = vmul.f32 %v5886_v3, %v2324_v28  ;;  %v3049_v11 = vunpack.c.l.bf16 %v3041_v63  ;;  %v6382_v4 = vsel %vm1683_vm3, %v3316_v25, %v8226_v40  ;;  %v3376_v28 = vld [vmem:[#allocation2 + $0x90] sm:$0xe] }
 0x1e1   : > { %8404 = vst [vmem:[#allocation64_spill] sm:$0xff] %v6382_v4  ;;  %v6388_v2 = vmul.f32 %v6185_v57, %v5799_v35  ;;  %v6392_v6 = vmul.f32 %v6187_v21, %v5802_v56  ;;  %v2392_v58 = vrot.slane %v2340_v32, 1  ;;  %v2393_v46 = vrot.slane %v2341_v36, 1 }
 0x1e2   : > { %8403 = vst [vmem:[#allocation63_spill] sm:$0xff] %v6376_v45  ;;  %v2533_v25 = vrot.slane %v2481_v38, 2  ;;  %v2395_v40 = vrot.slane %v2342_v50, 1  ;;  %v2532_v0 = vrot.slane %v2480_v41, 2  ;;  %v6397_v48 = vmul.f32 %v6287_v26, %v5736_v29 }
 0x1e3   : > { %8405 = vst [vmem:[#allocation65_spill] sm:$0xff] %v6392_v6  ;;  %v1585_v51 = vunpack.c.l.bf16 %v1569_v34  ;;  %v2535_v22 = vrot.slane %v2482_v9, 2  ;;  %v6400_v10 = vmul.f32 %v3049_v11, %v5736_v29  ;;  %v3384_v20 = vunpack.c.l.bf16 %v3376_v28  ;;  %v1759_v9 = vld [vmem:[#allocation2 + $0x24] sm:$0xe] }
 0x1e4   : > { %8406 = vst [vmem:[#allocation66_spill] sm:$0xff] %v6397_v48  ;;  %v6402_v33 = vunpack.c.h.bf16 %v1569_v34  ;;  %v6407_v32 = vmul.f32 %v6185_v57, %v5807_v61  ;;  %v6411_v36 = vmul.f32 %v6187_v21, %v5807_v61  ;;  %v6415_v38 = vmul.f32 %v6287_v26, %v5802_v56  ;;  %v3712_v57 = vld [vmem:[#allocation2 + $0x90] sm:$0xe]  ;;  %v1901_v28 = vld [vmem:[#allocation2 + $0x24] sm:$0xff]  }
 0x1e5   : > { %8407 = vst [vmem:[#allocation67_spill] sm:$0xff] %v6400_v10  ;;  %v6418_v11 = vsel %vm1683_vm3, %v2392_v58, %v2393_v46  ;;  %v6421_v50 = vsel %vm1683_vm3, %v2393_v46, %v2395_v40  ;;  %v6424_v41 = vsel %vm1824_vm4, %v2533_v25, %v2535_v22  ;;  %v1644_v34 = vmul.f32 %v5711_v47, %v1585_v51  ;;  %v1967_v46 = vld [vmem:[#allocation2 + $0x2c] sm:$0x1] }
 0x1e6   : > { %8408 = vst [vmem:[#allocation68_spill] sm:$0xff] %v6402_v33  ;;  %8409 = vst [vmem:[#allocation69_spill] sm:$0xff] %v6415_v38  ;;  %v6428_v63 = vsel %vm1824_vm4, %v2532_v0, %v2533_v25  ;;  %v6433_v21 = vmul.f32 %v6271_v12, %v5799_v35  ;;  %v6437_v58 = vmul.f32 %v5711_v47, %v6402_v33  ;;  %v6447_v25 = vld [vmem:[#allocation2 + $0x98] sm:$0x1]  ;;  %v1767_v19 = vunpack.c.l.bf16 %v1759_v9 }
 0x1e7   : > { %v6441_v40 = vmul.f32 %v3384_v20, %v5802_v56  ;;  %v6445_v0 = vmul.f32 %v6271_v12, %v5807_v61  ;;  %v6452_v55 = vmul.f32 %v6287_v26, %v5807_v61  ;;  %v3720_v45 = vunpack.c.l.bf16 %v3712_v57 }
 0x1e8   : > { %8410 = vst [vmem:[#allocation70_spill] sm:$0xff] %v6433_v21  ;;  %8411 = vst [vmem:[#allocation71_spill] sm:$0xff] %v6437_v58  ;;  %v1917_v24 = vunpack.c.l.bf16 %v1901_v28  ;;  %v1699_v4 = vrot.slane %v1644_v34, 1  ;;  %v1918_v20 = vunpack.c.h.bf16 %v1901_v28  ;;  %v1975_v30 = vunpack.c.l.bf16 %v1967_v46  ;;  %v2107_v46 = vld [vmem:[#allocation2 + $0x24] sm:$0xe] }
 0x1e9   : > { %8412 = vst [vmem:[#allocation72_spill] sm:$0xff] %v6445_v0  ;;  %8413 = vst [vmem:[#allocation73_spill] sm:$0xff] %v6452_v55  ;;  %v6458_v48 = vmul.f32 %v6271_v12, %v5810_v1  ;;  %v6462_v9 = vmul.f32 %v6287_v26, %v5810_v1  ;;  %v6467_v57 = vmul.f32 %v6287_v26, %v5886_v3  ;;  %v8414_v18 = vrot.slane %v6437_v58, 1  ;;  %v2248_v21 = vld [vmem:[#allocation2 + $0x24] sm:$0xff]  }
 0x1ea   : > { %v1937_v54 = vmul.f32 %v5799_v35, %v1917_v24  ;;  %v6470_v34 = vmul.f32 %v5736_v29, %v1767_v19  ;;  %v6474_v28 = vmul.f32 %v5736_v29, %v6402_v33  ;;  %v1938_v12 = vmul.f32 %v5799_v35, %v1918_v20  ;;  %v8415_v33 = vld [vmem:[#allocation27_spill] sm:$0xff] }
 0x1eb   : > { %v6478_v10 = vmul.f32 %v5886_v3, %v3720_v45  ;;  %v1605_v22 = vmul.f32 %v5747_v44, %v1585_v51  ;;  %v1991_v38 = vmul.f32 %v5756_v52, %v1917_v24  ;;  %v1992_v26 = vmul.f32 %v5756_v52, %v1918_v20 }
 0x1ec   : > { %v1701_v19 = vsel %vm1683_vm3, %v1699_v4, %v8414_v18  ;;  %v1953_v6 = vadd.f32 %v1937_v54, %v6150_v62  ;;  %v1954_v8 = vadd.f32 %v1938_v12, %v8415_v33  ;;  %v1993_v37 = vmul.f32 %v5756_v52, %v1975_v30  ;;  %v2315_v18 = vld [vmem:[#allocation2 + $0x2c] sm:$0x1]  ;;  %v2455_v12 = vld [vmem:[#allocation2 + $0x24] sm:$0xe] }
 0x1ed   : > { %v2043_v55 = vrot.slane %v1991_v38, 1  ;;  %v2044_v45 = vrot.slane %v1992_v26, 1  ;;  %v2115_v0 = vunpack.c.l.bf16 %v2107_v46  ;;  %v2132_v51 = vmul.f32 %v5802_v56, %v1918_v20 }
 0x1ee   : > { %v2046_v31 = vrot.slane %v1993_v37, 1  ;;  %v2133_v58 = vmul.f32 %v5802_v56, %v1975_v30  ;;  %v2264_v33 = vunpack.c.l.bf16 %v2248_v21  ;;  %v6495_v38 = vadd.f32 %v1701_v19, %v1605_v22 }
 0x1ef   : > { %v2045_v4 = vsel %vm1683_vm3, %v2043_v55, %v2044_v45  ;;  %v2131_v62 = vmul.f32 %v5802_v56, %v2115_v0  ;;  %v2184_v54 = vrot.slane %v2132_v51, 2  ;;  %v2265_v14 = vunpack.c.h.bf16 %v2248_v21 }
 0x1f0   : > { %v2047_v26 = vsel %vm1683_vm3, %v2044_v45, %v2046_v31  ;;  %v2093_v20 = vadd.f32 %v2045_v4, %v1953_v6  ;;  %v2186_v46 = vrot.slane %v2133_v58, 2  ;;  %v2284_v37 = vmul.f32 %v5807_v61, %v2264_v33 }
 0x1f1   : > { %v2094_v24 = vadd.f32 %v2047_v26, %v1954_v8  ;;  %v2183_v23 = vrot.slane %v2131_v62, 2  ;;  %v2323_v55 = vunpack.c.l.bf16 %v2315_v18  ;;  %v2337_v0 = vmul.f32 %v5810_v1, %v2264_v33 }
 0x1f2   : > { %v2187_v30 = vsel %vm1824_vm4, %v2184_v54, %v2186_v46  ;;  %v2463_v51 = vunpack.c.l.bf16 %v2455_v12  ;;  %v2285_v22 = vmul.f32 %v5807_v61, %v2265_v14  ;;  %v2300_v31 = vadd.f32 %v2284_v37, %v6163_v5 }
 0x1f3   : > { %v2185_v56 = vsel %vm1824_vm4, %v2183_v23, %v2184_v54  ;;  %v2234_v44 = vadd.f32 %v2187_v30, %v2094_v24  ;;  %v2338_v8 = vmul.f32 %v5810_v1, %v2265_v14  ;;  %v2339_v21 = vmul.f32 %v5810_v1, %v2323_v55 }
 0x1f4   : > { %v2233_v6 = vadd.f32 %v2185_v56, %v2093_v20  ;;  %v2387_v58 = vrot.slane %v2337_v0, 1  ;;  %v2301_v19 = vadd.f32 %v2285_v22, %v6318_v43  ;;  %v2477_v4 = vmul.f32 %v5886_v3, %v2463_v51 }
 0x1f5   : > { %v2303_v45 = vadd.f32 %v6411_v36, %v2234_v44  ;;  %v2478_v62 = vmul.f32 %v5886_v3, %v2265_v14  ;;  %v2388_v24 = vrot.slane %v2338_v8, 1  ;;  %v2390_v54 = vrot.slane %v2339_v21, 1 }
 0x1f6   : > { %v2302_v23 = vadd.f32 %v6407_v32, %v2233_v6  ;;  %v2479_v5 = vmul.f32 %v5886_v3, %v2323_v55  ;;  %v2527_v33 = vrot.slane %v2477_v4, 2  ;;  %v1432_v43 = vsel %vm5706_vm2, 0, %v6367_v15 }
 0x1f7   : > { %v2443_v56 = vadd.f32 %v6421_v50, %v2303_v45  ;;  %v2528_v18 = vrot.slane %v2478_v62, 2  ;;  %v2389_v44 = vsel %vm1683_vm3, %v2387_v58, %v2388_v24  ;;  %v2391_v36 = vsel %vm1683_vm3, %v2388_v24, %v2390_v54  ;;  %v565_v62 = vpop.f32.mrf.mxu0 }
 0x1f8   : > { %v2442_v14 = vadd.f32 %v6418_v11, %v2302_v23  ;;  %v2530_v12 = vrot.slane %v2479_v5, 2  ;;  %v2440_v32 = vadd.f32 %v2389_v44, %v2300_v31  ;;  %v2441_v26 = vadd.f32 %v2391_v36, %v2301_v19  ;;  %v1161_v36 = vpop.f32.mrf.mxu1 }
 0x1f9   : > { %v2529_v20 = vsel %vm1824_vm4, %v2527_v33, %v2528_v18  ;;  %v2583_v46 = vadd.f32 %v6424_v41, %v2443_v56  ;;  %v4373_v30 = vcombine.low %v1432_v43, %v1432_v43  ;;  %v4374_v55 = vcombine.high %v1432_v43, %v1432_v43 }
 0x1fa   : > { %v2531_v50 = vsel %vm1824_vm4, %v2528_v18, %v2530_v12  ;;  %v2582_v37 = vadd.f32 %v6428_v63, %v2442_v14  ;;  %v2580_v15 = vadd.f32 %v2529_v20, %v2440_v32  ;;  %v4375_v11 = vcombine.low %v6371_v27, %v6371_v27 }
 0x1fb   : > { %v2581_v0 = vadd.f32 %v2531_v50, %v2441_v26  ;;  %v2605_v51 = vmul.f32 %v6024_v42, %v2583_v46  ;;  %v8416_v22 = vunpack.c.l.bf16 %v6447_v25  ;;  %v3648_v6 = vrot.slane %v6458_v48, 1  ;;  %1541 = vst [vmem:[#allocation2 + $0x84] sm:$0xf] %v4373_v30  ;;  %1542 = vst [vmem:[#allocation2 + $0x88] sm:$0xf] %v4374_v55  ;;  %v8420_v50 = vld [vmem:[#allocation25_spill] sm:$0xff] }
 0x1fc   : > { %v2604_v63 = vmul.f32 %v6024_v42, %v2582_v37  ;;  %v3649_v21 = vrot.slane %v6462_v9, 1  ;;  %v2602_v58 = vmul.f32 %v6024_v42, %v2580_v15  ;;  %1543 = vst [vmem:[#allocation2 + $0x8c] sm:$0x1] %v4375_v11  ;;  %v3784_v48 = vrot.slane %v6478_v10, 2  ;;  %v6586_v46 = vld [vmem:[%s8197_s3] ss:$0 sm:$0xff] }
 0x1fd   : > { %v3598_v31 = vmul.f32 %v8416_v22, %v5810_v1  ;;  %v8417_v41 = vmov %v8416_v22  ;;  %v2603_v27 = vmul.f32 %v6024_v42, %v2581_v0  ;;  %v6538_v19 = vadd.f32 %v6040_v16, %v2605_v51 }
 0x1fe   : > { %v3734_v8 = vmul.f32 %v5886_v3, %v8417_v41  ;;  %v3785_v25 = vrot.slane %v6467_v57, 2  ;;  %v8418_v3 = vrot.slane %v6474_v28, 2  ;;  %v8419_v45 = vrot.slane %v6470_v34, 2 }
 0x1ff   : > { %v6548_v9 = vadd.f32 %v6040_v16, %v2604_v63  ;;  %v6552_v23 = vadd.f32 %v6040_v16, %v2602_v58  ;;  %v6555_v24 = vadd.f32 %v6040_v16, %v2603_v27  ;;  %v4399_v10 = vmul.f32 -1.442695, %v6538_v19  ;;  %v8426_v27 = vld [vmem:[#allocation28_spill] sm:$0xff] }
 0x200   : > { %v1842_v4 = vsel %vm1824_vm4, %v8419_v45, %v8418_v3  ;;  %v3651_v54 = vrot.slane %v3598_v31, 1  ;;  %v3787_v34 = vrot.slane %v3734_v8, 2  ;;  %v6569_v18 = vsel %vm1683_vm3, %v3648_v6, %v3649_v21  ;;  %v4816_v3 = vpop.f32.mrf.mxu1 }
 0x201   : > { %v1887_v42 = vadd.f32 %v1842_v4, %v6495_v38  ;;  %v4398_v5 = vmul.f32 -1.442695, %v6548_v9  ;;  %v4396_v56 = vmul.f32 -1.442695, %v6552_v23  ;;  %v4397_v33 = vmul.f32 -1.442695, %v6555_v24 }
 0x202   : > { %5006 = vpow2.f32 %v4399_v10  ;;  %v6565_v38 = vld [vmem:[%s8196_s2] ss:$0 sm:$0xff]  ;;  %v6572_v43 = vsel %vm1683_vm3, %v3649_v21, %v3651_v54  ;;  %v6575_v44 = vsel %vm1824_vm4, %v3785_v25, %v3787_v34  ;;  %v6578_v14 = vsel %vm1824_vm4, %v3784_v48, %v3785_v25  ;;  %v2859_v32 = vld [vmem:[#allocation2 + $0x84] sm:$0xff]  }
 0x203   : > { %v611_v16 = vmul.f32 %v6565_v38, %v565_v62  ;;  %5008 = vpow2.f32 %v4398_v5  ;;  %v6581_v12 = vadd.f32 %v6388_v2, %v1887_v42  ;;  %v3040_v26 = vld [vmem:[#allocation2 + $0x84] sm:$0xe]  ;;  %v6590_v37 = vadd.f32 %v6586_v46, %v8420_v50  ;;  %v4784_v2 = vpop.f32.mrf.mxu0  ;;  %v3239_v11 = vld [vmem:[#allocation2 + $0x8c] sm:$0x1] }
 0x204   : > { %5010 = vpow2.f32 %v4396_v56  ;;  %v3177_v20 = vld [vmem:[#allocation2 + $0x84] sm:$0xff]   ;;  %v2875_v30 = vunpack.c.l.bf16 %v2859_v32  ;;  %v6592_v55 = vunpack.c.h.bf16 %v2859_v32  ;;  %v3048_v15 = vunpack.c.l.bf16 %v3040_v26  ;;  %v8428_v26 = vld [vmem:[#allocation61_spill] sm:$0xff] }
 0x205   : > { %8421 = vst [vmem:[#allocation27_spill] sm:$0xff] %v6590_v37  ;;  %5012 = vpow2.f32 %v4397_v33  ;;  %v3161_v0 = vadd.f32 %v6331_v7, %v6006_v17  ;;  %v3193_v51 = vunpack.c.l.bf16 %v3177_v20  ;;  %v6597_v22 = vadd.f32 %v6586_v46, %v611_v16  ;;  %v568_v62 = vpop.f32.mrf.mxu0  ;;  %v3375_v34 = vld [vmem:[#allocation2 + $0x84] sm:$0xe]  ;;  %v8430_v50 = vld [vmem:[#allocation60_spill] sm:$0xff] }
 0x206   : > { %v1207_v31 = vmul.f32 %v6565_v38, %v1161_v36  ;;  %v2926_v6 = vmul.f32 %v2875_v30, %v5711_v47  ;;  %v6603_v41 = vmul.f32 %v6592_v55, %v5711_v47  ;;  %v3194_v8 = vunpack.c.h.bf16 %v3177_v20  ;;  %v8427_v33 = vld [vmem:[#allocation19_spill] sm:$0xff] }
 0x207   : > { %8422 = vst [vmem:[#allocation25_spill] sm:$0xff] %v6597_v22  ;;  %v8424_v63 = vrot.slane %v6032_v53, 2  ;;  %v8425_v21 = vrot.slane %v6069_v49, 2  ;;  %v6615_v58 = vadd.f32 %v6098_v60, %v6310_v39  ;;  %v6618_v48 = vadd.f32 1.0, %v8426_v27  ;;  %v8432_v27 = vld [vmem:[#allocation23_spill] sm:$0xff] }
 0x208   : > { %8423 = vst [vmem:[#allocation74_spill] sm:$0xff] %v6603_v41  ;;  %v6621_v25 = vmul.f32 -1.442695, %v6590_v37  ;;  %v2980_v45 = vrot.slane %v2926_v6, 1  ;;  %v8257_v53 = vrot.slane %v6603_v41, 1  ;;  %v3062_v49 = vmul.f32 %v3048_v15, %v5736_v29  ;;  %v3512_v6 = vld [vmem:[#allocation2 + $0x84] sm:$0xff]  }
 0x209   : > { %v3444_v17 = vsel %vm1824_vm4, %v8425_v21, %v8424_v63  ;;  %v3247_v4 = vunpack.c.l.bf16 %v3239_v11  ;;  %v3209_v60 = vmul.f32 %v3193_v51, %v5799_v35  ;;  %v6631_v39 = vmul.f32 -1.442695, %v6597_v22 }
 0x20a   : > { %v6611_v7 = vadd.f32 %v3444_v17, %v6346_v13  ;;  %v6627_v13 = vmul.f32 %v6592_v55, %v5736_v29  ;;  %v6634_v42 = vadd.f32 %v6586_v46, %v1207_v31  ;;  %v3210_v10 = vmul.f32 %v3194_v8, %v5799_v35 }
 0x20b   : > { %v3259_v54 = vmul.f32 %v3193_v51, %v5756_v52  ;;  %v6639_v5 = vmul.f32 %v6565_v38, %v4784_v2  ;;  %v6642_v56 = vmul.f32 %v6565_v38, %v4816_v3  ;;  %v2891_v16 = vmul.f32 %v2875_v30, %v8427_v33 }
 0x20c   : > { %v2982_v36 = vsel %vm1683_vm3, %v2980_v45, %v8257_v53  ;;  %v6649_v32 = vmul.f32 %v6565_v38, %v568_v62  ;;  %v8429_v20 = vrot.slane %v8428_v26, 2  ;;  %v8431_v15 = vrot.slane %v8430_v50, 2  ;;  %v8433_v53 = vld [vmem:[#allocation32_spill] sm:$0xff] }
 0x20d   : > { %v3116_v2 = vrot.slane %v3062_v49, 2  ;;  %v3260_v11 = vmul.f32 %v3194_v8, %v5756_v52  ;;  %v3261_v31 = vmul.f32 %v3247_v4, %v5756_v52  ;;  %v3311_v30 = vrot.slane %v3259_v54, 1 }
 0x20e   : > { %v6656_v51 = vsel %vm1824_vm4, %v8431_v15, %v8429_v20  ;;  %v8263_v63 = vrot.slane %v6627_v13, 2  ;;  %v3225_v21 = vadd.f32 %v3209_v60, %v3161_v0  ;;  %v3383_v17 = vunpack.c.l.bf16 %v3375_v34 }
 0x20f   : > { %v3396_v3 = vmul.f32 %v3194_v8, %v8432_v27  ;;  %v5007_v45 = vpop.eup %5006  ;;  %v3027_v62 = vadd.f32 %v2982_v36, %v2891_v16  ;;  %v3226_v50 = vadd.f32 %v3210_v10, %v8433_v53  ;;  %v3312_v57 = vrot.slane %v3260_v11, 1  ;;  %v3575_v36 = vld [vmem:[#allocation2 + $0x8c] sm:$0x1] }
 0x210   : > { %v3314_v20 = vrot.slane %v3261_v31, 1  ;;  %v5009_v15 = vpop.eup %5008  ;;  %v2691_v49 = vadd.f32 1.0, %v5007_v45  ;;  %v3395_v59 = vmul.f32 %v3383_v17, %v8432_v27  ;;  %v3397_v22 = vmul.f32 %v3247_v4, %v8432_v27 }
 0x211   : > { %v3528_v54 = vunpack.c.l.bf16 %v3512_v6  ;;  %v5011_v37 = vpop.eup %5010  ;;  %v2690_v41 = vadd.f32 1.0, %v5009_v15  ;;  %v3313_v0 = vsel %vm1683_vm3, %v3311_v30, %v3312_v57  ;;  %v3448_v8 = vrot.slane %v3396_v3, 2 }
 0x212   : > { %v3315_v60 = vsel %vm1683_vm3, %v3312_v57, %v3314_v20  ;;  %v5013_v34 = vpop.eup %5012  ;;  %v2688_v16 = vadd.f32 1.0, %v5011_v37  ;;  %5014 = vrcp.f32 %v2691_v49  ;;  %v3118_v53 = vsel %vm1824_vm4, %v3116_v2, %v8263_v63  ;;  %v3711_v20 = vld [vmem:[#allocation2 + $0x84] sm:$0xe] }
 0x213   : > { %v3361_v10 = vadd.f32 %v3313_v0, %v3225_v21  ;;  %v2689_v11 = vadd.f32 1.0, %v5013_v34  ;;  %5016 = vrcp.f32 %v2690_v41  ;;  %v3362_v4 = vadd.f32 %v3315_v60, %v3226_v50  ;;  %v8434_v0 = vld [vmem:[#allocation72_spill] sm:$0xff] }
 0x214   : > { %v3447_v31 = vrot.slane %v3395_v59, 2  ;;  %5018 = vrcp.f32 %v2688_v16  ;;  %v3450_v17 = vrot.slane %v3397_v22, 2  ;;  %v3529_v45 = vunpack.c.h.bf16 %v3512_v6  ;;  %v8435_v16 = vld [vmem:[#allocation73_spill] sm:$0xff] }
 0x215   : > { %v3544_v30 = vmul.f32 %v3528_v54, %v5807_v61  ;;  %5020 = vrcp.f32 %v2689_v11  ;;  %v3583_v37 = vunpack.c.l.bf16 %v3575_v36  ;;  %v3593_v3 = vmul.f32 %v3528_v54, %v5810_v1  ;;  %v6680_v54 = vld [vmem:[#allocation8 + $0x8] ss:$0 sm:$0xff] }
 0x216   : > { %v3449_v57 = vsel %vm1824_vm4, %v3447_v31, %v3448_v8  ;;  %v3451_v2 = vsel %vm1824_vm4, %v3448_v8, %v3450_v17  ;;  %v3545_v15 = vmul.f32 %v3529_v45, %v5807_v61  ;;  %v3594_v22 = vmul.f32 %v3529_v45, %v5810_v1 }
 0x217   : > { %v3497_v21 = vadd.f32 %v3449_v57, %v3361_v10  ;;  %v3560_v41 = vadd.f32 %v3544_v30, %v6611_v7  ;;  %v3498_v59 = vadd.f32 %v3451_v2, %v3362_v4  ;;  %v3595_v6 = vmul.f32 %v3583_v37, %v5810_v1 }
 0x218   : > { %v3643_v50 = vrot.slane %v3593_v3, 1  ;;  %v3561_v49 = vadd.f32 %v3545_v15, %v6615_v58  ;;  %v3719_v34 = vunpack.c.l.bf16 %v3711_v20  ;;  %v3730_v8 = vmul.f32 %v6680_v54, %v3529_v45 }
 0x219   : > { %v3562_v60 = vadd.f32 %v8434_v0, %v3497_v21  ;;  %v3563_v10 = vadd.f32 %v8435_v16, %v3498_v59  ;;  %v3644_v36 = vrot.slane %v3594_v22, 1  ;;  %v3646_v11 = vrot.slane %v3595_v6, 1  ;;  %v8436_v22 = vld [vmem:[#allocation70_spill] sm:$0xff] }
 0x21a   : > { %v3731_v7 = vmul.f32 %v6680_v54, %v3583_v37  ;;  %v3163_v4 = vadd.f32 %v3118_v53, %v3027_v62  ;;  %v3729_v17 = vmul.f32 %v6680_v54, %v3719_v34  ;;  %v3780_v30 = vrot.slane %v3730_v8, 2 }
 0x21b   : > { %v3698_v31 = vadd.f32 %v6569_v18, %v3562_v60  ;;  %v3645_v58 = vsel %vm1683_vm3, %v3643_v50, %v3644_v36  ;;  %v3647_v57 = vsel %vm1683_vm3, %v3644_v36, %v3646_v11  ;;  %v3699_v3 = vadd.f32 %v6572_v43, %v3563_v10  ;;  %v5191_v43 = vld [vmem:[%s8199_s5] ss:$0 sm:$0xff] }
 0x21c   : > { %v3782_v20 = vrot.slane %v3731_v7, 2  ;;  %v3696_v45 = vadd.f32 %v3645_v58, %v3560_v41  ;;  %v3697_v2 = vadd.f32 %v3647_v57, %v3561_v49  ;;  %v3779_v21 = vrot.slane %v3729_v17, 2  ;;  %v5192_v60 = vld [vmem:[%s8200_s6] ss:$0 sm:$0xff] }
 0x21d   : > { %v3834_v15 = vadd.f32 %v6578_v14, %v3698_v31  ;;  %v3835_v62 = vadd.f32 %v6575_v44, %v3699_v3  ;;  %5022 = vpow2.f32 %v6621_v25  ;;  %v6696_v18 = vadd.f32 %v6586_v46, %v6639_v5  ;;  %v1164_v31 = vpop.f32.mrf.mxu1  ;;  %v8441_v3 = vld [vmem:[#allocation40_spill] sm:$0xff] }
 0x21e   : > { %v3783_v37 = vsel %vm1824_vm4, %v3780_v30, %v3782_v20  ;;  %v3781_v53 = vsel %vm1824_vm4, %v3779_v21, %v3780_v30  ;;  %5024 = vpow2.f32 %v6631_v39  ;;  %v3227_v6 = vadd.f32 %v8436_v22, %v3163_v4 }
 0x21f   : > { %v3833_v59 = vadd.f32 %v3783_v37, %v3697_v2  ;;  %v3850_v41 = vmul.f32 %v5191_v43, %v3834_v15  ;;  %v5015_v14 = vpop.eup %5014  ;;  %v3832_v44 = vadd.f32 %v3781_v53, %v3696_v45  ;;  %v3851_v50 = vmul.f32 %v5191_v43, %v3835_v62  ;;  %v8442_v2 = vld [vmem:[#allocation41_spill] sm:$0xff]  ;;  %v8445_v53 = vld [vmem:[#allocation62_spill] sm:$0xff] }
 0x220   : > { %v4288_v25 = vmul.f32 -1.442695, %v6696_v18  ;;  %v5017_v49 = vpop.eup %5016  ;;  %v6706_v5 = vmul.f32 %v5015_v14, %v6538_v19  ;;  %v6715_v39 = vadd.f32 %v6586_v46, %v6642_v56  ;;  %v6740_v57 = vadd.f32 %v6586_v46, %v6649_v32  ;;  %v8443_v37 = vld [vmem:[#allocation65_spill] sm:$0xff] }
 0x221   : > { %v3849_v0 = vmul.f32 %v5191_v43, %v3833_v59  ;;  %v6711_v34 = vadd.f32 %v5192_v60, %v3850_v41  ;;  %v5019_v8 = vpop.eup %5018  ;;  %v6718_v16 = vmul.f32 %v5017_v49, %v6548_v9  ;;  %v3848_v10 = vmul.f32 %v5191_v43, %v3832_v44  ;;  %v4787_v43 = vpop.f32.mrf.mxu0  ;;  %v1968_v14 = vld [vmem:[#allocation2 + $0x38] sm:$0x1]  ;;  %v8448_v44 = vld [vmem:[#allocation66_spill] sm:$0xff] }
 0x222   : > { %8437 = vst [vmem:[#allocation28_spill] sm:$0xff] %v6706_v5  ;;  %v6720_v36 = vadd.f32 %v5192_v60, %v3851_v50  ;;  %5026 = vpow2.f32 %v4288_v25  ;;  %v5021_v19 = vpop.eup %5020  ;;  %v6723_v11 = vmul.f32 %v5019_v8, %v6552_v23  ;;  %v4362_v56 = vmul.f32 -1.442695, %v6715_v39  ;;  %v4819_v41 = vpop.f32.mrf.mxu1  ;;  %v8450_v25 = vld [vmem:[#allocation67_spill] sm:$0xff] }
 0x223   : > { %8438 = vst [vmem:[#allocation61_spill] sm:$0xff] %v6718_v16  ;;  %v6725_v7 = vadd.f32 %v5192_v60, %v3849_v0  ;;  %v4430_v4 = vmul.f32 -1.442695, %v6711_v34  ;;  %v6730_v17 = vmul.f32 %v5021_v19, %v6555_v24  ;;  %v4575_v9 = vpack.c.bf16 %v6706_v5, %v6718_v16 }
 0x224   : > { %8439 = vst [vmem:[#allocation60_spill] sm:$0xff] %v6723_v11  ;;  %v6734_v30 = vadd.f32 %v5192_v60, %v3848_v10  ;;  %v4431_v58 = vmul.f32 -1.442695, %v6720_v36  ;;  %v6744_v20 = vadd.f32 %v6656_v51, %v8441_v3  ;;  %v2095_v21 = vadd.f32 %v8442_v2, %v6581_v12  ;;  %v8452_v60 = vld [vmem:[#allocation58_spill] sm:$0xff]  ;;  %v8454_v10 = vld [vmem:[#allocation64_spill] sm:$0xff] }
 0x225   : > { %8440 = vst [vmem:[#allocation32_spill] sm:$0xff] %v6730_v17  ;;  %v4429_v23 = vmul.f32 -1.442695, %v6725_v7  ;;  %5028 = vpow2.f32 %v4430_v4  ;;  %v4570_v24 = vpack.c.bf16 %v6730_v17, %v6723_v11  ;;  %4701 = vst [vmem:[%s6306_s18 + $0x10] sm:$0xff] %v4575_v9   ;;  %v4359_v15 = vmul.f32 -1.442695, %v6634_v42 }
 0x226   : > { %v4428_v45 = vmul.f32 -1.442695, %v6734_v30  ;;  %5030 = vpow2.f32 %v4431_v58  ;;  %v4286_v32 = vmul.f32 -1.442695, %v6740_v57  ;;  %v8444_v62 = vrot.slane %v8443_v37, 2  ;;  %v8455_v4 = vld [vmem:[#allocation69_spill] sm:$0xff] }
 0x227   : > { %5032 = vpow2.f32 %v4429_v23  ;;  %v8446_v51 = vrot.slane %v8445_v53, 2  ;;  %4700 = vst [vmem:[%s6306_s18 + $0x8] sm:$0xff] %v4570_v24   ;;  %v1208_v12 = vmul.f32 %v6565_v38, %v1164_v31  ;;  %v8449_v50 = vrot.slane %v8448_v44, 2 }
 0x228   : > { %5034 = vpow2.f32 %v4428_v45  ;;  %v8451_v49 = vrot.slane %v8450_v25, 2  ;;  %v3363_v19 = vadd.f32 %v8454_v10, %v3227_v6  ;;  %v8456_v9 = vrot.slane %v8455_v4, 2  ;;  %v8458_v45 = vld [vmem:[#allocation56_spill] sm:$0xff] }
 0x229   : > { %v2190_v59 = vsel %vm1824_vm4, %v8446_v51, %v8444_v62  ;;  %5036 = vpow2.f32 %v4362_v56  ;;  %v8457_v58 = vrot.slane %v6441_v40, 2  ;;  %v6778_v31 = vadd.f32 %v6586_v46, %v1208_v12 }
 0x22a   : > { %v6760_v22 = vadd.f32 %v2190_v59, %v2095_v21  ;;  %v3123_v0 = vsel %vm1824_vm4, %v8451_v49, %v8449_v50  ;;  %5038 = vpow2.f32 %v4286_v32  ;;  %v617_v3 = vmul.f32 %v6565_v38, %v4787_v43  ;;  %v5023_v56 = vpop.eup %5022  ;;  %v8459_v21 = vld [vmem:[#allocation63_spill] sm:$0xff]  ;;  %v8461_v43 = vld [vmem:[#allocation38_spill] sm:$0xff] }
 0x22b   : > { %v6769_v8 = vadd.f32 %v3123_v0, %v8452_v60  ;;  %v3454_v23 = vsel %vm1824_vm4, %v8457_v58, %v8456_v9  ;;  %v1213_v24 = vmul.f32 %v6565_v38, %v4819_v41  ;;  %v3440_v2 = vrot.slane %v8458_v45, 2  ;;  %v5025_v51 = vpop.eup %5024  ;;  %v8463_v50 = vld [vmem:[#allocation30_spill] sm:$0xff]  ;;  %v8470_v58 = vld [vmem:[#allocation57_spill] sm:$0xff]  ;;  %v581_v45 = vpop.f32.mrf.mxu0 }
 0x22c   : > { %8447 = vst [vmem:[#allocation72_spill] sm:$0xff] %v6760_v22  ;;  %v1707_v62 = vrot.slane %v8459_v21, 1  ;;  %v1976_v6 = vunpack.c.l.bf16 %v1968_v14  ;;  %v6784_v53 = vadd.f32 %v3454_v23, %v3363_v19  ;;  %v1296_v40 = vadd.f32 1.0, %v5023_v56  ;;  %v8465_v60 = vld [vmem:[#allocation50_spill] sm:$0xff]  ;;  %v6809_v56 = vld [vmem:[#allocation2 + $0x2c] sm:$0x1] }
 0x22d   : > { %8453 = vst [vmem:[#allocation73_spill] sm:$0xff] %v6769_v8  ;;  %5040 = vpow2.f32 %v4359_v15  ;;  %v6787_v32 = vadd.f32 %v6586_v46, %v617_v3  ;;  %v6790_v59 = vadd.f32 %v6586_v46, %v1213_v24  ;;  %v8462_v12 = vrot.slane %v8461_v43, 1  ;;  %v8467_v15 = vld [vmem:[#allocation48_spill] sm:$0xff]  ;;  %v8471_v3 = vld [vmem:[#allocation29_spill] sm:$0xff] }
 0x22e   : > { %8460 = vst [vmem:[#allocation70_spill] sm:$0xff] %v6784_v53  ;;  %v8464_v25 = vunpack.c.l.bf16 %v8463_v50  ;;  %v698_v14 = vadd.f32 1.0, %v5025_v51  ;;  %v4360_v0 = vmul.f32 -1.442695, %v6778_v31  ;;  %v8466_v10 = vrot.slane %v8465_v60, 1  ;;  %v8494_v22 = vld [vmem:[#allocation21_spill] sm:$0xff] }
 0x22f   : > { %v1708_v41 = vsel %vm1683_vm3, %v8462_v12, %v1707_v62  ;;  %v8468_v19 = vrot.slane %v8467_v15, 1  ;;  %v3437_v23 = vrot.slane %v8470_v58, 2  ;;  %v1608_v24 = vmul.f32 %v8471_v3, %v8427_v33  ;;  %v5027_v21 = vpop.eup %5026  ;;  %v8472_v62 = vld [vmem:[#allocation51_spill] sm:$0xff]  ;;  %v2905_v15 = vld [vmem:[#allocation2 + $0x98] sm:$0x1] }
 0x230   : > { %v1790_v49 = vmul.f32 %v5736_v29, %v8464_v25  ;;  %5042 = vrcp.f32 %v6618_v48  ;;  %v8473_v51 = vrot.slane %v8472_v62, 1  ;;  %v8474_v43 = vmov %v8466_v10  ;;  %v8476_v58 = vld [vmem:[#allocation53_spill] sm:$0xff] }
 0x231   : > { %v6804_v9 = vsel %vm1683_vm3, %v8468_v19, %v8466_v10  ;;  %v1996_v50 = vmul.f32 %v5756_v52, %v1976_v6  ;;  %5044 = vrcp.f32 %v1296_v40  ;;  %v4291_v25 = vmul.f32 -1.442695, %v6787_v32 }
 0x232   : > { %8469 = vst [vmem:[#allocation40_spill] sm:$0xff] %v6804_v9  ;;  %v6817_v12 = vsel %vm1683_vm3, %v8474_v43, %v8473_v51  ;;  %v1749_v10 = vadd.f32 %v1708_v41, %v1608_v24  ;;  %5046 = vrcp.f32 %v698_v14  ;;  %v701_v19 = vadd.f32 1.0, %v5027_v21  ;;  %v1177_v43 = vpop.f32.mrf.mxu1  ;;  %v5029_v5 = vpop.eup %5028  ;;  %v8492_v9 = vld [vmem:[#allocation24_spill] sm:$0xff] }
 0x233   : > { %8475 = vst [vmem:[#allocation41_spill] sm:$0xff] %v6817_v12  ;;  %v4365_v48 = vmul.f32 -1.442695, %v6790_v59  ;;  %v8477_v63 = vrot.slane %v8476_v58, 2  ;;  %v1848_v60 = vrot.slane %v1790_v49, 2  ;;  %v1626_v51 = vunpack.c.l.bf16 %v6809_v56 }
 0x234   : > { %5048 = vpow2.f32 %v4360_v0  ;;  %v6835_v14 = vmul.f32 %v8471_v3, %v5799_v35  ;;  %v2136_v24 = vmul.f32 %v8432_v27, %v1976_v6  ;;  %v8481_v49 = vrot.slane %v8428_v26, 2  ;;  %v4820_v11 = vpop.f32.mrf.mxu1 }
 0x235   : > { %v6825_v62 = vsel %vm1824_vm4, %v8477_v63, %v3440_v2  ;;  %v8479_v40 = vmov %v8477_v63  ;;  %5050 = vrcp.f32 %v701_v19  ;;  %v4788_v63 = vpop.f32.mrf.mxu0  ;;  %v5031_v2 = vpop.eup %5030  ;;  %v2913_v56 = vunpack.c.l.bf16 %v2905_v15 }
 0x236   : > { %8478 = vst [vmem:[#allocation65_spill] sm:$0xff] %v6825_v62  ;;  %v6831_v41 = vsel %vm1824_vm4, %v3437_v23, %v8479_v40  ;;  %v1849_v0 = vsel %vm1824_vm4, %v8481_v49, %v1848_v60  ;;  %v3930_v21 = vadd.f32 1.0, %v5029_v5  ;;  %5052 = vpow2.f32 %v4291_v25  ;;  %v5033_v58 = vpop.eup %5032  ;;  %v2904_v49 = vld [vmem:[#allocation2 + $0x8c] sm:$0x1] }
 0x237   : > { %8480 = vst [vmem:[#allocation62_spill] sm:$0xff] %v6831_v41  ;;  %v6841_v16 = vadd.f32 %v1849_v0, %v1749_v10  ;;  %v2051_v23 = vrot.slane %v1996_v50, 1  ;;  %v3931_v40 = vadd.f32 1.0, %v5031_v2  ;;  %5054 = vpow2.f32 %v4365_v48  ;;  %v5035_v3 = vpop.eup %5034  ;;  %v584_v25 = vpop.f32.mrf.mxu0 }
 0x238   : > { %v1646_v17 = vmul.f32 %v5711_v47, %v1626_v51  ;;  %v3929_v6 = vadd.f32 1.0, %v5033_v58  ;;  %5056 = vrcp.f32 %v3930_v21  ;;  %v615_v19 = vmul.f32 %v6565_v38, %v581_v45  ;;  %v5037_v26 = vpop.eup %5036 }
 0x239   : > { %8482 = vst [vmem:[#allocation66_spill] sm:$0xff] %v6841_v16  ;;  %v2191_v62 = vrot.slane %v2136_v24, 2  ;;  %v3928_v60 = vadd.f32 1.0, %v5035_v3  ;;  %5058 = vrcp.f32 %v3931_v40  ;;  %v1211_v5 = vmul.f32 %v6565_v38, %v1177_v43  ;;  %v5039_v10 = vpop.eup %5038  ;;  %v8484_v40 = vld [vmem:[#allocation39_spill] sm:$0xff] }
 0x23a   : > { %v2931_v50 = vmul.f32 %v2913_v56, %v5711_v47  ;;  %5060 = vrcp.f32 %v3929_v6  ;;  %v1297_v15 = vadd.f32 1.0, %v5037_v26  ;;  %v618_v48 = vmul.f32 %v6565_v38, %v4788_v63  ;;  %v5041_v24 = vpop.eup %5040  ;;  %v6867_v26 = vld [vmem:[#allocation2 + $0x98] sm:$0x1] }
 0x23b   : > { %v3067_v2 = vmul.f32 %v2913_v56, %v5736_v29  ;;  %5062 = vrcp.f32 %v3928_v60  ;;  %v699_v45 = vadd.f32 1.0, %v5039_v10  ;;  %v1214_v0 = vmul.f32 %v6565_v38, %v4820_v11 }
 0x23c   : > { %v1702_v21 = vrot.slane %v1646_v17, 1  ;;  %5064 = vrcp.f32 %v1297_v15  ;;  %v6851_v43 = vadd.f32 %v6586_v46, %v615_v19  ;;  %v616_v58 = vmul.f32 %v6565_v38, %v584_v25  ;;  %v8488_v19 = vld [vmem:[#allocation71_spill] sm:$0xff] }
 0x23d   : > { %v8485_v3 = vrot.slane %v8484_v40, 1  ;;  %v8486_v63 = vrot.slane %v8443_v37, 2  ;;  %5066 = vrcp.f32 %v699_v45  ;;  %v6865_v11 = vadd.f32 %v6586_v46, %v1211_v5  ;;  %v5043_v17 = vpop.eup %5042  ;;  %v8491_v5 = vld [vmem:[#allocation68_spill] sm:$0xff] }
 0x23e   : > { %8483 = vst [vmem:[#allocation67_spill] sm:$0xff] %v6851_v43  ;;  %v8489_v60 = vrot.slane %v8488_v19, 1  ;;  %v1787_v10 = vmul.f32 %v5736_v29, %v1626_v51  ;;  %v6874_v15 = vadd.f32 %v6586_v46, %v618_v48  ;;  %v5045_v37 = vpop.eup %5044  ;;  %v1606_v40 = vmul.f32 %v8427_v33, %v8491_v5 }
 0x23f   : > { %v6857_v6 = vsel %vm1683_vm3, %v8485_v3, %v2051_v23  ;;  %v6862_v56 = vsel %vm1824_vm4, %v8486_v63, %v2191_v62  ;;  %8487 = vst [vmem:[#allocation58_spill] sm:$0xff] %v6865_v11  ;;  %v2912_v23 = vunpack.c.l.bf16 %v2904_v49  ;;  %v8490_v62 = vld [vmem:[#allocation31_spill] sm:$0xff]  ;;  %v1294_v3 = vadd.f32 1.0, %v5041_v24  ;;  %v5047_v19 = vpop.eup %5046 }
 0x240   : > { %v1703_v25 = vsel %vm1683_vm3, %v8489_v60, %v1702_v21  ;;  %v6878_v45 = vmul.f32 %v8490_v62, %v8427_v33  ;;  %v6883_v63 = vadd.f32 %v6586_v46, %v1214_v0  ;;  %v2988_v21 = vrot.slane %v2931_v50, 1 }
 0x241   : > { %v3124_v60 = vrot.slane %v3067_v2, 2  ;;  %v4289_v51 = vmul.f32 -1.442695, %v6851_v43  ;;  %v6887_v48 = vadd.f32 %v6586_v46, %v616_v58  ;;  %v5049_v49 = vpop.eup %5048  ;;  %v6891_v41 = vmul.f32 %v8490_v62, %v5799_v35 }
 0x242   : > { %v1747_v5 = vadd.f32 %v1703_v25, %v1606_v40  ;;  %v4363_v24 = vmul.f32 -1.442695, %v6865_v11  ;;  %v5051_v0 = vpop.eup %5050  ;;  %v8493_v53 = vrot.slane %v8492_v9, 1  ;;  %v1843_v2 = vrot.slane %v1787_v10, 2 }
 0x243   : > { %v2928_v8 = vmul.f32 %v2912_v23, %v5711_v47  ;;  %v4292_v58 = vmul.f32 -1.442695, %v6874_v15  ;;  %v5053_v43 = vpop.eup %5052  ;;  %v748_v16 = vmul.f32 %v5043_v17, %v8494_v22  ;;  %5068 = vrcp.f32 %v1294_v3 }
 0x244   : > { %v2989_v50 = vsel %vm1683_vm3, %v8493_v53, %v2988_v21  ;;  %v749_v62 = vmul.f32 %v5051_v0, %v6696_v18  ;;  %v4366_v25 = vmul.f32 -1.442695, %v6883_v63  ;;  %v5055_v40 = vpop.eup %5054  ;;  %v8495_v12 = vrot.slane %v6474_v28, 2 }
 0x245   : > { %v3064_v53 = vmul.f32 %v2912_v23, %v5736_v29  ;;  %5070 = vpow2.f32 %v4289_v51  ;;  %v4290_v10 = vmul.f32 -1.442695, %v6887_v48  ;;  %v5057_v21 = vpop.eup %5056  ;;  %v8496_v11 = vrot.slane %v8448_v44, 2 }
 0x246   : > { %v1844_v9 = vsel %vm1824_vm4, %v8495_v12, %v1843_v2  ;;  %v759_v18 = vpack.c.bf16 %v749_v62, %v748_v16  ;;  %5072 = vpow2.f32 %v4363_v24  ;;  %v5059_v3 = vpop.eup %5058  ;;  %v2983_v0 = vrot.slane %v2928_v8, 1  ;;  %v1180_v62 = vpop.f32.mrf.mxu1 }
 0x247   : > { %v6911_v22 = vsel %vm1824_vm4, %v8496_v11, %v3124_v60  ;;  %v1888_v17 = vadd.f32 %v1844_v9, %v1747_v5  ;;  %v6914_v28 = vmul.f32 %v5057_v21, %v6711_v34  ;;  %v1295_v12 = vadd.f32 1.0, %v5049_v49  ;;  %v5061_v23 = vpop.eup %5060  ;;  %v8499_v60 = vld [vmem:[#allocation74_spill] sm:$0xff]  ;;  %v8503_v9 = vld [vmem:[#allocation27_spill] sm:$0xff] }
 0x248   : > { %5074 = vpow2.f32 %v4292_v58  ;;  %v2892_v51 = vmul.f32 %v6592_v55, %v8427_v33  ;;  %v6919_v2 = vmul.f32 %v5059_v3, %v6720_v36  ;;  %v798_v44 = vshrl.u32 %v759_v18, 16  ;;  %v5063_v11 = vpop.eup %5062  ;;  %v8504_v3 = vld [vmem:[#allocation25_spill] sm:$0xff] }
 0x249   : > { %8497 = vst [vmem:[#allocation64_spill] sm:$0xff] %v6914_v28  ;;  %5076 = vpow2.f32 %v4366_v25  ;;  %v8500_v16 = vrot.slane %v8499_v60, 1  ;;  %v3119_v8 = vrot.slane %v3064_v53, 2  ;;  %v6925_v34 = vmul.f32 %v5061_v23, %v6725_v7  ;;  %v5065_v49 = vpop.eup %5064 }
 0x24a   : > { %8498 = vst [vmem:[#allocation69_spill] sm:$0xff] %v6919_v2  ;;  %5078 = vpow2.f32 %v4290_v10  ;;  %v6928_v24 = vmul.f32 %v5063_v11, %v6734_v30  ;;  %v4663_v55 = vpack.c.bf16 %v6919_v2, %v6914_v28  ;;  %v800_v36 = vrot.slane %v798_v44, 7  ;;  %v5067_v25 = vpop.eup %5066 }
 0x24b   : > { %v2984_v5 = vsel %vm1683_vm3, %v8500_v16, %v2983_v0  ;;  %8501 = vst [vmem:[#allocation56_spill] sm:$0xff] %v6925_v34  ;;  %v801_v58 = vshll.u32 %v759_v18, 16  ;;  %v1344_v21 = vmul.f32 %v5045_v37, %v8503_v9  ;;  %v746_v53 = vmul.f32 %v5047_v19, %v8504_v3 }
 0x24c   : > { %8502 = vst [vmem:[#allocation63_spill] sm:$0xff] %v6928_v24  ;;  %v1345_v7 = vmul.f32 %v5065_v49, %v6715_v39  ;;  %5080 = vrcp.f32 %v1295_v12  ;;  %v4658_v10 = vpack.c.bf16 %v6925_v34, %v6928_v24  ;;  %4719 = vst [vmem:[%s6306_s18 + $0x50] sm:$0xff] %v4663_v55   ;;  %v850_v23 = vsel %vm5706_vm2, %v800_v36, 0 }
 0x24d   : > { %v803_v30 = vor.u32 %v801_v58, %v800_v36  ;;  %v747_v18 = vmul.f32 %v5067_v25, %v6740_v57  ;;  %v4310_v44 = vcombine.low %v850_v23, %v850_v23  ;;  %v704_v60 = vadd.f32 1.0, %v5053_v43 }
 0x24e   : > { %v1355_v11 = vpack.c.bf16 %v1345_v7, %v1344_v21  ;;  %v1212_v37 = vmul.f32 %v6565_v38, %v1180_v62  ;;  %v3028_v16 = vadd.f32 %v2984_v5, %v2892_v51  ;;  %4718 = vst [vmem:[%s6306_s18 + $0x48] sm:$0xff] %v4658_v10   ;;  %v1300_v12 = vadd.f32 1.0, %v5055_v40 }
 0x24f   : > { %v842_v39 = vsel %vm5706_vm2, 0, %v803_v30  ;;  %v758_v19 = vpack.c.bf16 %v747_v18, %v746_v53  ;;  %v3030_v49 = vadd.f32 %v2989_v50, %v6878_v45  ;;  %959 = vst [vmem:[#allocation2 + $0x50] sm:$0x1] %v4310_v44  ;;  %v8506_v57 = vunpack.c.l.bf16 %v6867_v26 }
 0x250   : > { %v4308_v55 = vcombine.low %v842_v39, %v842_v39  ;;  %v4309_v58 = vcombine.high %v842_v39, %v842_v39  ;;  %v1394_v36 = vshrl.u32 %v1355_v11, 16  ;;  %v1956_v43 = vadd.f32 %v6835_v14, %v1888_v17  ;;  %v6953_v62 = vpop.eup %5068 }
 0x251   : > { %v3264_v25 = vmul.f32 %v8506_v57, %v5756_v52  ;;  %v8507_v38 = vrot.slane %v6627_v13, 2  ;;  %v791_v5 = vshrl.u32 %v758_v19, 16  ;;  %v1397_v50 = vshll.u32 %v1355_v11, 16 }
 0x252   : > { %957 = vst [vmem:[#allocation2 + $0x48] sm:$0xf] %v4308_v55  ;;  %958 = vst [vmem:[#allocation2 + $0x4c] sm:$0xf] %v4309_v58  ;;  %v1396_v45 = vrot.slane %v1394_v36, 7  ;;  %5082 = vrcp.f32 %v704_v60  ;;  %v6956_v40 = vadd.f32 %v6586_v46, %v1212_v37  ;;  %v5071_v9 = vpop.eup %5070  ;;  %v794_v53 = vshll.u32 %v758_v19, 16 }
 0x253   : > { %v3120_v51 = vsel %vm1824_vm4, %v8507_v38, %v3119_v8  ;;  %v793_v3 = vrot.slane %v791_v5, 7  ;;  %5084 = vrcp.f32 %v1300_v12  ;;  %v5073_v14 = vpop.eup %5072  ;;  %v6959_v13 = vadd.f32 %v6911_v22, %v3030_v49  ;;  %v8511_v58 = vld [vmem:[#allocation59_spill] sm:$0xff] }
 0x254   : > { %8508 = vst [vmem:[#allocation38_spill] sm:$0xff] %v6956_v40  ;;  %v3164_v21 = vadd.f32 %v3120_v51, %v3028_v16  ;;  %v8510_v17 = vmov %v8506_v57  ;;  %v1399_v7 = vor.u32 %v1397_v50, %v1396_v45  ;;  %v1443_v10 = vsel %vm5706_vm2, %v1396_v45, 0 }
 0x255   : > { %8509 = vst [vmem:[#allocation30_spill] sm:$0xff] %v6959_v13  ;;  %v3400_v8 = vmul.f32 %v8510_v17, %v8432_v27  ;;  %v5075_v30 = vpop.eup %5074  ;;  %v3319_v46 = vrot.slane %v3264_v25, 1  ;;  %v4384_v23 = vcombine.low %v1443_v10, %v1443_v10  ;;  %v796_v18 = vor.u32 %v794_v53, %v793_v3 }
 0x256   : > { %v849_v44 = vsel %vm5706_vm2, %v793_v3, 0  ;;  %v5077_v11 = vpop.eup %5076  ;;  %v2096_v60 = vadd.f32 %v6857_v6, %v1956_v43  ;;  %v1435_v22 = vsel %vm5706_vm2, 0, %v1399_v7  ;;  %v4364_v26 = vmul.f32 -1.442695, %v6956_v40  ;;  %v1621_v19 = vld [vmem:[#allocation2 + $0x50] sm:$0x1] }
 0x257   : > { %v4307_v37 = vcombine.low %v849_v44, %v849_v44  ;;  %v5079_v16 = vpop.eup %5078  ;;  %v3228_v39 = vadd.f32 %v6891_v41, %v3164_v21  ;;  %v4382_v12 = vcombine.low %v1435_v22, %v1435_v22  ;;  %v4383_v49 = vcombine.high %v1435_v22, %v1435_v22  ;;  %1552 = vst [vmem:[#allocation2 + $0xb0] sm:$0x1] %v4384_v23 }
 0x258   : > { %v702_v55 = vadd.f32 1.0, %v5071_v9  ;;  %v8512_v36 = vrot.slane %v8511_v58, 1  ;;  %v3455_v25 = vrot.slane %v3400_v8, 2  ;;  %v841_v6 = vsel %vm5706_vm2, 0, %v796_v18 }
 0x259   : > { %956 = vst [vmem:[#allocation2 + $0x44] sm:$0x1] %v4307_v37  ;;  %v1298_v43 = vadd.f32 1.0, %v5073_v14  ;;  %v5081_v38 = vpop.eup %5080  ;;  %v4692_v51 = vld [vmem:[#allocation2 + $0x48] sm:$0xff]   ;;  %v1629_v5 = vunpack.c.l.bf16 %v1621_v19  ;;  %1550 = vst [vmem:[#allocation2 + $0xa8] sm:$0xf] %v4382_v12  ;;  %v4305_v41 = vcombine.low %v841_v6, %v841_v6  ;;  %v4306_v45 = vcombine.high %v841_v6, %v841_v6 }
 0x25a   : > { %v3320_v57 = vsel %vm1683_vm3, %v8512_v36, %v3319_v46  ;;  %1551 = vst [vmem:[#allocation2 + $0xac] sm:$0xf] %v4383_v49  ;;  %v705_v50 = vadd.f32 1.0, %v5075_v30  ;;  %v6978_v21 = vunpack.c.l.bf16 %v4692_v51  ;;  %v6980_v9 = vunpack.c.h.bf16 %v4692_v51  ;;  %v1970_v14 = vld [vmem:[#allocation2 + $0x50] sm:$0x1] }
 0x25b   : > { %v1301_v3 = vadd.f32 1.0, %v5077_v11  ;;  %5086 = vpow2.f32 %v4364_v26  ;;  %v8513_v53 = vrot.slane %v8455_v4, 2  ;;  %v3364_v8 = vadd.f32 %v3320_v57, %v3228_v39  ;;  %954 = vst [vmem:[#allocation2 + $0x3c] sm:$0xf] %v4305_v41  ;;  %955 = vst [vmem:[#allocation2 + $0x40] sm:$0xf] %v4306_v45 }
 0x25c   : > { %v6986_v7 = vadd.f32 %v6862_v56, %v2096_v60  ;;  %5088 = vrcp.f32 %v702_v55  ;;  %v1653_v10 = vmul.f32 %v6978_v21, %v5711_v47  ;;  %v1654_v30 = vmul.f32 %v6980_v9, %v5711_v47  ;;  %v1762_v46 = vld [vmem:[#allocation2 + $0x48] sm:$0xe]  ;;  %v2318_v6 = vld [vmem:[#allocation2 + $0x50] sm:$0x1] }
 0x25d   : > { %v3456_v17 = vsel %vm1824_vm4, %v8513_v53, %v3455_v25  ;;  %v1343_v23 = vmul.f32 %v5081_v38, %v6778_v31  ;;  %5090 = vrcp.f32 %v1298_v43  ;;  %v1342_v4 = vmul.f32 %v6953_v62, %v6634_v42  ;;  %v2110_v44 = vld [vmem:[#allocation2 + $0x48] sm:$0xe] }
 0x25e   : > { %v1655_v18 = vmul.f32 %v5711_v47, %v1629_v5  ;;  %5092 = vrcp.f32 %v705_v50  ;;  %v703_v56 = vadd.f32 1.0, %v5079_v16  ;;  %v1714_v11 = vrot.slane %v1653_v10, 1 }
 0x25f   : > { %v1715_v60 = vrot.slane %v1654_v30, 1  ;;  %v1978_v22 = vunpack.c.l.bf16 %v1970_v14  ;;  %5094 = vrcp.f32 %v1301_v3  ;;  %v5083_v37 = vpop.eup %5082  ;;  %v1611_v26 = vmul.f32 %v6978_v21, %v8427_v33  ;;  %v2458_v30 = vld [vmem:[#allocation2 + $0x48] sm:$0xe] }
 0x260   : > { %v1770_v39 = vunpack.c.l.bf16 %v1762_v46  ;;  %v2000_v31 = vmul.f32 %v6978_v21, %v5756_v52  ;;  %v2001_v42 = vmul.f32 %v6980_v9, %v5756_v52  ;;  %v5085_v62 = vpop.eup %5084  ;;  %v7005_v16 = vmul.f32 %v6980_v9, %v5736_v29 }
 0x261   : > { %v1716_v19 = vsel %vm1683_vm3, %v1714_v11, %v1715_v60  ;;  %v2118_v12 = vunpack.c.l.bf16 %v2110_v44  ;;  %v7007_v49 = vpack.c.bf16 %v1343_v23, %v1342_v4  ;;  %v1717_v55 = vrot.slane %v1655_v18, 1  ;;  %v4709_v50 = vld [vmem:[#allocation2 + $0xa8] sm:$0xff]   ;;  %v2907_v44 = vld [vmem:[#allocation2 + $0xb0] sm:$0x1] }
 0x262   : > { %v7009_v58 = vadd.f32 %v1716_v19, %v1611_v26  ;;  %v1796_v36 = vmul.f32 %v5736_v29, %v1629_v5  ;;  %v2058_v57 = vrot.slane %v2000_v31, 1  ;;  %v2059_v25 = vrot.slane %v2001_v42, 1 }
 0x263   : > { %v7012_v43 = vadd.f32 %v3456_v17, %v3364_v8  ;;  %v7015_v38 = vmul.f32 %v5083_v37, %v6787_v32  ;;  %5096 = vrcp.f32 %v703_v56  ;;  %v1718_v51 = vsel %vm1683_vm3, %v1715_v60, %v1717_v55 }
 0x264   : > { %v7019_v41 = vmul.f32 %v5736_v29, %v1770_v39  ;;  %v2002_v45 = vmul.f32 %v5756_v52, %v1978_v22  ;;  %v7023_v3 = vmul.f32 %v5085_v62, %v6790_v59  ;;  %v1612_v5 = vmul.f32 %v6980_v9, %v8427_v33 }
 0x265   : > { %8514 = vst [vmem:[#allocation50_spill] sm:$0xff] %v7012_v43  ;;  %v8270_v53 = vrot.slane %v7005_v16, 2  ;;  %v7029_v32 = vsel %vm1683_vm3, %v2058_v57, %v2059_v25  ;;  %v7032_v17 = vmul.f32 %v8432_v27, %v2118_v12  ;;  %v1858_v8 = vrot.slane %v1796_v36, 2 }
 0x266   : > { %v2142_v14 = vmul.f32 %v8432_v27, %v1978_v22  ;;  %v2326_v10 = vunpack.c.l.bf16 %v2318_v6  ;;  %v1753_v59 = vadd.f32 %v1718_v51, %v1612_v5  ;;  %v7038_v23 = vmul.f32 %v6978_v21, %v5799_v35 }
 0x267   : > { %8515 = vst [vmem:[#allocation48_spill] sm:$0xff] %v7032_v17  ;;  %v7042_v4 = vmul.f32 %v6980_v9, %v5799_v35  ;;  %v7044_v18 = vunpack.c.l.bf16 %v4709_v50  ;;  %v2061_v60 = vrot.slane %v2002_v45, 1  ;;  %v7051_v22 = vmul.f32 %v6980_v9, %v8432_v27 }
 0x268   : > { %v7046_v56 = vpop.eup %5086  ;;  %v7053_v37 = vunpack.c.h.bf16 %v4709_v50  ;;  %v1859_v39 = vsel %vm1824_vm4, %v8270_v53, %v1858_v8  ;;  %v2346_v42 = vmul.f32 %v6978_v21, %v5810_v1  ;;  %v2466_v62 = vunpack.c.l.bf16 %v2458_v30  ;;  %v3043_v8 = vld [vmem:[#allocation2 + $0xa8] sm:$0xe] }
 0x269   : > { %8516 = vst [vmem:[#allocation57_spill] sm:$0xff] %v7042_v4  ;;  %8517 = vst [vmem:[#allocation29_spill] sm:$0xff] %v7044_v18  ;;  %v7055_v26 = vpop.eup %5088  ;;  %v2201_v12 = vrot.slane %v2142_v14, 2  ;;  %v2347_v55 = vmul.f32 %v6980_v9, %v5810_v1  ;;  %v2915_v36 = vunpack.c.l.bf16 %v2907_v44  ;;  %v2935_v57 = vmul.f32 %v7044_v18, %v5711_v47 }
 0x26a   : > { %8518 = vst [vmem:[#allocation51_spill] sm:$0xff] %v7046_v56  ;;  %v7063_v19 = vpop.eup %5090  ;;  %v7071_v51 = vadd.f32 %v1859_v39, %v1753_v59  ;;  %v7075_v45 = vmul.f32 %v6978_v21, %v5807_v61  ;;  %v7079_v50 = vmul.f32 %v6980_v9, %v5807_v61  ;;  %v2936_v5 = vmul.f32 %v7053_v37, %v5711_v47  ;;  %v3578_v56 = vld [vmem:[#allocation2 + $0xb0] sm:$0x1] }
 0x26b   : > { %8519 = vst [vmem:[#allocation53_spill] sm:$0xff] %v7063_v19  ;;  %v7069_v6 = vpop.eup %5092  ;;  %v7086_v30 = vsel %vm1683_vm3, %v2059_v25, %v2061_v60  ;;  %v2348_v44 = vmul.f32 %v5810_v1, %v2326_v10  ;;  %v2995_v39 = vrot.slane %v2935_v57, 1  ;;  %v2402_v21 = vrot.slane %v2346_v42, 1 }
 0x26c   : > { %8520 = vst [vmem:[#allocation39_spill] sm:$0xff] %v7071_v51  ;;  %v7083_v14 = vpop.eup %5094  ;;  %8521 = vst [vmem:[#allocation71_spill] sm:$0xff] %v7086_v30  ;;  %v2486_v31 = vmul.f32 %v6680_v54, %v2466_v62  ;;  %v2487_v11 = vmul.f32 %v6680_v54, %v6980_v9  ;;  %v2996_v53 = vrot.slane %v2936_v5, 1  ;;  %v2403_v46 = vrot.slane %v2347_v55, 1 }
 0x26d   : > { %v2897_v2 = vmul.f32 %v7044_v18, %v8427_v33  ;;  %v2937_v28 = vmul.f32 %v2915_v36, %v5711_v47  ;;  %v3051_v25 = vunpack.c.l.bf16 %v3043_v8  ;;  %v2488_v60 = vmul.f32 %v6680_v54, %v2326_v10  ;;  %v3242_v10 = vld [vmem:[#allocation2 + $0xb0] sm:$0x1] }
 0x26e   : > { %v2997_v59 = vsel %vm1683_vm3, %v2995_v39, %v2996_v53  ;;  %v7100_v42 = vmul.f32 %v7053_v37, %v5736_v29  ;;  %v3268_v62 = vmul.f32 %v7044_v18, %v5756_v52  ;;  %v8523_v55 = vrot.slane %v7051_v22, 2 }
 0x26f   : > { %v2405_v5 = vrot.slane %v2348_v44, 1  ;;  %v7111_v8 = vadd.f32 %v2997_v59, %v2897_v2  ;;  %v7115_v39 = vmul.f32 %v7053_v37, %v5756_v52  ;;  %v2542_v34 = vrot.slane %v2486_v31, 2  ;;  %v1620_v31 = vld [vmem:[#allocation2 + $0x44] sm:$0x1] }
 0x270   : > { %8522 = vst [vmem:[#allocation31_spill] sm:$0xff] %v7100_v42  ;;  %v7104_v9 = vpop.eup %5096  ;;  %v7109_v57 = vsel %vm1824_vm4, %v8523_v55, %v2201_v12  ;;  %v2543_v24 = vrot.slane %v2487_v11, 2  ;;  %v3073_v40 = vmul.f32 %v2915_v36, %v5736_v29  ;;  %v3326_v51 = vrot.slane %v3268_v62, 1  ;;  %v3714_v55 = vld [vmem:[#allocation2 + $0xa8] sm:$0xe]  ;;  %v1573_v62 = vld [vmem:[#allocation2 + $0x3c] sm:$0xff]  }
 0x271   : > { %8524 = vst [vmem:[#allocation68_spill] sm:$0xff] %v7109_v57  ;;  %8525 = vst [vmem:[#allocation24_spill] sm:$0xff] %v7111_v8  ;;  %v7119_v19 = vsel %vm1683_vm3, %v2402_v21, %v2403_v46  ;;  %v2998_v30 = vrot.slane %v2937_v28, 1  ;;  %v7122_v12 = vmul.f32 %v3051_v25, %v5736_v29  ;;  %v8276_v2 = vrot.slane %v7115_v39, 1 }
 0x272   : > { %8526 = vst [vmem:[#allocation21_spill] sm:$0xff] %v7115_v39  ;;  %v7126_v59 = vsel %vm1683_vm3, %v2403_v46, %v2405_v5  ;;  %v2545_v44 = vrot.slane %v2488_v60, 2  ;;  %v3250_v11 = vunpack.c.l.bf16 %v3242_v10  ;;  %v2898_v36 = vmul.f32 %v7053_v37, %v8427_v33 }
 0x273   : > { %8527 = vst [vmem:[#allocation74_spill] sm:$0xff] %v7122_v12  ;;  %v2999_v21 = vsel %vm1683_vm3, %v2996_v53, %v2998_v30  ;;  %v7135_v28 = vsel %vm1683_vm3, %v3326_v51, %v8276_v2  ;;  %v3586_v25 = vunpack.c.l.bf16 %v3578_v56  ;;  %v7138_v46 = vsel %vm1824_vm4, %v2542_v34, %v2543_v24  ;;  %v7150_v51 = vld [vmem:[#allocation2 + $0xa8] sm:$0xe] }
 0x274   : > { %8528 = vst [vmem:[#allocation27_spill] sm:$0xff] %v7135_v28  ;;  %v7141_v60 = vsel %vm1824_vm4, %v2543_v24, %v2545_v44  ;;  %v3134_v5 = vrot.slane %v3073_v40, 2  ;;  %v3602_v10 = vmul.f32 %v7044_v18, %v5810_v1  ;;  %v7148_v30 = vmul.f32 %v7053_v37, %v5799_v35  ;;  %8530 = vst [vmem:[#allocation16_spill] sm:$0xff] %v7150_v51 }
 0x275   : > { %v7154_v34 = vmul.f32 %v7053_v37, %v5810_v1  ;;  %v3722_v56 = vunpack.c.l.bf16 %v3714_v55  ;;  %v7156_v24 = vadd.f32 %v2999_v21, %v2898_v36  ;;  %v8532_v40 = vrot.slane %v7100_v42, 2  ;;  %v1761_v36 = vld [vmem:[#allocation2 + $0x3c] sm:$0xe] }
 0x276   : > { %8529 = vst [vmem:[#allocation25_spill] sm:$0xff] %v7148_v30  ;;  %v7164_v2 = vmul.f32 %v3250_v11, %v5756_v52  ;;  %v1589_v53 = vunpack.c.l.bf16 %v1573_v62  ;;  %v7167_v28 = vmul.f32 %v3586_v25, %v5810_v1  ;;  %v7171_v57 = vmul.f32 %v6680_v54, %v7053_v37 }
 0x277   : > { %8531 = vst [vmem:[#allocation59_spill] sm:$0xff] %v7156_v24  ;;  %v7161_v44 = vsel %vm1824_vm4, %v8532_v40, %v3134_v5  ;;  %v1590_v39 = vunpack.c.h.bf16 %v1573_v62  ;;  %v1628_v55 = vunpack.c.l.bf16 %v1620_v31  ;;  %v7176_v5 = vmul.f32 %v7053_v37, %v8432_v27  ;;  %v1905_v62 = vld [vmem:[#allocation2 + $0x3c] sm:$0xff]   ;;  %v1969_v24 = vld [vmem:[#allocation2 + $0x44] sm:$0x1] }
 0x278   : > { %8533 = vst [vmem:[#allocation75_spill] sm:$0xff] %v7161_v44  ;;  %8534 = vst [vmem:[#allocation76_spill] sm:$0xff] %v7164_v2  ;;  %v7179_v40 = vmul.f32 %v3250_v11, %v8432_v27  ;;  %v3658_v44 = vrot.slane %v3602_v10, 1  ;;  %v7183_v30 = vmul.f32 %v6680_v54, %v3722_v56  ;;  %v1650_v2 = vmul.f32 %v5711_v47, %v1589_v53 }
 0x279   : > { %8535 = vst [vmem:[#allocation77_spill] sm:$0xff] %v7176_v5  ;;  %v1651_v31 = vmul.f32 %v5711_v47, %v1590_v39  ;;  %v7189_v21 = vmul.f32 %v7044_v18, %v5807_v61  ;;  %v7193_v5 = vmul.f32 %v7053_v37, %v5807_v61  ;;  %v7196_v11 = vmul.f32 %v6680_v54, %v3586_v25  ;;  %v2109_v25 = vld [vmem:[#allocation2 + $0x3c] sm:$0xe] }
 0x27a   : > { %8536 = vst [vmem:[#allocation78_spill] sm:$0xff] %v7179_v40  ;;  %v1769_v10 = vunpack.c.l.bf16 %v1761_v36  ;;  %v1652_v51 = vmul.f32 %v5711_v47, %v1628_v55  ;;  %v1709_v8 = vrot.slane %v1650_v2, 1  ;;  %v7202_v18 = vmul.f32 %v5736_v29, %v1590_v39  ;;  %v2252_v40 = vld [vmem:[#allocation2 + $0x3c] sm:$0xff]  }
 0x27b   : > { %8537 = vst [vmem:[#allocation79_spill] sm:$0xff] %v7189_v21  ;;  %8538 = vst [vmem:[#allocation80_spill] sm:$0xff] %v7193_v5  ;;  %v1710_v43 = vrot.slane %v1651_v31, 1  ;;  %v1921_v21 = vunpack.c.l.bf16 %v1905_v62  ;;  %v1922_v13 = vunpack.c.h.bf16 %v1905_v62  ;;  %v8539_v37 = vrot.slane %v7154_v34, 1 }
 0x27c   : > { %v1791_v36 = vmul.f32 %v5736_v29, %v1769_v10  ;;  %v1977_v56 = vunpack.c.l.bf16 %v1969_v24  ;;  %v1609_v2 = vmul.f32 %v8427_v33, %v1589_v53  ;;  %v7214_v31 = vmul.f32 %v8427_v33, %v1590_v39  ;;  %v8541_v33 = vld [vmem:[#allocation66_spill] sm:$0xff] }
 0x27d   : > { %v7207_v54 = vsel %vm1683_vm3, %v3658_v44, %v8539_v37  ;;  %v1941_v5 = vmul.f32 %v5799_v35, %v1921_v21  ;;  %v1712_v62 = vrot.slane %v1652_v51, 1  ;;  %v7218_v12 = vmul.f32 %v5736_v29, %v1628_v55 }
 0x27e   : > { %8540 = vst [vmem:[#allocation81_spill] sm:$0xff] %v7207_v54  ;;  %v1942_v44 = vmul.f32 %v5799_v35, %v1922_v13  ;;  %v1997_v37 = vmul.f32 %v5756_v52, %v1921_v21  ;;  %v1711_v24 = vsel %vm1683_vm3, %v1709_v8, %v1710_v43  ;;  %v1998_v53 = vmul.f32 %v5756_v52, %v1922_v13 }
 0x27f   : > { %v1999_v39 = vmul.f32 %v5756_v52, %v1977_v56  ;;  %v1850_v54 = vrot.slane %v1791_v36, 2  ;;  %v1957_v51 = vadd.f32 %v1941_v5, %v6744_v20  ;;  %v2117_v47 = vunpack.c.l.bf16 %v2109_v25  ;;  %v2317_v52 = vld [vmem:[#allocation2 + $0x44] sm:$0x1] }
 0x280   : > { %v1958_v55 = vadd.f32 %v1942_v44, %v8541_v33  ;;  %v2053_v42 = vrot.slane %v1997_v37, 1  ;;  %v2054_v29 = vrot.slane %v1998_v53, 1  ;;  %v2138_v21 = vmul.f32 %v8432_v27, %v1922_v13  ;;  %v2457_v44 = vld [vmem:[#allocation2 + $0x3c] sm:$0xe] }
 0x281   : > { %v2056_v35 = vrot.slane %v1999_v39, 1  ;;  %v7230_v8 = vsel %vm1683_vm3, %v1710_v43, %v1712_v62  ;;  %v1750_v10 = vadd.f32 %v1711_v24, %v1609_v2  ;;  %v2139_v4 = vmul.f32 %v8432_v27, %v1977_v56 }
 0x282   : > { %v2268_v17 = vunpack.c.l.bf16 %v2252_v40  ;;  %v2055_v36 = vsel %vm1683_vm3, %v2053_v42, %v2054_v29  ;;  %v2137_v33 = vmul.f32 %v8432_v27, %v2117_v47  ;;  %v2194_v5 = vrot.slane %v2138_v21, 2 }
 0x283   : > { %v2057_v20 = vsel %vm1683_vm3, %v2054_v29, %v2056_v35  ;;  %v8542_v25 = vrot.slane %v7202_v18, 2  ;;  %v2097_v37 = vadd.f32 %v2055_v36, %v1957_v51  ;;  %v2196_v62 = vrot.slane %v2139_v4, 2  ;;  %v8544_v51 = vld [vmem:[#allocation72_spill] sm:$0xff] }
 0x284   : > { %v2098_v43 = vadd.f32 %v2057_v20, %v1958_v55  ;;  %v2193_v2 = vrot.slane %v2137_v33, 2  ;;  %v2269_v24 = vunpack.c.h.bf16 %v2252_v40  ;;  %v2288_v56 = vmul.f32 %v5807_v61, %v2268_v17  ;;  %v7251_v33 = vld [vmem:[#allocation8 + $0x8] ss:$0 sm:$0xff] }
 0x285   : > { %v1852_v13 = vsel %vm1824_vm4, %v1850_v54, %v8542_v25  ;;  %v2325_v53 = vunpack.c.l.bf16 %v2317_v52  ;;  %v2197_v42 = vsel %vm1824_vm4, %v2194_v5, %v2196_v62  ;;  %v2343_v29 = vmul.f32 %v5810_v1, %v2268_v17 }
 0x286   : > { %v2465_v35 = vunpack.c.l.bf16 %v2457_v44  ;;  %v8543_v47 = vshrl.u32 %v7007_v49, 16  ;;  %v2195_v21 = vsel %vm1824_vm4, %v2193_v2, %v2194_v5  ;;  %v2238_v27 = vadd.f32 %v2197_v42, %v2098_v43 }
 0x287   : > { %v2289_v54 = vmul.f32 %v5807_v61, %v2269_v24  ;;  %v2304_v4 = vadd.f32 %v2288_v56, %v8544_v51  ;;  %v2237_v55 = vadd.f32 %v2195_v21, %v2097_v37  ;;  %v2344_v40 = vmul.f32 %v5810_v1, %v2269_v24 }
 0x288   : > { %v1389_v39 = vrot.slane %v8543_v47, 7  ;;  %v2345_v52 = vmul.f32 %v5810_v1, %v2325_v53  ;;  %v2397_v36 = vrot.slane %v2343_v29, 1  ;;  %v2307_v17 = vadd.f32 %v7079_v50, %v2238_v27 }
 0x289   : > { %v2305_v20 = vadd.f32 %v2289_v54, %v6986_v7  ;;  %v2483_v44 = vmul.f32 %v7251_v33, %v2465_v35  ;;  %v2484_v5 = vmul.f32 %v7251_v33, %v2269_v24  ;;  %v2306_v25 = vadd.f32 %v7075_v45, %v2237_v55 }
 0x28a   : > { %v2398_v43 = vrot.slane %v2344_v40, 1  ;;  %v2400_v62 = vrot.slane %v2345_v52, 1  ;;  %v2485_v37 = vmul.f32 %v7251_v33, %v2325_v53  ;;  %v2447_v2 = vadd.f32 %v7126_v59, %v2307_v17  ;;  %v7283_v17 = vld [vmem:[%s8200_s6] ss:$0 sm:$0xff] }
 0x28b   : > { %v2537_v56 = vrot.slane %v2483_v44, 2  ;;  %v2538_v42 = vrot.slane %v2484_v5, 2  ;;  %v1390_v7 = vshll.u32 %v7007_v49, 16  ;;  %v2446_v29 = vadd.f32 %v7119_v19, %v2306_v25  ;;  %v7271_v19 = vld [vmem:[%s8199_s5] ss:$0 sm:$0xff] }
 0x28c   : > { %v2399_v27 = vsel %vm1683_vm3, %v2397_v36, %v2398_v43  ;;  %v2401_v50 = vsel %vm1683_vm3, %v2398_v43, %v2400_v62  ;;  %v2540_v35 = vrot.slane %v2485_v37, 2  ;;  %v2587_v21 = vadd.f32 %v7141_v60, %v2447_v2 }
 0x28d   : > { %v2444_v24 = vadd.f32 %v2399_v27, %v2304_v4  ;;  %v2445_v47 = vadd.f32 %v2401_v50, %v2305_v20  ;;  %v2539_v45 = vsel %vm1824_vm4, %v2537_v56, %v2538_v42  ;;  %v2586_v59 = vadd.f32 %v7138_v46, %v2446_v29  ;;  %v8550_v29 = vld [vmem:[#allocation67_spill] sm:$0xff] }
 0x28e   : > { %v2541_v53 = vsel %vm1824_vm4, %v2538_v42, %v2540_v35  ;;  %v1392_v54 = vor.u32 %v1390_v7, %v1389_v39  ;;  %v1442_v49 = vsel %vm5706_vm2, %v1389_v39, 0  ;;  %v2609_v4 = vmul.f32 %v7271_v19, %v2587_v21 }
 0x28f   : > { %v2584_v51 = vadd.f32 %v2539_v45, %v2444_v24  ;;  %v2585_v55 = vadd.f32 %v2541_v53, %v2445_v47  ;;  %v4381_v40 = vcombine.low %v1442_v49, %v1442_v49  ;;  %v1853_v60 = vrot.slane %v7218_v12, 2 }
 0x290   : > { %v1891_v52 = vadd.f32 %v1852_v13, %v1750_v10  ;;  %v2608_v36 = vmul.f32 %v7271_v19, %v2586_v59  ;;  %v1434_v46 = vsel %vm5706_vm2, 0, %v1392_v54  ;;  %v7286_v44 = vadd.f32 %v7283_v17, %v2609_v4 }
 0x291   : > { %v2606_v39 = vmul.f32 %v7271_v19, %v2584_v51  ;;  %v2607_v20 = vmul.f32 %v7271_v19, %v2585_v55  ;;  %v4379_v5 = vcombine.low %v1434_v46, %v1434_v46  ;;  %1549 = vst [vmem:[#allocation2 + $0xa4] sm:$0x1] %v4381_v40  ;;  %v1751_v12 = vadd.f32 %v7230_v8, %v7214_v31  ;;  %v8558_v51 = vld [vmem:[#allocation57_spill] sm:$0xff] }
 0x292   : > { %v7291_v10 = vadd.f32 %v7283_v17, %v2608_v36  ;;  %v4380_v13 = vcombine.high %v1434_v46, %v1434_v46  ;;  %v753_v25 = vmul.f32 %v7069_v6, %v6874_v15  ;;  %v4403_v37 = vmul.f32 -1.442695, %v7286_v44  ;;  %v8559_v36 = vld [vmem:[#allocation17_spill] sm:$0xff] }
 0x293   : > { %v7296_v43 = vadd.f32 %v7283_v17, %v2606_v39  ;;  %v7299_v62 = vadd.f32 %v7283_v17, %v2607_v20  ;;  %1547 = vst [vmem:[#allocation2 + $0x9c] sm:$0xf] %v4379_v5  ;;  %v1349_v2 = vmul.f32 %v7083_v14, %v6883_v63  ;;  %v8545_v31 = vrot.slane %v7167_v28, 1 }
 0x294   : > { %v8546_v8 = vrot.slane %v7154_v34, 1  ;;  %v8547_v15 = vrot.slane %v7202_v18, 2  ;;  %v1959_v42 = vadd.f32 %v7038_v23, %v1891_v52  ;;  %v4402_v7 = vmul.f32 -1.442695, %v7291_v10  ;;  %1548 = vst [vmem:[#allocation2 + $0xa0] sm:$0xf] %v4380_v13 }
 0x295   : > { %v4400_v27 = vmul.f32 -1.442695, %v7296_v43  ;;  %v4401_v63 = vmul.f32 -1.442695, %v7299_v62  ;;  %5098 = vpow2.f32 %v4403_v37  ;;  %v751_v14 = vmul.f32 %v7104_v9, %v6887_v48 }
 0x296   : > { %v7309_v56 = vsel %vm1683_vm3, %v8546_v8, %v8545_v31  ;;  %v1854_v6 = vsel %vm1824_vm4, %v8547_v15, %v1853_v60  ;;  %v8548_v28 = vrot.slane %v7171_v57, 2  ;;  %v8549_v34 = vrot.slane %v7183_v30, 2  ;;  %v8556_v57 = vld [vmem:[#allocation48_spill] sm:$0xff] }
 0x297   : > { %v1892_v50 = vadd.f32 %v1854_v6, %v1751_v12  ;;  %5100 = vpow2.f32 %v4402_v7  ;;  %v7328_v23 = vpack.c.bf16 %v753_v25, %v7015_v38  ;;  %v750_v35 = vmul.f32 %v7055_v26, %v8550_v29  ;;  %v8561_v8 = vld [vmem:[#allocation20_spill] sm:$0xff] }
 0x298   : > { %v7325_v18 = vsel %vm1824_vm4, %v8549_v34, %v8548_v28  ;;  %5102 = vpow2.f32 %v4400_v27  ;;  %v7333_v24 = vpack.c.bf16 %v1349_v2, %v7023_v3  ;;  %v8551_v48 = vrot.slane %v7005_v16, 2  ;;  %v2906_v21 = vld [vmem:[#allocation2 + $0xa4] sm:$0x1]  ;;  %v8560_v2 = vld [vmem:[#allocation18_spill] sm:$0xff] }
 0x299   : > { %v8552_v9 = vrot.slane %v7019_v41, 2  ;;  %v8553_v47 = vrot.slane %v7196_v11, 2  ;;  %v8554_v45 = vmov %v8548_v28  ;;  %5104 = vpow2.f32 %v4401_v63  ;;  %v7347_v53 = vld [vmem:[#allocation2 + $0xa4] sm:$0x1]  ;;  %v8564_v34 = vld [vmem:[#allocation74_spill] sm:$0xff] }
 0x29a   : > { %v2099_v16 = vadd.f32 %v7029_v32, %v1959_v42  ;;  %v2914_v26 = vunpack.c.l.bf16 %v2906_v21  ;;  %v3249_v41 = vunpack.c.l.bf16 %v7347_v53  ;;  %v7354_v59 = vpack.c.bf16 %v751_v14, %v750_v35  ;;  %v3042_v4 = vld [vmem:[#allocation2 + $0x9c] sm:$0xe]  ;;  %v7364_v40 = vld [vmem:[#allocation2 + $0xa4] sm:$0x1] }
 0x29b   : > { %v1857_v30 = vsel %vm1824_vm4, %v8552_v9, %v8551_v48  ;;  %v7345_v38 = vsel %vm1824_vm4, %v8554_v45, %v8553_v47  ;;  %v8555_v11 = vrot.slane %v7051_v22, 2  ;;  %v8557_v54 = vrot.slane %v8556_v57, 2  ;;  %v2863_v52 = vld [vmem:[#allocation2 + $0x9c] sm:$0xff]  }
 0x29c   : > { %v7350_v3 = vadd.f32 %v1857_v30, %v7009_v58  ;;  %v7362_v55 = vadd.f32 %v8558_v51, %v1892_v50  ;;  %v812_v58 = vshrl.u32 %v7328_v23, 16  ;;  %v815_v32 = vshll.u32 %v7328_v23, 16  ;;  %v3181_v39 = vld [vmem:[#allocation2 + $0x9c] sm:$0xff]  }
 0x29d   : > { %v2200_v49 = vsel %vm1824_vm4, %v8557_v54, %v8555_v11  ;;  %v2934_v46 = vmul.f32 %v2914_v26, %v8559_v36  ;;  %v3050_v22 = vunpack.c.l.bf16 %v3042_v4  ;;  %v2879_v12 = vunpack.c.l.bf16 %v2863_v52  ;;  %v8562_v14 = vld [vmem:[#allocation31_spill] sm:$0xff]  ;;  %v8566_v30 = vld [vmem:[#allocation22_spill] sm:$0xff] }
 0x29e   : > { %v7368_v60 = vadd.f32 %v2200_v49, %v2099_v16  ;;  %v2880_v13 = vunpack.c.h.bf16 %v2863_v52  ;;  %v3197_v25 = vunpack.c.l.bf16 %v3181_v39  ;;  %v3198_v37 = vunpack.c.h.bf16 %v3181_v39  ;;  %v3377_v11 = vld [vmem:[#allocation2 + $0x9c] sm:$0xe]  ;;  %v8567_v57 = vld [vmem:[#allocation19_spill] sm:$0xff] }
 0x29f   : > { %v3070_v31 = vmul.f32 %v2914_v26, %v8560_v2  ;;  %v3267_v15 = vmul.f32 %v3249_v41, %v8561_v8  ;;  %v3585_v6 = vunpack.c.l.bf16 %v7364_v40  ;;  %v2932_v7 = vmul.f32 %v2879_v12, %v8559_v36  ;;  %v3516_v20 = vld [vmem:[#allocation2 + $0x9c] sm:$0xff]  }
 0x2a0   : > { %v2933_v27 = vmul.f32 %v2880_v13, %v8559_v36  ;;  %v7381_v63 = vrot.slane %v812_v58, 7  ;;  %v8563_v28 = vrot.slane %v8562_v14, 2  ;;  %v8565_v50 = vrot.slane %v8564_v34, 2  ;;  %v8568_v14 = vld [vmem:[#allocation73_spill] sm:$0xff] }
 0x2a1   : > { %v2993_v35 = vrot.slane %v2934_v46, 1  ;;  %v7391_v48 = vmul.f32 %v3050_v22, %v8560_v2  ;;  %v7394_v9 = vmul.f32 %v2880_v13, %v8560_v2  ;;  %v3213_v47 = vmul.f32 %v3197_v25, %v8566_v30 }
 0x2a2   : > { %v7388_v29 = vsel %vm1824_vm4, %v8565_v50, %v8563_v28  ;;  %v2990_v45 = vrot.slane %v2932_v7, 1  ;;  %v2991_v21 = vrot.slane %v2933_v27, 1  ;;  %v3265_v16 = vmul.f32 %v3197_v25, %v8561_v8  ;;  %v5099_v58 = vpop.eup %5098 }
 0x2a3   : > { %v3266_v26 = vmul.f32 %v3198_v37, %v8561_v8  ;;  %v2895_v54 = vmul.f32 %v2879_v12, %v8567_v57  ;;  %v3129_v49 = vrot.slane %v3070_v31, 2  ;;  %v3214_v51 = vmul.f32 %v3198_v37, %v8566_v30 }
 0x2a4   : > { %v3324_v4 = vrot.slane %v3267_v15, 1  ;;  %v2992_v52 = vsel %vm1683_vm3, %v2990_v45, %v2991_v21  ;;  %v3127_v46 = vrot.slane %v7394_v9, 2  ;;  %v3321_v22 = vrot.slane %v3265_v16, 1  ;;  %v5101_v7 = vpop.eup %5100 }
 0x2a5   : > { %v3322_v39 = vrot.slane %v3266_v26, 1  ;;  %v2695_v27 = vadd.f32 1.0, %v5099_v58  ;;  %v2994_v25 = vsel %vm1683_vm3, %v2991_v21, %v2993_v35  ;;  %v3229_v28 = vadd.f32 %v3213_v47, %v8568_v14  ;;  %v5103_v50 = vpop.eup %5102  ;;  %v8569_v26 = vld [vmem:[#allocation30_spill] sm:$0xff] }
 0x2a6   : > { %v3385_v34 = vunpack.c.l.bf16 %v3377_v11  ;;  %v2694_v12 = vadd.f32 1.0, %v5101_v7  ;;  %v2896_v31 = vmul.f32 %v2880_v13, %v8567_v57  ;;  %v3126_v15 = vrot.slane %v7391_v48, 2  ;;  %v5105_v45 = vpop.eup %5104  ;;  %v8595_v48 = vld [vmem:[#allocation29_spill] sm:$0xff] }
 0x2a7   : > { %v3323_v42 = vsel %vm1683_vm3, %v3321_v22, %v3322_v39  ;;  %v2692_v5 = vadd.f32 1.0, %v5103_v50  ;;  %5106 = vrcp.f32 %v2695_v27  ;;  %v7408_v16 = vadd.f32 %v2992_v52, %v2895_v54  ;;  %v8570_v22 = vld [vmem:[#allocation23_spill] sm:$0xff]  ;;  %v3713_v27 = vld [vmem:[#allocation2 + $0x9c] sm:$0xe] }
 0x2a8   : > { %v3230_v58 = vadd.f32 %v3214_v51, %v8569_v26  ;;  %v2693_v35 = vadd.f32 1.0, %v5105_v45  ;;  %5108 = vrcp.f32 %v2694_v12  ;;  %v7411_v47 = vadd.f32 %v2994_v25, %v2896_v31  ;;  %v8571_v12 = vld [vmem:[#allocation70_spill] sm:$0xff] }
 0x2a9   : > { %v3325_v21 = vsel %vm1683_vm3, %v3322_v39, %v3324_v4  ;;  %5110 = vrcp.f32 %v2692_v5  ;;  %v7417_v13 = vsel %vm1824_vm4, %v3127_v46, %v3129_v49  ;;  %v3365_v11 = vadd.f32 %v3323_v42, %v3229_v28 }
 0x2aa   : > { %v3401_v7 = vmul.f32 %v3385_v34, %v8570_v22  ;;  %5112 = vrcp.f32 %v2693_v35  ;;  %v3402_v54 = vmul.f32 %v3198_v37, %v8570_v22  ;;  %v3403_v51 = vmul.f32 %v3249_v41, %v8570_v22  ;;  %v8572_v35 = vld [vmem:[#allocation50_spill] sm:$0xff] }
 0x2ab   : > { %v3532_v52 = vunpack.c.l.bf16 %v3516_v20  ;;  %v3366_v25 = vadd.f32 %v3325_v21, %v3230_v58  ;;  %v3533_v5 = vunpack.c.h.bf16 %v3516_v20  ;;  %v3601_v49 = vmul.f32 %v3585_v6, %v5810_v1 }
 0x2ac   : > { %v3457_v4 = vrot.slane %v3401_v7, 2  ;;  %v3458_v39 = vrot.slane %v3402_v54, 2  ;;  %v3460_v42 = vrot.slane %v3403_v51, 2  ;;  %v3721_v34 = vunpack.c.l.bf16 %v3713_v27 }
 0x2ad   : > { %v3548_v14 = vmul.f32 %v3532_v52, %v5807_v61  ;;  %v3599_v28 = vmul.f32 %v3532_v52, %v5810_v1  ;;  %v3549_v37 = vmul.f32 %v3533_v5, %v5807_v61  ;;  %v3600_v53 = vmul.f32 %v3533_v5, %v5810_v1 }
 0x2ae   : > { %v3656_v41 = vrot.slane %v3601_v49, 1  ;;  %v3459_v50 = vsel %vm1824_vm4, %v3457_v4, %v3458_v39  ;;  %v3461_v20 = vsel %vm1824_vm4, %v3458_v39, %v3460_v42  ;;  %v3735_v54 = vmul.f32 %v7251_v33, %v3721_v34  ;;  %v8573_v4 = vld [vmem:[#allocation79_spill] sm:$0xff]  ;;  %v8574_v39 = vld [vmem:[#allocation80_spill] sm:$0xff] }
 0x2af   : > { %v3564_v31 = vadd.f32 %v3548_v14, %v8571_v12  ;;  %v3653_v45 = vrot.slane %v3599_v28, 1  ;;  %v3501_v26 = vadd.f32 %v3459_v50, %v3365_v11  ;;  %v3502_v58 = vadd.f32 %v3461_v20, %v3366_v25 }
 0x2b0   : > { %v3565_v21 = vadd.f32 %v3549_v37, %v8572_v35  ;;  %v3654_v7 = vrot.slane %v3600_v53, 1  ;;  %v3736_v51 = vmul.f32 %v7251_v33, %v3533_v5  ;;  %v3737_v52 = vmul.f32 %v7251_v33, %v3585_v6  ;;  %v8575_v53 = vld [vmem:[#allocation81_spill] sm:$0xff] }
 0x2b1   : > { %v817_v27 = vor.u32 %v815_v32, %v7381_v63  ;;  %v3566_v49 = vadd.f32 %v8573_v4, %v3501_v26  ;;  %v3567_v11 = vadd.f32 %v8574_v39, %v3502_v58  ;;  %v3789_v37 = vrot.slane %v3735_v54, 2 }
 0x2b2   : > { %v3655_v25 = vsel %vm1683_vm3, %v3653_v45, %v3654_v7  ;;  %v3657_v42 = vsel %vm1683_vm3, %v3654_v7, %v3656_v41  ;;  %v3790_v5 = vrot.slane %v3736_v51, 2  ;;  %v3792_v34 = vrot.slane %v3737_v52, 2 }
 0x2b3   : > { %v3700_v14 = vadd.f32 %v3655_v25, %v3564_v31  ;;  %v3701_v28 = vadd.f32 %v3657_v42, %v3565_v21  ;;  %v3702_v40 = vadd.f32 %v8575_v53, %v3566_v49  ;;  %v3703_v6 = vadd.f32 %v7309_v56, %v3567_v11 }
 0x2b4   : > { %v844_v23 = vsel %vm5706_vm2, 0, %v817_v27  ;;  %v5107_v32 = vpop.eup %5106  ;;  %v3791_v50 = vsel %vm1824_vm4, %v3789_v37, %v3790_v5  ;;  %v852_v20 = vsel %vm5706_vm2, %v7381_v63, 0  ;;  %v3793_v26 = vsel %vm1824_vm4, %v3790_v5, %v3792_v34 }
 0x2b5   : > { %v4314_v41 = vcombine.low %v844_v23, %v844_v23  ;;  %v4315_v12 = vcombine.high %v844_v23, %v844_v23  ;;  %v5109_v31 = vpop.eup %5108  ;;  %v7456_v45 = vmul.f32 %v5107_v32, %v7286_v44  ;;  %v3836_v56 = vadd.f32 %v3791_v50, %v3700_v14 }
 0x2b6   : > { %v3838_v58 = vadd.f32 %v7325_v18, %v3702_v40  ;;  %v5111_v35 = vpop.eup %5110  ;;  %v7461_v21 = vmul.f32 %v5109_v31, %v7291_v10  ;;  %v3837_v7 = vadd.f32 %v3793_v26, %v3701_v28  ;;  %v3839_v54 = vadd.f32 %v7345_v38, %v3703_v6 }
 0x2b7   : > { %8576 = vst [vmem:[#allocation66_spill] sm:$0xff] %v7456_v45  ;;  %v4316_v51 = vcombine.low %v852_v20, %v852_v20  ;;  %963 = vst [vmem:[#allocation2 + $0x60] sm:$0xf] %v4314_v41  ;;  %v5113_v63 = vpop.eup %5112  ;;  %v7465_v44 = vmul.f32 %v5111_v35, %v7296_v43  ;;  %v3852_v52 = vmul.f32 %v7271_v19, %v3836_v56  ;;  %v8579_v18 = vshrl.u32 %v7333_v24, 16  ;;  %v8583_v56 = vld [vmem:[#allocation24_spill] sm:$0xff] }
 0x2b8   : > { %8577 = vst [vmem:[#allocation72_spill] sm:$0xff] %v7461_v21  ;;  %964 = vst [vmem:[#allocation2 + $0x64] sm:$0xf] %v4315_v12  ;;  %v3854_v27 = vmul.f32 %v7271_v19, %v3838_v58  ;;  %v7472_v10 = vmul.f32 %v5113_v63, %v7299_v62  ;;  %v4585_v38 = vpack.c.bf16 %v7456_v45, %v7461_v21  ;;  %v8581_v25 = vshll.u32 %v7333_v24, 16  ;;  %v8585_v35 = vld [vmem:[#allocation76_spill] sm:$0xff] }
 0x2b9   : > { %8578 = vst [vmem:[#allocation67_spill] sm:$0xff] %v7465_v44  ;;  %v1410_v4 = vrot.slane %v8579_v18, 7  ;;  %v3853_v49 = vmul.f32 %v7271_v19, %v3837_v7  ;;  %v3855_v39 = vmul.f32 %v7271_v19, %v3839_v54  ;;  %965 = vst [vmem:[#allocation2 + $0x68] sm:$0x1] %v4316_v51  ;;  %v7479_v43 = vadd.f32 %v7283_v17, %v3852_v52  ;;  %v8586_v54 = vld [vmem:[#allocation16_spill] sm:$0xff]  ;;  %v8588_v52 = vld [vmem:[#allocation77_spill] sm:$0xff] }
 0x2ba   : > { %8580 = vst [vmem:[#allocation48_spill] sm:$0xff] %v7472_v10  ;;  %v7482_v11 = vadd.f32 %v7283_v17, %v3854_v27  ;;  %v4580_v14 = vpack.c.bf16 %v7472_v10, %v7465_v44  ;;  %4703 = vst [vmem:[%s6306_s18 + $0x20] sm:$0xff] %v4585_v38   ;;  %v8582_v6 = vshrl.u32 %v7354_v59, 16  ;;  %v3168_v41 = vadd.f32 %v7417_v13, %v7411_v47  ;;  %v8589_v47 = vld [vmem:[#allocation71_spill] sm:$0xff] }
 0x2bb   : > { %v1413_v42 = vor.u32 %v8581_v25, %v1410_v4  ;;  %v1445_v62 = vsel %vm5706_vm2, %v1410_v4, 0  ;;  %v7492_v28 = vadd.f32 %v7283_v17, %v3853_v49  ;;  %v7495_v37 = vadd.f32 %v7283_v17, %v3855_v39  ;;  %v8590_v25 = vld [vmem:[#allocation78_spill] sm:$0xff] }
 0x2bc   : > { %v4390_v5 = vcombine.low %v1445_v62, %v1445_v62  ;;  %v4432_v53 = vmul.f32 -1.442695, %v7479_v43  ;;  %v4434_v40 = vmul.f32 -1.442695, %v7482_v11  ;;  %v807_v34 = vrot.slane %v8582_v6, 7  ;;  %4702 = vst [vmem:[%s6306_s18 + $0x18] sm:$0xff] %v4580_v14  }
 0x2bd   : > { %v1437_v24 = vsel %vm5706_vm2, 0, %v1413_v42  ;;  %v4433_v23 = vmul.f32 -1.442695, %v7492_v28  ;;  %v4435_v32 = vmul.f32 -1.442695, %v7495_v37  ;;  %v7512_v58 = vadd.f32 %v7388_v29, %v8583_v56  ;;  %v8591_v14 = vld [vmem:[#allocation25_spill] sm:$0xff] }
 0x2be   : > { %v4388_v50 = vcombine.low %v1437_v24, %v1437_v24  ;;  %v4389_v20 = vcombine.high %v1437_v24, %v1437_v24  ;;  %1558 = vst [vmem:[#allocation2 + $0xc8] sm:$0x1] %v4390_v5  ;;  %5114 = vpow2.f32 %v4432_v53  ;;  %v2112_v31 = vld [vmem:[#allocation2 + $0x60] sm:$0xe]  ;;  %v851_v26 = vsel %vm5706_vm2, %v807_v34, 0 }
 0x2bf   : > { %v4696_v12 = vld [vmem:[#allocation2 + $0x60] sm:$0xff]   ;;  %8584 = vst [vmem:[#allocation57_spill] sm:$0xff] %v7512_v58  ;;  %v3329_v7 = vrot.slane %v8585_v35, 1  ;;  %v8587_v51 = vunpack.c.l.bf16 %v8586_v54  ;;  %v8294_v27 = vrot.slane %v8588_v52, 2  ;;  %5116 = vpow2.f32 %v4433_v23  ;;  %v8601_v54 = vld [vmem:[#allocation68_spill] sm:$0xff] }
 0x2c0   : > { %1556 = vst [vmem:[#allocation2 + $0xc0] sm:$0xf] %v4388_v50  ;;  %1557 = vst [vmem:[#allocation2 + $0xc4] sm:$0xf] %v4389_v20  ;;  %v2100_v13 = vadd.f32 %v8589_v47, %v7362_v55  ;;  %5118 = vpow2.f32 %v4434_v40  ;;  %v4544_v18 = vunpack.c.l.bf16 %v4696_v12  ;;  %v1972_v4 = vld [vmem:[#allocation2 + $0x68] sm:$0x1]  ;;  %v4313_v29 = vcombine.low %v851_v26, %v851_v26 }
 0x2c1   : > { %v7518_v63 = vmul.f32 %v8587_v51, %v8570_v22  ;;  %v3128_v38 = vsel %vm1824_vm4, %v3126_v15, %v3127_v46  ;;  %5120 = vpow2.f32 %v4435_v32  ;;  %v7528_v49 = vunpack.c.h.bf16 %v4696_v12  ;;  %v8592_v53 = vld [vmem:[#allocation59_spill] sm:$0xff]  ;;  %v8596_v46 = vld [vmem:[#allocation21_spill] sm:$0xff]  ;;  %v8599_v32 = vld [vmem:[#allocation58_spill] sm:$0xff] }
 0x2c2   : > { %v2120_v39 = vunpack.c.l.bf16 %v2112_v31  ;;  %v3465_v42 = vrot.slane %v8590_v25, 2  ;;  %v3167_v62 = vadd.f32 %v3128_v38, %v7408_v16  ;;  %v3232_v55 = vadd.f32 %v8591_v14, %v3168_v41  ;;  %962 = vst [vmem:[#allocation2 + $0x5c] sm:$0x1] %v4313_v29  ;;  %v8593_v40 = vld [vmem:[#allocation75_spill] sm:$0xff]  ;;  %v8600_v50 = vld [vmem:[#allocation53_spill] sm:$0xff] }
 0x2c3   : > { %v1980_v5 = vunpack.c.l.bf16 %v1972_v4  ;;  %v7535_v24 = vadd.f32 %v8593_v40, %v8592_v53  ;;  %v3215_v9 = vmul.f32 %v8595_v48, %v8566_v30  ;;  %v8597_v15 = vrot.slane %v8596_v46, 1  ;;  %v2460_v12 = vld [vmem:[#allocation2 + $0x60] sm:$0xe]  ;;  %v2901_v29 = vld [vmem:[#allocation2 + $0x68] sm:$0x1] }
 0x2c4   : > { %v7546_v16 = vsel %vm1824_vm4, %v8294_v27, %v3465_v42  ;;  %v7550_v20 = vmul.f32 %v8600_v50, %v8599_v32  ;;  %v7553_v41 = vmul.f32 %v4544_v18, %v8561_v8  ;;  %v3037_v31 = vld [vmem:[#allocation2 + $0x60] sm:$0xe]  ;;  %v808_v26 = vshll.u32 %v7354_v59, 16  ;;  %v2320_v42 = vld [vmem:[#allocation2 + $0x68] sm:$0x1] }
 0x2c5   : > { %8594 = vst [vmem:[#allocation20_spill] sm:$0xff] %v7535_v24  ;;  %v3330_v6 = vsel %vm1683_vm3, %v8597_v15, %v3329_v7  ;;  %8598 = vst [vmem:[#allocation31_spill] sm:$0xff] %v7546_v16  ;;  %v7558_v56 = vmul.f32 %v7528_v49, %v8561_v8  ;;  %v7561_v35 = vmul.f32 %v8570_v22, %v2120_v39  ;;  %v3045_v14 = vunpack.c.l.bf16 %v3037_v31 }
 0x2c6   : > { %v7565_v7 = vmul.f32 %v7528_v49, %v8570_v22  ;;  %v7568_v51 = vadd.f32 %v8601_v54, %v2100_v13  ;;  %v7570_v47 = vadd.f32 %v3215_v9, %v3167_v62  ;;  %v7572_v4 = vadd.f32 %v3330_v6, %v3232_v55 }
 0x2c7   : > { %v7575_v59 = vmul.f32 %v8561_v8, %v1980_v5  ;;  %v7577_v38 = vor.u32 %v808_v26, %v807_v34  ;;  %v7580_v39 = vmul.f32 %v4544_v18, %v8566_v30  ;;  %v7584_v25 = vmul.f32 %v7528_v49, %v8566_v30  ;;  %v4713_v58 = vld [vmem:[#allocation2 + $0xc0] sm:$0xff]  }
 0x2c8   : > { %8602 = vst [vmem:[#allocation74_spill] sm:$0xff] %v7572_v4  ;;  %v2468_v13 = vunpack.c.l.bf16 %v2460_v12  ;;  %v2068_v62 = vrot.slane %v7553_v41, 1  ;;  %v7588_v55 = vmul.f32 %v8570_v22, %v1980_v5  ;;  %v7591_v53 = vmul.f32 %v4544_v18, %v5807_v61 }
 0x2c9   : > { %v7595_v34 = vmul.f32 %v7528_v49, %v5807_v61  ;;  %v2069_v40 = vrot.slane %v7558_v56, 1  ;;  %v2208_v48 = vrot.slane %v7561_v35, 2  ;;  %v2209_v9 = vrot.slane %v7565_v7, 2 }
 0x2ca   : > { %v2909_v46 = vunpack.c.l.bf16 %v2901_v29  ;;  %v2071_v15 = vrot.slane %v7575_v59, 1  ;;  %v2328_v6 = vunpack.c.l.bf16 %v2320_v42  ;;  %v2352_v5 = vmul.f32 %v4544_v18, %v5810_v1 }
 0x2cb   : > { %v2917_v32 = vmul.f32 %v4544_v18, %v8559_v36  ;;  %v5115_v50 = vpop.eup %5114  ;;  %v7605_v41 = vmul.f32 %v7528_v49, %v5810_v1  ;;  %v2918_v12 = vmul.f32 %v7528_v49, %v8559_v36  ;;  %v3053_v26 = vmul.f32 %v3045_v14, %v8560_v2 }
 0x2cc   : > { %v2919_v31 = vmul.f32 %v2909_v46, %v8559_v36  ;;  %v5117_v56 = vpop.eup %5116  ;;  %v3932_v35 = vadd.f32 1.0, %v5115_v50  ;;  %v2885_v7 = vmul.f32 %v4544_v18, %v8567_v57  ;;  %v2886_v54 = vmul.f32 %v7528_v49, %v8567_v57 }
 0x2cd   : > { %v2965_v59 = vrot.slane %v2917_v32, 1  ;;  %v5119_v29 = vpop.eup %5118  ;;  %v3933_v42 = vadd.f32 1.0, %v5117_v56  ;;  %v2966_v23 = vrot.slane %v2918_v12, 1  ;;  %v3054_v45 = vmul.f32 %v7528_v49, %v8560_v2 }
 0x2ce   : > { %v2968_v27 = vrot.slane %v2919_v31, 1  ;;  %v5121_v21 = vpop.eup %5120  ;;  %v3934_v10 = vadd.f32 1.0, %v5119_v29  ;;  %5122 = vrcp.f32 %v3932_v35  ;;  %v3055_v14 = vmul.f32 %v2909_v46, %v8560_v2 }
 0x2cf   : > { %v3101_v44 = vrot.slane %v3053_v26, 2  ;;  %v3935_v50 = vadd.f32 1.0, %v5121_v21  ;;  %5124 = vrcp.f32 %v3933_v42  ;;  %v2967_v18 = vsel %vm1683_vm3, %v2965_v59, %v2966_v23 }
 0x2d0   : > { %v2969_v24 = vsel %vm1683_vm3, %v2966_v23, %v2968_v27  ;;  %5126 = vrcp.f32 %v3934_v10  ;;  %v3021_v32 = vadd.f32 %v2967_v18, %v2885_v7  ;;  %v3102_v12 = vrot.slane %v3054_v45, 2  ;;  %v3244_v27 = vld [vmem:[#allocation2 + $0xc8] sm:$0x1]  ;;  %v3380_v7 = vld [vmem:[#allocation2 + $0xc0] sm:$0xe] }
 0x2d1   : > { %v3022_v56 = vadd.f32 %v2969_v24, %v2886_v54  ;;  %5128 = vrcp.f32 %v3935_v50  ;;  %v2492_v31 = vmul.f32 %v7251_v33, %v2468_v13  ;;  %v2493_v29 = vmul.f32 %v7251_v33, %v7528_v49  ;;  %v8605_v18 = vld [vmem:[#allocation55_spill] sm:$0xff] }
 0x2d2   : > { %v3104_v35 = vrot.slane %v3055_v14, 2  ;;  %v7623_v46 = vsel %vm1683_vm3, %v2068_v62, %v2069_v40  ;;  %v2211_v21 = vrot.slane %v7588_v55, 2  ;;  %v2354_v26 = vmul.f32 %v5810_v1, %v2328_v6  ;;  %v8604_v14 = vld [vmem:[#allocation54_spill] sm:$0xff] }
 0x2d3   : > { %v3103_v10 = vsel %vm1824_vm4, %v3101_v44, %v3102_v12  ;;  %v2412_v24 = vrot.slane %v2352_v5, 1  ;;  %v2413_v45 = vrot.slane %v7605_v41, 1  ;;  %v2494_v49 = vmul.f32 %v7251_v33, %v2328_v6 }
 0x2d4   : > { %v3105_v23 = vsel %vm1824_vm4, %v3102_v12, %v3104_v35  ;;  %v3157_v13 = vadd.f32 %v3103_v10, %v3021_v32  ;;  %v7631_v59 = vunpack.c.l.bf16 %v4713_v58  ;;  %v7633_v62 = vunpack.c.h.bf16 %v4713_v58  ;;  %v8607_v10 = vld [vmem:[#allocation41_spill] sm:$0xff] }
 0x2d5   : > { %v3158_v54 = vadd.f32 %v3105_v23, %v3022_v56  ;;  %v2552_v55 = vrot.slane %v2492_v31, 2  ;;  %v2553_v42 = vrot.slane %v2493_v29, 2  ;;  %v3252_v44 = vunpack.c.l.bf16 %v3244_v27  ;;  %v8606_v31 = vld [vmem:[#allocation40_spill] sm:$0xff] }
 0x2d6   : > { %8603 = vst [vmem:[#allocation73_spill] sm:$0xff] %v7633_v62  ;;  %v3221_v50 = vadd.f32 %v8604_v14, %v3157_v13  ;;  %v7637_v5 = vsel %vm1683_vm3, %v2069_v40, %v2071_v15  ;;  %v7640_v41 = vsel %vm1824_vm4, %v2208_v48, %v2209_v9  ;;  %v3388_v12 = vunpack.c.l.bf16 %v3380_v7  ;;  %v7655_v15 = vld [vmem:[#allocation2 + $0xc8] sm:$0x1]  ;;  %v8609_v7 = vld [vmem:[#allocation65_spill] sm:$0xff] }
 0x2d7   : > { %v3222_v32 = vadd.f32 %v8605_v18, %v3158_v54  ;;  %v7644_v6 = vsel %vm1824_vm4, %v2209_v9, %v2211_v21  ;;  %v7647_v58 = vsel %vm1683_vm3, %v2412_v24, %v2413_v45  ;;  %v2415_v56 = vrot.slane %v2354_v26, 1  ;;  %v8608_v26 = vld [vmem:[#allocation62_spill] sm:$0xff] }
 0x2d8   : > { %v3357_v29 = vadd.f32 %v8606_v31, %v3221_v50  ;;  %v2555_v35 = vrot.slane %v2494_v49, 2  ;;  %v3274_v40 = vmul.f32 %v7631_v59, %v8561_v8  ;;  %v3275_v48 = vmul.f32 %v7633_v62, %v8561_v8  ;;  %v8612_v50 = vld [vmem:[#allocation33_spill] sm:$0xff]  ;;  %v8616_v31 = vld [vmem:[#allocation34_spill] sm:$0xff] }
 0x2d9   : > { %v3358_v27 = vadd.f32 %v8607_v10, %v3222_v32  ;;  %v7658_v9 = vsel %vm1683_vm3, %v2413_v45, %v2415_v56  ;;  %v7661_v21 = vsel %vm1824_vm4, %v2552_v55, %v2553_v42  ;;  %v3276_v23 = vmul.f32 %v3252_v44, %v8561_v8 }
 0x2da   : > { %v3493_v24 = vadd.f32 %v8608_v26, %v3357_v29  ;;  %v7666_v13 = vsel %vm1824_vm4, %v2553_v42, %v2555_v35  ;;  %v7670_v54 = vmul.f32 %v3388_v12, %v8570_v22  ;;  %v7674_v14 = vmul.f32 %v7633_v62, %v8570_v22 }
 0x2db   : > { %v3494_v49 = vadd.f32 %v8609_v7, %v3358_v27  ;;  %v5123_v45 = vpop.eup %5122  ;;  %v7679_v18 = vmul.f32 %v7631_v59, %v8566_v30  ;;  %v7682_v32 = vmul.f32 %v3252_v44, %v8570_v22  ;;  %v3588_v42 = vunpack.c.l.bf16 %v7655_v15 }
 0x2dc   : > { %8610 = vst [vmem:[#allocation30_spill] sm:$0xff] %v7670_v54  ;;  %8611 = vst [vmem:[#allocation23_spill] sm:$0xff] %v7674_v14  ;;  %v3558_v55 = vadd.f32 %v8612_v50, %v3493_v24  ;;  %v5125_v56 = vpop.eup %5124  ;;  %v7686_v12 = vmul.f32 %v5123_v45, %v7479_v43  ;;  %v3336_v35 = vrot.slane %v3274_v40, 1  ;;  %v3337_v10 = vrot.slane %v3275_v48, 1  ;;  %v8618_v24 = vld [vmem:[#allocation26_spill] sm:$0xff]  ;;  %v8621_v45 = vld [vmem:[#allocation35_spill] sm:$0xff] }
 0x2dd   : > { %8613 = vst [vmem:[#allocation70_spill] sm:$0xff] %v7679_v18  ;;  %8614 = vst [vmem:[#allocation50_spill] sm:$0xff] %v7682_v32  ;;  %v3559_v29 = vadd.f32 %v8616_v31, %v3494_v49  ;;  %v5127_v27 = vpop.eup %5126  ;;  %v7690_v26 = vmul.f32 %v5125_v56, %v7492_v28  ;;  %v7695_v44 = vmul.f32 %v7633_v62, %v8566_v30  ;;  %v3339_v50 = vrot.slane %v3276_v23, 1  ;;  %v8623_v56 = vld [vmem:[#allocation37_spill] sm:$0xff]  ;;  %v8636_v14 = vld [vmem:[#allocation39_spill] sm:$0xff] }
 0x2de   : > { %8615 = vst [vmem:[#allocation79_spill] sm:$0xff] %v7686_v12  ;;  %v3694_v7 = vadd.f32 %v8618_v24, %v3558_v55  ;;  %v5129_v15 = vpop.eup %5128  ;;  %v7698_v43 = vmul.f32 %v5127_v27, %v7482_v11  ;;  %v1622_v24 = vld [vmem:[#allocation2 + $0x5c] sm:$0x1]  ;;  %v7745_v40 = vmul.f32 %v3588_v42, %v5810_v1 }
 0x2df   : > { %8617 = vst [vmem:[#allocation80_spill] sm:$0xff] %v7690_v26  ;;  %8619 = vst [vmem:[#allocation81_spill] sm:$0xff] %v7695_v44  ;;  %v3695_v49 = vadd.f32 %v8621_v45, %v3559_v29  ;;  %v7704_v28 = vmul.f32 %v5129_v15, %v7495_v37  ;;  %v4668_v55 = vpack.c.bf16 %v7690_v26, %v7686_v12  ;;  %v8624_v44 = vld [vmem:[#allocation36_spill] sm:$0xff]  ;;  %v843_v37 = vsel %vm5706_vm2, 0, %v7577_v38  ;;  %v1971_v15 = vld [vmem:[#allocation2 + $0x5c] sm:$0x1] }
 0x2e0   : > { %8620 = vst [vmem:[#allocation24_spill] sm:$0xff] %v7698_v43  ;;  %v3830_v31 = vadd.f32 %v8623_v56, %v3694_v7  ;;  %v7712_v29 = vsel %vm1683_vm3, %v3336_v35, %v3337_v10  ;;  %v7715_v27 = vsel %vm1683_vm3, %v3337_v10, %v3339_v50  ;;  %v2319_v45 = vld [vmem:[#allocation2 + $0x5c] sm:$0x1]  ;;  %v4311_v23 = vcombine.low %v843_v37, %v843_v37  ;;  %v7776_v26 = vld [vmem:[#allocation2 + $0xcc] sm:$0xff]  }
 0x2e1   : > { %8622 = vst [vmem:[#allocation76_spill] sm:$0xff] %v7704_v28  ;;  %v3831_v11 = vadd.f32 %v8624_v44, %v3695_v49  ;;  %8625 = vst [vmem:[#allocation16_spill] sm:$0xff] %v7712_v29  ;;  %v4673_v7 = vpack.c.bf16 %v7704_v28, %v7698_v43  ;;  %v4312_v44 = vcombine.high %v843_v37, %v843_v37  ;;  %v1630_v38 = vunpack.c.l.bf16 %v1622_v24  ;;  %v8630_v43 = vld [vmem:[#allocation51_spill] sm:$0xff] }
 0x2e2   : > { %8626 = vst [vmem:[#allocation77_spill] sm:$0xff] %v7715_v27  ;;  %4720 = vst [vmem:[%s6306_s18 + $0x58] sm:$0xff] %v4668_v55   ;;  %v3846_v56 = vmul.f32 %v7271_v19, %v3830_v31  ;;  %v7727_v10 = vmul.f32 %v7631_v59, %v5807_v61  ;;  %v7731_v50 = vmul.f32 %v7631_v59, %v5810_v1  ;;  %v1979_v31 = vunpack.c.l.bf16 %v1971_v15  ;;  %v7747_v59 = vld [vmem:[#allocation2 + $0xc0] sm:$0xe] }
 0x2e3   : > { %v3847_v35 = vmul.f32 %v7271_v19, %v3831_v11  ;;  %4721 = vst [vmem:[%s6306_s18 + $0x60] sm:$0xff] %v4673_v7   ;;  %v7739_v55 = vmul.f32 %v7633_v62, %v5810_v1  ;;  %960 = vst [vmem:[#allocation2 + $0x54] sm:$0xf] %v4311_v23  ;;  %v2327_v11 = vunpack.c.l.bf16 %v2319_v45  ;;  %v1658_v24 = vmul.f32 %v8559_v36, %v1630_v38  ;;  %v8629_v7 = vld [vmem:[#allocation27_spill] sm:$0xff] }
 0x2e4   : > { %8627 = vst [vmem:[#allocation71_spill] sm:$0xff] %v7727_v10  ;;  %8628 = vst [vmem:[#allocation78_spill] sm:$0xff] %v7731_v50  ;;  %v7735_v49 = vadd.f32 %v7283_v17, %v3846_v56  ;;  %v3367_v56 = vadd.f32 %v8629_v7, %v7570_v47  ;;  %v1799_v23 = vmul.f32 %v8560_v2, %v1630_v38  ;;  %v1299_v47 = vadd.f32 1.0, %v8630_v43 }
 0x2e5   : > { %961 = vst [vmem:[#allocation2 + $0x58] sm:$0xf] %v4312_v44  ;;  %v7742_v37 = vadd.f32 %v7283_v17, %v3847_v35  ;;  %v7755_v15 = vmul.f32 %v8561_v8, %v1979_v31  ;;  %v7758_v45 = vmul.f32 %v8570_v22, %v1979_v31  ;;  %v7762_v35 = vmul.f32 %v5810_v1, %v2327_v11 }
 0x2e6   : > { %v4426_v48 = vmul.f32 -1.442695, %v7735_v49  ;;  %v7765_v28 = vmul.f32 %v7251_v33, %v2327_v11  ;;  %v7771_v38 = vmul.f32 %v7251_v33, %v7633_v62  ;;  %v7774_v31 = vmul.f32 %v7251_v33, %v3588_v42 }
 0x2e7   : > { %v4427_v44 = vmul.f32 -1.442695, %v7742_v37  ;;  %v1722_v10 = vrot.slane %v1658_v24, 1  ;;  %v8633_v11 = vrot.slane %v8588_v52, 2  ;;  %v8634_v43 = vrot.slane %v7518_v63, 2 }
 0x2e8   : > { %5130 = vpow2.f32 %v4426_v48  ;;  %8631 = vst [vmem:[#allocation25_spill] sm:$0xff] %v7771_v38  ;;  %8632 = vst [vmem:[#allocation59_spill] sm:$0xff] %v7774_v31  ;;  %v1863_v7 = vrot.slane %v1799_v23, 2  ;;  %v2066_v27 = vrot.slane %v7755_v15, 1 }
 0x2e9   : > { %5132 = vpow2.f32 %v4427_v44  ;;  %v3464_v48 = vsel %vm1824_vm4, %v8634_v43, %v8633_v11 }
 0x2ea   : > { %v7786_v18 = vadd.f32 %v3464_v48, %v3367_v56  ;;  %v1763_v16 = vld [vmem:[#allocation2 + $0x54] sm:$0xe]  ;;  %5134 = vrcp.f32 %v1299_v47 }
 0x2eb   : > { %v1771_v11 = vunpack.c.l.bf16 %v1763_v16  ;;  %v2111_v43 = vld [vmem:[#allocation2 + $0x54] sm:$0xe] }
 0x2ec   : > { %8635 = vst [vmem:[#allocation75_spill] sm:$0xff] %v7786_v18  ;;  %v1577_v42 = vld [vmem:[#allocation2 + $0x54] sm:$0xff]   ;;  %v2119_v29 = vunpack.c.l.bf16 %v2111_v43 }
 0x2ed   : > { %v1909_v4 = vld [vmem:[#allocation2 + $0x54] sm:$0xff]   ;;  %v1593_v63 = vunpack.c.l.bf16 %v1577_v42  ;;  %v1594_v12 = vunpack.c.h.bf16 %v1577_v42  ;;  %v1797_v52 = vmul.f32 %v8560_v2, %v1771_v11 }
 0x2ee   : > { %v1925_v23 = vunpack.c.l.bf16 %v1909_v4  ;;  %v2256_v15 = vld [vmem:[#allocation2 + $0x54] sm:$0xff]   ;;  %v1926_v50 = vunpack.c.h.bf16 %v1909_v4 }
 0x2ef   : > { %v2272_v56 = vunpack.c.l.bf16 %v2256_v15  ;;  %v7791_v48 = vunpack.c.h.bf16 %v2256_v15  ;;  %v1613_v18 = vmul.f32 %v8567_v57, %v1593_v63  ;;  %v1614_v44 = vmul.f32 %v8567_v57, %v1594_v12 }
 0x2f0   : > { %v1656_v24 = vmul.f32 %v8559_v36, %v1593_v63  ;;  %v1657_v47 = vmul.f32 %v8559_v36, %v1594_v12  ;;  %v1798_v16 = vmul.f32 %v8560_v2, %v1594_v12  ;;  %v1945_v42 = vmul.f32 %v8566_v30, %v1925_v23 }
 0x2f1   : > { %v1946_v4 = vmul.f32 %v8566_v30, %v1926_v50  ;;  %v2003_v15 = vmul.f32 %v8561_v8, %v1925_v23  ;;  %v2004_v32 = vmul.f32 %v8561_v8, %v1926_v50  ;;  %v1860_v54 = vrot.slane %v1797_v52, 2 }
 0x2f2   : > { %v1719_v43 = vrot.slane %v1656_v24, 1  ;;  %v1720_v62 = vrot.slane %v1657_v47, 1  ;;  %v1861_v57 = vrot.slane %v1798_v16, 2  ;;  %v1961_v63 = vadd.f32 %v1945_v42, %v7350_v3 }
 0x2f3   : > { %v1962_v36 = vadd.f32 %v1946_v4, %v8636_v14  ;;  %v2063_v2 = vrot.slane %v2003_v15, 1  ;;  %v2064_v31 = vrot.slane %v2004_v32, 1  ;;  %v2143_v3 = vmul.f32 %v8570_v22, %v2119_v29 }
 0x2f4   : > { %v1721_v11 = vsel %vm1683_vm3, %v1719_v43, %v1720_v62  ;;  %v1723_v12 = vsel %vm1683_vm3, %v1720_v62, %v1722_v10  ;;  %v1862_v24 = vsel %vm1824_vm4, %v1860_v54, %v1861_v57  ;;  %v1864_v23 = vsel %vm1824_vm4, %v1861_v57, %v1863_v7 }
 0x2f5   : > { %v1754_v38 = vadd.f32 %v1721_v11, %v1613_v18  ;;  %v1755_v30 = vadd.f32 %v1723_v12, %v1614_v44  ;;  %v2065_v47 = vsel %vm1683_vm3, %v2063_v2, %v2064_v31  ;;  %v2067_v52 = vsel %vm1683_vm3, %v2064_v31, %v2066_v27  ;;  %v5131_v16 = vpop.eup %5130  ;;  %v2459_v31 = vld [vmem:[#allocation2 + $0x54] sm:$0xe] }
 0x2f6   : > { %v2144_v14 = vmul.f32 %v8570_v22, %v1926_v50  ;;  %v2101_v62 = vadd.f32 %v2065_v47, %v1961_v63  ;;  %v2102_v10 = vadd.f32 %v2067_v52, %v1962_v36  ;;  %v5133_v32 = vpop.eup %5132  ;;  %v3926_v18 = vadd.f32 1.0, %v5131_v16 }
 0x2f7   : > { %v1895_v42 = vadd.f32 %v1862_v24, %v1754_v38  ;;  %v1896_v4 = vadd.f32 %v1864_v23, %v1755_v30  ;;  %v2203_v44 = vrot.slane %v2143_v3, 2  ;;  %v2292_v54 = vmul.f32 %v5807_v61, %v2272_v56  ;;  %v5135_v50 = vpop.eup %5134 }
 0x2f8   : > { %v2204_v43 = vrot.slane %v2144_v14, 2  ;;  %v3927_v57 = vadd.f32 1.0, %v5133_v32  ;;  %v2293_v29 = vmul.f32 %v5807_v61, %v7791_v48  ;;  %5136 = vrcp.f32 %v3926_v18  ;;  %v8641_v32 = vld [vmem:[#allocation44_spill] sm:$0xff] }
 0x2f9   : > { %v1963_v2 = vadd.f32 %v7580_v39, %v1895_v42  ;;  %v1964_v27 = vadd.f32 %v7584_v25, %v1896_v4  ;;  %v8637_v36 = vrot.slane %v7758_v45, 2  ;;  %v2308_v38 = vadd.f32 %v2292_v54, %v7368_v60  ;;  %v7838_v4 = vld [vmem:[#allocation8 + $0x8] ss:$0 sm:$0xff] }
 0x2fa   : > { %v2205_v30 = vsel %vm1824_vm4, %v2203_v44, %v2204_v43  ;;  %5138 = vrcp.f32 %v3927_v57  ;;  %v2309_v11 = vadd.f32 %v2293_v29, %v7568_v51  ;;  %v2349_v12 = vmul.f32 %v5810_v1, %v2272_v56  ;;  %v8638_v51 = vld [vmem:[#allocation42_spill] sm:$0xff]  ;;  %v8639_v56 = vld [vmem:[#allocation43_spill] sm:$0xff]  ;;  %v8642_v44 = vld [vmem:[#allocation45_spill] sm:$0xff] }
 0x2fb   : > { %v2207_v7 = vsel %vm1824_vm4, %v2204_v43, %v8637_v36  ;;  %v2103_v15 = vadd.f32 %v7623_v46, %v1963_v2  ;;  %v2104_v39 = vadd.f32 %v7637_v5, %v1964_v27  ;;  %v2241_v25 = vadd.f32 %v2205_v30, %v2101_v62  ;;  %v8644_v29 = vld [vmem:[#allocation46_spill] sm:$0xff] }
 0x2fc   : > { %v2242_v63 = vadd.f32 %v2207_v7, %v2102_v10  ;;  %v2350_v24 = vmul.f32 %v5810_v1, %v7791_v48  ;;  %v2467_v47 = vunpack.c.l.bf16 %v2459_v31  ;;  %v2407_v52 = vrot.slane %v2349_v12, 1  ;;  %v8646_v7 = vld [vmem:[#allocation38_spill] sm:$0xff]  ;;  %v3581_v31 = vld [vmem:[#allocation2 + $0xd4] sm:$0x1] }
 0x2fd   : > { %v2243_v45 = vadd.f32 %v7640_v41, %v2103_v15  ;;  %v2244_v23 = vadd.f32 %v7644_v6, %v2104_v39  ;;  %v2310_v60 = vadd.f32 %v7591_v53, %v2241_v25  ;;  %v2490_v3 = vmul.f32 %v7251_v33, %v7791_v48 }
 0x2fe   : > { %v2311_v46 = vadd.f32 %v7595_v34, %v2242_v63  ;;  %v2408_v5 = vrot.slane %v2350_v24, 1  ;;  %v2489_v41 = vmul.f32 %v7838_v4, %v2467_v47  ;;  %v8640_v6 = vrot.slane %v7762_v35, 1 }
 0x2ff   : > { %v2312_v14 = vadd.f32 %v8638_v51, %v2243_v45  ;;  %v2313_v16 = vadd.f32 %v8639_v56, %v2244_v23  ;;  %v2450_v42 = vadd.f32 %v7647_v58, %v2310_v60  ;;  %v2548_v10 = vrot.slane %v2490_v3, 2  ;;  %v3717_v23 = vld [vmem:[#allocation2 + $0xcc] sm:$0xe] }
 0x300   : > { %v2409_v53 = vsel %vm1683_vm3, %v2407_v52, %v2408_v5  ;;  %v2411_v34 = vsel %vm1683_vm3, %v2408_v5, %v8640_v6  ;;  %v2451_v62 = vadd.f32 %v7658_v9, %v2311_v46  ;;  %v2547_v58 = vrot.slane %v2489_v41, 2  ;;  %v8645_v9 = vld [vmem:[#allocation47_spill] sm:$0xff]  ;;  %v7881_v46 = vld [vmem:[%s8200_s6] ss:$0 sm:$0xff] }
 0x301   : > { %v2448_v33 = vadd.f32 %v2409_v53, %v2308_v38  ;;  %v2449_v48 = vadd.f32 %v2411_v34, %v2309_v11  ;;  %v2452_v18 = vadd.f32 %v8641_v32, %v2312_v14  ;;  %v2453_v43 = vadd.f32 %v8642_v44, %v2313_v16 }
 0x302   : > { %v8643_v54 = vrot.slane %v7765_v28, 2  ;;  %v2590_v2 = vadd.f32 %v7661_v21, %v2450_v42  ;;  %v2591_v35 = vadd.f32 %v7666_v13, %v2451_v62  ;;  %v1347_v38 = vmul.f32 %v5135_v50, %v8646_v7  ;;  %v7865_v13 = vld [vmem:[%s8199_s5] ss:$0 sm:$0xff] }
 0x303   : > { %v2592_v30 = vadd.f32 %v8644_v29, %v2452_v18  ;;  %v2593_v36 = vadd.f32 %v8645_v9, %v2453_v43  ;;  %v2549_v15 = vsel %vm1824_vm4, %v2547_v58, %v2548_v10  ;;  %v7860_v25 = vunpack.c.h.bf16 %v7776_v26 }
 0x304   : > { %v2551_v57 = vsel %vm1824_vm4, %v2548_v10, %v8643_v54  ;;  %v2612_v39 = vmul.f32 %v7271_v19, %v2590_v2  ;;  %v2613_v28 = vmul.f32 %v7271_v19, %v2591_v35  ;;  %v2588_v21 = vadd.f32 %v2549_v15, %v2448_v33  ;;  %v8649_v54 = vld [vmem:[#allocation52_spill] sm:$0xff]  ;;  %v8651_v15 = vld [vmem:[#allocation25_spill] sm:$0xff] }
 0x305   : > { %v2589_v27 = vadd.f32 %v2551_v57, %v2449_v48  ;;  %v2614_v50 = vmul.f32 %v7865_v13, %v2592_v30  ;;  %v2615_v11 = vmul.f32 %v7865_v13, %v2593_v36  ;;  %v1356_v24 = vpack.c.bf16 %v1347_v38, %v7550_v20  ;;  %v5137_v60 = vpop.eup %5136  ;;  %v8650_v57 = vld [vmem:[#allocation49_spill] sm:$0xff] }
 0x306   : > { %v7871_v12 = vadd.f32 %v7283_v17, %v2612_v39  ;;  %v7874_v19 = vadd.f32 %v7283_v17, %v2613_v28  ;;  %v3589_v45 = vunpack.c.l.bf16 %v3581_v31  ;;  %v2610_v47 = vmul.f32 %v7865_v13, %v2588_v21  ;;  %v8652_v28 = vld [vmem:[#allocation60_spill] sm:$0xff] }
 0x307   : > { %v2611_v63 = vmul.f32 %v7865_v13, %v2589_v27  ;;  %v7887_v5 = vadd.f32 %v7881_v46, %v2614_v50  ;;  %v7890_v17 = vadd.f32 %v7881_v46, %v2615_v11  ;;  %v5139_v20 = vpop.eup %5138  ;;  %v3974_v3 = vmul.f32 %v5137_v60, %v7735_v49  ;;  %v8653_v50 = vld [vmem:[#allocation59_spill] sm:$0xff] }
 0x308   : > { %v4406_v51 = vmul.f32 -1.442695, %v7871_v12  ;;  %v4407_v14 = vmul.f32 -1.442695, %v7874_v19  ;;  %v1401_v56 = vshrl.u32 %v1356_v24, 16  ;;  %v3975_v16 = vmul.f32 %v5139_v20, %v7742_v37  ;;  %v8654_v20 = vld [vmem:[#allocation32_spill] sm:$0xff] }
 0x309   : > { %v7884_v52 = vadd.f32 %v7881_v46, %v2611_v63  ;;  %v7897_v42 = vadd.f32 %v7881_v46, %v2610_v47  ;;  %v3725_v53 = vunpack.c.l.bf16 %v3717_v23  ;;  %v4408_v6 = vmul.f32 -1.442695, %v7887_v5 }
 0x30a   : > { %5140 = vpow2.f32 %v4406_v51  ;;  %v1403_v34 = vrot.slane %v1401_v56, 7  ;;  %v1404_v62 = vshll.u32 %v1356_v24, 16  ;;  %v4653_v49 = vpack.c.bf16 %v3975_v16, %v3974_v3  ;;  %v8657_v56 = vld [vmem:[#allocation30_spill] sm:$0xff] }
 0x30b   : > { %v4405_v41 = vmul.f32 -1.442695, %v7884_v52  ;;  %v4404_v10 = vmul.f32 -1.442695, %v7897_v42  ;;  %v4409_v33 = vmul.f32 -1.442695, %v7890_v17  ;;  %v8647_v37 = vunpack.c.l.bf16 %v7747_v59 }
 0x30c   : > { %v1406_v32 = vor.u32 %v1404_v62, %v1403_v34  ;;  %v1444_v18 = vsel %vm5706_vm2, %v1403_v34, 0  ;;  %4717 = vst [vmem:[%s6306_s18 + $0x40] sm:$0xff] %v4653_v49   ;;  %v8648_v43 = vunpack.c.l.bf16 %v7776_v26  ;;  %v2830_v2 = vadd.f32 %v8650_v57, %v8649_v54  ;;  %v8662_v62 = vld [vmem:[#allocation73_spill] sm:$0xff]  ;;  %v8666_v57 = vld [vmem:[#allocation74_spill] sm:$0xff] }
 0x30d   : > { %5142 = vpow2.f32 %v4405_v41  ;;  %v3744_v48 = vmul.f32 %v7838_v4, %v8647_v37  ;;  %v4387_v44 = vcombine.low %v1444_v18, %v1444_v18  ;;  %v3612_v35 = vmul.f32 %v7860_v25, %v5810_v1 }
 0x30e   : > { %5144 = vpow2.f32 %v4407_v14  ;;  %v3611_v58 = vmul.f32 %v8648_v43, %v5810_v1  ;;  %v1436_v59 = vsel %vm5706_vm2, 0, %v1406_v32  ;;  %v3613_v27 = vmul.f32 %v3589_v45, %v5810_v1 }
 0x30f   : > { %5146 = vpow2.f32 %v4404_v10  ;;  %v4385_v29 = vcombine.low %v1436_v59, %v1436_v59  ;;  %v4386_v30 = vcombine.high %v1436_v59, %v1436_v59  ;;  %1555 = vst [vmem:[#allocation2 + $0xbc] sm:$0x1] %v4387_v44  ;;  %v3747_v9 = vmul.f32 %v7838_v4, %v3725_v53  ;;  %v8663_v10 = vld [vmem:[#allocation78_spill] sm:$0xff]  ;;  %v8665_v44 = vld [vmem:[#allocation61_spill] sm:$0xff] }
 0x310   : > { %5148 = vpow2.f32 %v4408_v6  ;;  %v3669_v36 = vrot.slane %v7739_v55, 1  ;;  %v3671_v7 = vrot.slane %v7745_v40, 1  ;;  %v3748_v38 = vmul.f32 %v7838_v4, %v7860_v25  ;;  %v8659_v6 = vld [vmem:[#allocation50_spill] sm:$0xff] }
 0x311   : > { %5150 = vpow2.f32 %v4409_v33  ;;  %v3749_v0 = vmul.f32 %v7838_v4, %v3589_v45  ;;  %v3804_v31 = vrot.slane %v3744_v48, 2  ;;  %v3805_v39 = vrot.slane %v8651_v15, 2  ;;  %1553 = vst [vmem:[#allocation2 + $0xb4] sm:$0xf] %v4385_v29  ;;  %1554 = vst [vmem:[#allocation2 + $0xb8] sm:$0xf] %v4386_v30 }
 0x312   : > { %v2831_v21 = vadd.f32 %v2830_v2, %v8652_v28  ;;  %v7927_v63 = vadd.f32 %v3975_v16, %v3974_v3  ;;  %v3807_v11 = vrot.slane %v8653_v50, 2  ;;  %v3673_v24 = vrot.slane %v3611_v58, 1  ;;  %v8655_v45 = vld [vmem:[#allocation23_spill] sm:$0xff]  ;;  %v8669_v50 = vld [vmem:[#allocation28_spill] sm:$0xff] }
 0x313   : > { %v3674_v55 = vrot.slane %v3612_v35, 1  ;;  %v3676_v23 = vrot.slane %v3613_v27, 1  ;;  %v3809_v40 = vrot.slane %v3747_v9, 2  ;;  %v3810_v60 = vrot.slane %v3748_v38, 2  ;;  %v8667_v2 = vld [vmem:[#allocation31_spill] sm:$0xff] }
 0x314   : > { %v3812_v47 = vrot.slane %v3749_v0, 2  ;;  %v2832_v51 = vadd.f32 %v2831_v21, %v8654_v20  ;;  %v8656_v14 = vrot.slane %v8655_v45, 2  ;;  %v8658_v41 = vrot.slane %v8657_v56, 2 }
 0x315   : > { %v8660_v3 = vrot.slane %v8659_v6, 2  ;;  %v7947_v49 = vmul.f32 %v8662_v62, %v5807_v61  ;;  %v8664_v33 = vrot.slane %v8663_v10, 1  ;;  %v7955_v48 = vsel %vm1683_vm3, %v3669_v36, %v3671_v7 }
 0x316   : > { %v7936_v53 = vsel %vm1824_vm4, %v8658_v41, %v8656_v14  ;;  %v8661_v16 = vmov %v8656_v14  ;;  %v7958_v32 = vsel %vm1824_vm4, %v3804_v31, %v3805_v39  ;;  %v7961_v18 = vsel %vm1824_vm4, %v3805_v39, %v3807_v11  ;;  %v2908_v58 = vld [vmem:[#allocation2 + $0xbc] sm:$0x1] }
 0x317   : > { %v7943_v34 = vsel %vm1824_vm4, %v8661_v16, %v8660_v3  ;;  %v7952_v37 = vsel %vm1683_vm3, %v8664_v33, %v3669_v36  ;;  %v2833_v43 = vadd.f32 %v2832_v51, %v8665_v44  ;;  %v7964_v54 = vld [vmem:[#allocation2 + $0xbc] sm:$0x1]  ;;  %v7968_v59 = vadd.f32 %v8667_v2, %v8666_v57  ;;  %v5141_v36 = vpop.eup %5140  ;;  %v8672_v3 = vld [vmem:[#allocation19_spill] sm:$0xff] }
 0x318   : > { %v8668_v35 = vunpack.c.l.bf16 %v7776_v26  ;;  %v7977_v29 = vmul.f32 %v7860_v25, %v5807_v61  ;;  %v7979_v30 = vld [vmem:[#allocation2 + $0xbc] sm:$0x1]  ;;  %v7982_v9 = vsel %vm1683_vm3, %v3673_v24, %v3674_v55  ;;  %v2916_v7 = vunpack.c.l.bf16 %v2908_v58  ;;  %v2867_v25 = vld [vmem:[#allocation2 + $0xb4] sm:$0xff]  }
 0x319   : > { %v7985_v38 = vsel %vm1683_vm3, %v3674_v55, %v3676_v23  ;;  %v7988_v0 = vsel %vm1824_vm4, %v3809_v40, %v3810_v60  ;;  %v7991_v26 = vsel %vm1824_vm4, %v3810_v60, %v3812_v47  ;;  %v2698_v15 = vadd.f32 1.0, %v5141_v36  ;;  %v3044_v39 = vld [vmem:[#allocation2 + $0xb4] sm:$0xe]  ;;  %v8671_v14 = vld [vmem:[#allocation18_spill] sm:$0xff] }
 0x31a   : > { %v7973_v27 = vmul.f32 %v8668_v35, %v5807_v61  ;;  %v5143_v31 = vpop.eup %5142  ;;  %v3251_v28 = vunpack.c.l.bf16 %v7964_v54  ;;  %v3587_v21 = vunpack.c.l.bf16 %v7979_v30  ;;  %v7996_v11 = vadd.f32 %v2833_v43, %v8669_v50  ;;  %v8670_v40 = vld [vmem:[#allocation17_spill] sm:$0xff] }
 0x31b   : > { %v5145_v24 = vpop.eup %5144  ;;  %v2697_v55 = vadd.f32 1.0, %v5143_v31  ;;  %v2883_v23 = vunpack.c.l.bf16 %v2867_v25  ;;  %v2884_v20 = vunpack.c.h.bf16 %v2867_v25  ;;  %v2940_v51 = vmul.f32 %v2916_v7, %v8670_v40  ;;  %v3185_v58 = vld [vmem:[#allocation2 + $0xb4] sm:$0xff]  }
 0x31c   : > { %v5147_v45 = vpop.eup %5146  ;;  %v2699_v60 = vadd.f32 1.0, %v5145_v24  ;;  %5152 = vrcp.f32 %v2698_v15  ;;  %v3052_v47 = vunpack.c.l.bf16 %v3044_v39  ;;  %v3076_v56 = vmul.f32 %v2916_v7, %v8671_v14 }
 0x31d   : > { %v5149_v41 = vpop.eup %5148  ;;  %v2696_v6 = vadd.f32 1.0, %v5147_v45  ;;  %5154 = vrcp.f32 %v2697_v55  ;;  %v2899_v16 = vmul.f32 %v2883_v23, %v8672_v3  ;;  %v2900_v62 = vmul.f32 %v2884_v20, %v8672_v3 }
 0x31e   : > { %v5151_v10 = vpop.eup %5150  ;;  %v2700_v33 = vadd.f32 1.0, %v5149_v41  ;;  %5156 = vrcp.f32 %v2699_v60  ;;  %v2938_v44 = vmul.f32 %v2883_v23, %v8670_v40  ;;  %v2939_v43 = vmul.f32 %v2884_v20, %v8670_v40  ;;  %v3379_v41 = vld [vmem:[#allocation2 + $0xb4] sm:$0xe] }
 0x31f   : > { %v2701_v57 = vadd.f32 1.0, %v5151_v10  ;;  %5158 = vrcp.f32 %v2696_v6  ;;  %v3003_v2 = vrot.slane %v2940_v51, 1  ;;  %v3074_v35 = vmul.f32 %v3052_v47, %v8671_v14  ;;  %v8673_v51 = vld [vmem:[#allocation22_spill] sm:$0xff] }
 0x320   : > { %5160 = vrcp.f32 %v2700_v33  ;;  %v3000_v36 = vrot.slane %v2938_v44, 1  ;;  %v3001_v7 = vrot.slane %v2939_v43, 1  ;;  %v3075_v31 = vmul.f32 %v2884_v20, %v8671_v14  ;;  %v8674_v33 = vld [vmem:[#allocation57_spill] sm:$0xff]  ;;  %v8675_v43 = vld [vmem:[#allocation20_spill] sm:$0xff] }
 0x321   : > { %5162 = vrcp.f32 %v2701_v57  ;;  %v3136_v15 = vrot.slane %v3074_v35, 2  ;;  %v3139_v25 = vrot.slane %v3076_v56, 2  ;;  %v3201_v39 = vunpack.c.l.bf16 %v3185_v58 }
 0x322   : > { %v3002_v50 = vsel %vm1683_vm3, %v3000_v36, %v3001_v7  ;;  %v3004_v24 = vsel %vm1683_vm3, %v3001_v7, %v3003_v2  ;;  %v3137_v55 = vrot.slane %v3075_v31, 2  ;;  %v3202_v23 = vunpack.c.h.bf16 %v3185_v58  ;;  %v8676_v36 = vld [vmem:[#allocation70_spill] sm:$0xff]  ;;  %v8677_v31 = vld [vmem:[#allocation81_spill] sm:$0xff] }
 0x323   : > { %v3035_v40 = vadd.f32 %v3002_v50, %v2899_v16  ;;  %v3036_v45 = vadd.f32 %v3004_v24, %v2900_v62  ;;  %v3217_v60 = vmul.f32 %v3201_v39, %v8673_v51  ;;  %v3271_v47 = vmul.f32 %v3201_v39, %v8561_v8  ;;  %v3520_v62 = vld [vmem:[#allocation2 + $0xb4] sm:$0xff]  }
 0x324   : > { %v3138_v6 = vsel %vm1824_vm4, %v3136_v15, %v3137_v55  ;;  %v3140_v20 = vsel %vm1824_vm4, %v3137_v55, %v3139_v25  ;;  %v3218_v14 = vmul.f32 %v3202_v23, %v8673_v51  ;;  %v3272_v56 = vmul.f32 %v3202_v23, %v8561_v8 }
 0x325   : > { %v3171_v3 = vadd.f32 %v3138_v6, %v3035_v40  ;;  %v3172_v10 = vadd.f32 %v3140_v20, %v3036_v45  ;;  %v3233_v44 = vadd.f32 %v3217_v60, %v8674_v33  ;;  %v3273_v16 = vmul.f32 %v3251_v28, %v8561_v8  ;;  %v8678_v60 = vld [vmem:[#allocation16_spill] sm:$0xff] }
 0x326   : > { %v3234_v58 = vadd.f32 %v3218_v14, %v8675_v43  ;;  %v3331_v57 = vrot.slane %v3271_v47, 1  ;;  %v3332_v2 = vrot.slane %v3272_v56, 1  ;;  %v3387_v35 = vunpack.c.l.bf16 %v3379_v41  ;;  %v8679_v41 = vld [vmem:[#allocation77_spill] sm:$0xff] }
 0x327   : > { %v3235_v7 = vadd.f32 %v8676_v36, %v3171_v3  ;;  %v3236_v15 = vadd.f32 %v8677_v31, %v3172_v10  ;;  %v3334_v25 = vrot.slane %v3273_v16, 1  ;;  %v3408_v39 = vmul.f32 %v3202_v23, %v8570_v22 }
 0x328   : > { %v3333_v50 = vsel %vm1683_vm3, %v3331_v57, %v3332_v2  ;;  %v3407_v24 = vmul.f32 %v3387_v35, %v8570_v22  ;;  %v3409_v8 = vmul.f32 %v3251_v28, %v8570_v22  ;;  %v3536_v55 = vunpack.c.l.bf16 %v3520_v62 }
 0x329   : > { %v5153_v40 = vpop.eup %5152  ;;  %v3335_v45 = vsel %vm1683_vm3, %v3332_v2, %v3334_v25  ;;  %v3369_v51 = vadd.f32 %v3333_v50, %v3233_v44  ;;  %v3371_v47 = vadd.f32 %v8678_v60, %v3235_v7  ;;  %v3372_v6 = vadd.f32 %v8679_v41, %v3236_v15  ;;  %v8680_v15 = vld [vmem:[#allocation75_spill] sm:$0xff] }
 0x32a   : > { %v5155_v20 = vpop.eup %5154  ;;  %v8031_v23 = vmul.f32 %v5153_v40, %v7871_v12  ;;  %v3370_v14 = vadd.f32 %v3335_v45, %v3234_v58  ;;  %v3467_v56 = vrot.slane %v3407_v24, 2  ;;  %v3468_v3 = vrot.slane %v3408_v39, 2 }
 0x32b   : > { %v5157_v10 = vpop.eup %5156  ;;  %v8034_v54 = vmul.f32 %v5155_v20, %v7884_v52  ;;  %v3470_v22 = vrot.slane %v3409_v8, 2  ;;  %v3507_v28 = vadd.f32 %v7936_v53, %v3371_v47  ;;  %v3508_v33 = vadd.f32 %v7943_v34, %v3372_v6  ;;  %v3715_v8 = vld [vmem:[#allocation2 + $0xb4] sm:$0xe] }
 0x32c   : > { %v5159_v44 = vpop.eup %5158  ;;  %v8039_v16 = vmul.f32 %v5157_v10, %v7874_v19  ;;  %v3469_v43 = vsel %vm1824_vm4, %v3467_v56, %v3468_v3  ;;  %v3537_v12 = vunpack.c.h.bf16 %v3520_v62  ;;  %v3552_v58 = vmul.f32 %v3536_v55, %v5807_v61 }
 0x32d   : > { %v5161_v57 = vpop.eup %5160  ;;  %v8044_v2 = vmul.f32 %v5159_v44, %v7897_v42  ;;  %v3471_v52 = vsel %vm1824_vm4, %v3468_v3, %v3470_v22  ;;  %v3505_v35 = vadd.f32 %v3469_v43, %v3369_v51  ;;  %v3572_v53 = vadd.f32 %v7973_v27, %v3507_v28  ;;  %v8681_v27 = vld [vmem:[#allocation71_spill] sm:$0xff] }
 0x32e   : > { %v5163_v34 = vpop.eup %5162  ;;  %v8049_v19 = vmul.f32 %v5161_v57, %v7887_v5  ;;  %v4595_v62 = vpack.c.bf16 %v8039_v16, %v8031_v23  ;;  %v3506_v36 = vadd.f32 %v3471_v52, %v3370_v14  ;;  %v3553_v7 = vmul.f32 %v3537_v12, %v5807_v61  ;;  %v8682_v44 = vld [vmem:[#allocation67_spill] sm:$0xff] }
 0x32f   : > { %v8055_v31 = vmul.f32 %v5163_v34, %v7890_v17  ;;  %v4590_v42 = vpack.c.bf16 %v8034_v54, %v8044_v2  ;;  %v3568_v25 = vadd.f32 %v3552_v58, %v8680_v15  ;;  %v3570_v39 = vadd.f32 %v8681_v27, %v3505_v35 }
 0x330   : > { %4705 = vst [vmem:[%s6306_s18 + $0x30] sm:$0xff] %v4595_v62   ;;  %v3569_v5 = vadd.f32 %v3553_v7, %v7968_v59  ;;  %v3571_v50 = vadd.f32 %v7947_v49, %v3506_v36  ;;  %v3573_v24 = vadd.f32 %v7977_v29, %v3508_v33  ;;  %v3605_v61 = vmul.f32 %v3536_v55, %v5810_v1 }
 0x331   : > { %4704 = vst [vmem:[%s6306_s18 + $0x28] sm:$0xff] %v4590_v42   ;;  %v4600_v17 = vpack.c.bf16 %v8055_v31, %v8049_v19  ;;  %v3606_v40 = vmul.f32 %v3537_v12, %v5810_v1  ;;  %v3607_v45 = vmul.f32 %v3587_v21, %v5810_v1  ;;  %v3706_v51 = vadd.f32 %v7952_v37, %v3570_v39 }
 0x332   : > { %v3663_v59 = vrot.slane %v3605_v61, 1  ;;  %v3707_v49 = vadd.f32 %v7955_v48, %v3571_v50  ;;  %v3708_v29 = vadd.f32 %v7982_v9, %v3572_v53  ;;  %v3709_v55 = vadd.f32 %v7985_v38, %v3573_v24  ;;  %v8683_v53 = vld [vmem:[#allocation48_spill] sm:$0xff]  ;;  %v8685_v50 = vld [vmem:[#allocation66_spill] sm:$0xff] }
 0x333   : > { %4706 = vst [vmem:[%s6306_s18 + $0x38] sm:$0xff] %v4600_v17   ;;  %v3664_v60 = vrot.slane %v3606_v40, 1  ;;  %v3666_v47 = vrot.slane %v3607_v45, 1  ;;  %v3723_v41 = vunpack.c.l.bf16 %v3715_v8  ;;  %v3742_v6 = vmul.f32 %v7838_v4, %v3537_v12  ;;  %v8686_v40 = vld [vmem:[#allocation63_spill] sm:$0xff] }
 0x334   : > { %v3743_v20 = vmul.f32 %v7838_v4, %v3587_v21  ;;  %v3842_v1 = vadd.f32 %v7958_v32, %v3706_v51  ;;  %v3843_v37 = vadd.f32 %v7961_v18, %v3707_v49  ;;  %v3844_v48 = vadd.f32 %v7988_v0, %v3708_v29 }
 0x335   : > { %v3665_v9 = vsel %vm1683_vm3, %v3663_v59, %v3664_v60  ;;  %v3667_v38 = vsel %vm1683_vm3, %v3664_v60, %v3666_v47  ;;  %v3741_v14 = vmul.f32 %v7838_v4, %v3723_v41  ;;  %v3800_v56 = vrot.slane %v3742_v6, 2  ;;  %v8687_v59 = vld [vmem:[#allocation56_spill] sm:$0xff] }
 0x336   : > { %v3704_v3 = vadd.f32 %v3665_v9, %v3568_v25  ;;  %v3705_v10 = vadd.f32 %v3667_v38, %v3569_v5  ;;  %v3802_v22 = vrot.slane %v3743_v20, 2  ;;  %v3845_v30 = vadd.f32 %v7991_v26, %v3709_v55  ;;  %v8684_v25 = vld [vmem:[#allocation72_spill] sm:$0xff]  ;;  %v8690_v38 = vld [vmem:[#allocation79_spill] sm:$0xff] }
 0x337   : > { %v3799_v28 = vrot.slane %v3741_v14, 2  ;;  %v3858_v21 = vmul.f32 %v7865_v13, %v3842_v1  ;;  %v3859_v32 = vmul.f32 %v7865_v13, %v3843_v37  ;;  %v3860_v18 = vmul.f32 %v7865_v13, %v3844_v48  ;;  %v8688_v55 = vld [vmem:[#allocation64_spill] sm:$0xff] }
 0x338   : > { %v3803_v0 = vsel %vm1824_vm4, %v3800_v56, %v3802_v22  ;;  %v3861_v33 = vmul.f32 %v7865_v13, %v3845_v30  ;;  %v2835_v4 = vadd.f32 %v7996_v11, %v8682_v44  ;;  %v4072_v45 = vadd.f32 %v7927_v63, %v8686_v40  ;;  %v8689_v63 = vld [vmem:[#allocation69_spill] sm:$0xff]  ;;  %v8692_v22 = vld [vmem:[#allocation24_spill] sm:$0xff] }
 0x339   : > { %v3801_v43 = vsel %vm1824_vm4, %v3799_v28, %v3800_v56  ;;  %v3841_v12 = vadd.f32 %v3803_v0, %v3705_v10  ;;  %v3874_v58 = vadd.f32 %v7881_v46, %v3858_v21  ;;  %v3875_v26 = vadd.f32 %v7881_v46, %v3859_v32  ;;  %v8691_v56 = vld [vmem:[#allocation80_spill] sm:$0xff] }
 0x33a   : > { %v3840_v57 = vadd.f32 %v3801_v43, %v3704_v3  ;;  %v3876_v52 = vadd.f32 %v7881_v46, %v3860_v18  ;;  %v3877_v35 = vadd.f32 %v7881_v46, %v3861_v33  ;;  %v2836_v34 = vadd.f32 %v2835_v4, %v8683_v53 }
 0x33b   : > { %v3857_v62 = vmul.f32 %v7865_v13, %v3841_v12  ;;  %v4438_v36 = vmul.f32 -1.442695, %v3874_v58  ;;  %v4439_v7 = vmul.f32 -1.442695, %v3875_v26  ;;  %v4073_v49 = vadd.f32 %v4072_v45, %v8687_v59 }
 0x33c   : > { %v3856_v11 = vmul.f32 %v7865_v13, %v3840_v57  ;;  %v4440_v42 = vmul.f32 -1.442695, %v3876_v52  ;;  %v4441_v15 = vmul.f32 -1.442695, %v3877_v35  ;;  %v2837_v27 = vadd.f32 %v2836_v34, %v8684_v25  ;;  %v8693_v57 = vld [vmem:[#allocation76_spill] sm:$0xff] }
 0x33d   : > { %v3873_v39 = vadd.f32 %v7881_v46, %v3857_v62  ;;  %5164 = vpow2.f32 %v4438_v36  ;;  %v4074_v60 = vadd.f32 %v4073_v49, %v8688_v55 }
 0x33e   : > { %v3872_v5 = vadd.f32 %v7881_v46, %v3856_v11  ;;  %5166 = vpow2.f32 %v4439_v7  ;;  %v2838_v24 = vadd.f32 %v2837_v27, %v8685_v50 }
 0x33f   : > { %v4437_v61 = vmul.f32 -1.442695, %v3873_v39  ;;  %5168 = vpow2.f32 %v4440_v42  ;;  %v4075_v48 = vadd.f32 %v4074_v60, %v8689_v63 }
 0x340   : > { %v4436_v8 = vmul.f32 -1.442695, %v3872_v5  ;;  %5170 = vpow2.f32 %v4441_v15  ;;  %v2839_v17 = vadd.f32 %v2838_v24, %v8044_v2 }
 0x341   : > { %5172 = vpow2.f32 %v4437_v61  ;;  %v4076_v14 = vadd.f32 %v4075_v48, %v8690_v38 }
 0x342   : > { %5174 = vpow2.f32 %v4436_v8  ;;  %v2840_v13 = vadd.f32 %v2839_v17, %v8034_v54 }
 0x343   : > { %v4077_v3 = vadd.f32 %v4076_v14, %v8691_v56 }
 0x344   : > { %v2841_v51 = vadd.f32 %v2840_v13, %v8031_v23 }
 0x345   : > { %v4078_v30 = vadd.f32 %v4077_v3, %v8692_v22 }
 0x346   : > { %v2842_v46 = vadd.f32 %v2841_v51, %v8039_v16 }
 0x347   : > { %v4079_v53 = vadd.f32 %v4078_v30, %v8693_v57 }
 0x348   : > { %v2843_v0 = vadd.f32 %v2842_v46, %v8049_v19 }
 0x34a   : > { %v5165_v29 = vpop.eup %5164  ;;  %v2844_v19 = vadd.f32 %v2843_v0, %v8055_v31 }
 0x34b   : > { %v5167_v47 = vpop.eup %5166  ;;  %v3938_v41 = vadd.f32 1.0, %v5165_v29 }
 0x34c   : > { %v5169_v6 = vpop.eup %5168  ;;  %v3939_v2 = vadd.f32 1.0, %v5167_v47  ;;  %v2845_v36 = vrot.slane %v2844_v19, 4 }
 0x34d   : > { %v5171_v20 = vpop.eup %5170  ;;  %v3940_v1 = vadd.f32 1.0, %v5169_v6  ;;  %5176 = vrcp.f32 %v3938_v41 }
 0x34e   : > { %v5173_v54 = vpop.eup %5172  ;;  %v3941_v37 = vadd.f32 1.0, %v5171_v20  ;;  %5178 = vrcp.f32 %v3939_v2 }
 0x34f   : > { %v5175_v23 = vpop.eup %5174  ;;  %v3937_v9 = vadd.f32 1.0, %v5173_v54  ;;  %5180 = vrcp.f32 %v3940_v1 }
 0x350   : > { %v3936_v16 = vadd.f32 1.0, %v5175_v23  ;;  %5182 = vrcp.f32 %v3941_v37 }
 0x351   : > { %5184 = vrcp.f32 %v3937_v9 }
 0x352   : > { %5186 = vrcp.f32 %v3936_v16 }
 0x35a   : > { %v5177_v10 = vpop.eup %5176 }
 0x35b   : > { %v5179_v28 = vpop.eup %5178  ;;  %v3986_v21 = vmul.f32 %v5177_v10, %v3874_v58 }
 0x35c   : > { %v5181_v32 = vpop.eup %5180  ;;  %v3987_v18 = vmul.f32 %v5179_v28, %v3875_v26 }
 0x35d   : > { %v5183_v33 = vpop.eup %5182  ;;  %v3988_v44 = vmul.f32 %v5181_v32, %v3876_v52 }
 0x35e   : > { %v5185_v4 = vpop.eup %5184  ;;  %v3989_v43 = vmul.f32 %v5183_v33, %v3877_v35  ;;  %v4683_v12 = vpack.c.bf16 %v3987_v18, %v3986_v21 }
 0x35f   : > { %v5187_v34 = vpop.eup %5186  ;;  %v3985_v62 = vmul.f32 %v5185_v4, %v3873_v39 }
 0x360   : > { %v3984_v58 = vmul.f32 %v5187_v34, %v3872_v5  ;;  %4723 = vst [vmem:[%s6306_s18 + $0x70] sm:$0xff] %v4683_v12   ;;  %v4688_v26 = vpack.c.bf16 %v3989_v43, %v3988_v44 }
 0x362   : > { %v4678_v52 = vpack.c.bf16 %v3985_v62, %v3984_v58  ;;  %4724 = vst [vmem:[%s6306_s18 + $0x78] sm:$0xff] %v4688_v26   ;;  %v4080_v35 = vadd.f32 %v4079_v53, %v3984_v58 }
 0x364   : > { %4722 = vst [vmem:[%s6306_s18 + $0x68] sm:$0xff] %v4678_v52   ;;  %v4081_v7 = vadd.f32 %v4080_v35, %v3985_v62 }
 0x365   : > { %5292 = shalt.err (!%p5289_p3)
}
 0x366   : > { %s5293_s18 = scalar_lea.hbm %s8129_s20, 2048  ;;  %s5297_s4 = scalar_lea.hbm %s8201_s7, 4096 }
 0x367   : > { %p5294_p11 = scmp.ne.s32.totalorder %s8129_s20, %s5293_s18  ;;  %p5298_p4 = scmp.lt.s32.totalorder %s8129_s20, %s8201_s7 }
 0x368   : > { %p5299_p6 = scmp.lt.s32.totalorder %s5297_s4, %s5293_s18 }
 0x369   : > { %p5295_p9 = pnand %p5294_p11, %p8694_p2 }
 0x36a   : > { %p5300_p8 = por %p5299_p6, %p5298_p4 }
 0x36b   : > { %p5296_p1 = pneg %p5295_p9 }
 0x36d   : > { %p5301_p10 = pnand %p5300_p8, %p5296_p1 }
 0x36f   : > { %5304 = shalt.err (!%p5301_p10)
}
 0x370   : > { %s5388_s13 = smov 64   ;;  %s5389_s17 = smov 4   ;;  %v4082_v31 = vadd.f32 %v4081_v7, %v3986_v21  ;;  %v2846_v11 = vadd.f32 %v2845_v36, %v2844_v19 }
 0x371   : > { %4831 = dma.vmem_to_hbm [thread:$0]  (%p8694_p2), %s8131_s19, 2048, %s8129_s20, %s4096_s10, %s5388_s13, %s5388_s13, %s5389_s17  }
 0x372   : > { %v4083_v42 = vadd.f32 %v4082_v31, %v3987_v18  ;;  %v2847_v25 = vrot.slane %v2846_v11, 2  ;;  %s4477_s19 = sshll.u32 %s5457_s9, 4  ;;  %s362_s20 = scalar_lea.vmem [#allocation10], %s5569_s1 }
 0x373   : > { %s4129_s10 = sshll.u32 %s362_s20, 4  ;;  %s4127_s16 = scalar_lea.hbm %s8202_s8, %s4477_s19  ;;  %s4130_s10 = int_to_ptr.vmem [resolvable:$true] %s4129_s10 }
 0x374   : > { %v4084_v15 = vadd.f32 %v4083_v42, %v3988_v44  ;;  %v2848_v5 = vadd.f32 %v2847_v25, %v2846_v11  ;;  %s4101_s18 = scalar_lea.sflag [#allocation11], %s5569_s1  ;;  %s5305_s21 = scalar_lea.vmem %s4130_s10, 16 }
 0x375   : > { %p5306_p7 = scmp.ne.s32.totalorder %s4130_s10, %s5305_s21  ;;  %s5390_s25 = smov [#allocation10]  }
 0x376   : > { %v4085_v27 = vadd.f32 %v4084_v15, %v3989_v43  ;;  %v2849_v61 = vrot.slane %v2848_v5, 1  ;;  %s5309_s4 = sshll.u32 %s5390_s25, 4  ;;  %s5310_s4 = int_to_ptr.vmem [resolvable:$false] %s5309_s4 }
 0x377   : > { %p5307_p12 = pnand %p5306_p7, %p8694_p2  ;;  %s5311_s9 = scalar_lea.vmem %s5310_s4, 32 }
 0x378   : > { %v4086_v39 = vrot.slane %v4085_v27, 4  ;;  %v2850_v13 = vadd.f32 %v2849_v61, %v2848_v5  ;;  %p5312_p0 = scmp.lt.s32.totalorder %s4130_s10, %s5310_s4  ;;  %p5313_p5 = scmp.lt.s32.totalorder %s5311_s9, %s5305_s21 }
 0x379   : > { %p5308_p13 = pneg %p5307_p12 }
 0x37a   : > { %v4087_v50 = vadd.f32 %v4086_v39, %v4085_v27  ;;  %p5314_p3 = por %p5313_p5, %p5312_p0 }
 0x37c   : > { %v4088_v24 = vrot.slane %v4087_v50, 2  ;;  %p5315_p11 = pnand %p5314_p3, %p5308_p13 }
 0x37e   : > { %v4089_v8 = vadd.f32 %v4088_v24, %v4087_v50 }
 0x380   : > { %v4090_v17 = vrot.slane %v4089_v8, 1 }
 0x382   : > { %v4091_v40 = vadd.f32 %v4090_v17, %v4089_v8 }
 0x384   : > { %v4092_v45 = vadd.f32 %v4091_v40, %v2850_v13 }
 0x386   : > { %v4093_v51 = vmul.f32 0.00390625, %v4092_v45 }
 0x388   : > { %4094 = vst [vmem:[%s362_s20] sm:$0x1] %v4093_v51 }
 0x389   : > { %5318 = shalt.err (!%p5315_p11)
}
 0x38a   : > { %s5319_s24 = scalar_lea.hbm %s4127_s16, 16  ;;  %s5323_s13 = scalar_lea.hbm %s8202_s8, 32 }
 0x38b   : > { %p5320_p9 = scmp.ne.s32.totalorder %s4127_s16, %s5319_s24  ;;  %p5324_p6 = scmp.lt.s32.totalorder %s4127_s16, %s8202_s8 }
 0x38c   : > { %p5325_p8 = scmp.lt.s32.totalorder %s5323_s13, %s5319_s24 }
 0x38d   : > { %p5321_p1 = pnand %p5320_p9, %p8694_p2 }
 0x38e   : > { %p5326_p10 = por %p5325_p8, %p5324_p6 }
 0x38f   : > { %p5322_p4 = pneg %p5321_p1 }
 0x391   : > { %p5327_p7 = pnand %p5326_p10, %p5322_p4 }
 0x393   : > { %5330 = shalt.err (!%p5327_p7)
}
 0x394   : > { %4832 = dma.vmem_to_hbm [thread:$0]  (%p8694_p2), %s4130_s10, 16, %s4127_s16, %s4101_s18  }
 0x395 PF: > { %s4141_s20 = sand.u32 1, %s5365_s27   ;;  %p8695_p12 = scmp.ne.s32.totalorder %s8316_s12, 0 }
 0x396   : > { %p8696_p13 = scmp.ge.s32.totalorder %s5377_s30, 2  ;;  %s4142_s26 = scalar_lea.sflag [#allocation5], %s4141_s20 }
 0x398   : > { %p4847_p0 = pnand %p8696_p13, %p8695_p12 }
 0x39a   : > { %p4848_p5 = pneg %p4847_p0 }
 0x39c   : > { %5356 = dma.done.wait (%p4848_p5), %s4142_s26, 2048  }
 0x39d   : > { %5358 = vsyncadd (%p4848_p5), %s4142_s26, 4294965248  ;;  %s4151_s14 = scalar_lea.sflag [#allocation11], %s4141_s20 }
 0x39e   : > { %5360 = dma.done.wait (%p4848_p5), %s4151_s14, 16  }
 0x39f   : > { %5362 = vsyncadd (%p4848_p5), %s4151_s14, 4294967280  ;;  %p26_p2 = scmp.ge.s32.totalorder %s5511_s15, 4   ;;  %s8697_s27 = smov %s5369_s28 }
 0x3a0   : > { %s8698_s28 = smov %s5373_s29  ;;  %s8699_s29 = smov %s5520_s22 }
 0x3a1   : > { %s8700_s30 = smov %s5511_s15  ;;  %28 = sbr.rel (!%p26_p2) target bundleno = 11 (0xb), region = 126 }
 0x3a6   :  { %4155 = vsyncpa [#allocation4], 1 }
 0x3a7   :  { %4157 = vsyncpa [#allocation4 + $0x1], 1 }
 0x3a8   :  { %4158 = vsyncpa [#allocation7], 1 }
 0x3a9   :  { %4159 = vsyncpa [#allocation5], 1 }
 0x3aa   :  { %4161 = vsyncpa [#allocation5 + $0x1], 1 }
 0x3ab   :  { %4162 = vsyncpa [#allocation11], 1 }
 0x3ac   :  { %4164 = vsyncpa [#allocation11 + $0x1], 1 }

</bundles_post_ra>
